<compile_context>
chip_gen: v6e
topology: v6e:2x2x1
jax: 0.10.0
libtpu: 0.0.40
codegen_flags: <defaults>
</compile_context>

<pallas_src>
import math

import numpy as np
import jax
import jax.numpy as jnp
from jax.experimental import pallas as pl
from jax.experimental.pallas import tpu as pltpu


def _round_up(n, m):
    return ((n + m - 1) // m) * m


def _kernel(x_ref, w1_ref, b1_ref, w2_ref, b2_ref, mn_ref, o_ref):
    # x_ref: (TB, Cin) f32; w1_ref: (Cin, HWC) f32; w2_ref/mn_ref: (HWC, HWC) bf16.
    # All HWC-sized columns are channel-major: col = c*HW + p.
    bf16 = jnp.bfloat16

    # ---- Stage 1: ZeroPad2d + EqualizedConv2d(Cin -> C, (H, W)) as one matmul (f32) ----
    h = jnp.dot(x_ref[...], w1_ref[...], preferred_element_type=jnp.float32)   # (TB, HWC)
    h = h + b1_ref[...]
    h = jnp.maximum(h, 0.2 * h)                                                 # LeakyReLU(0.2)
    # AudioNorm: per-pixel channel mean of h^2 broadcast back over channels, as ONE
    # full-width matmul against the constant block matrix M (bf16 operands, f32 acc).
    m1 = jnp.dot((h * h).astype(bf16), mn_ref[...],
                 preferred_element_type=jnp.float32)                            # (TB, HWC)
    h = h * jax.lax.rsqrt(m1 + 1e-8)

    # ---- Stage 2: EqualizedConv2d(C -> C, 3x3, pad=1) as one block-structured matmul ----
    y = jnp.dot(h.astype(bf16), w2_ref[...], preferred_element_type=jnp.float32)
    y = y + b2_ref[...]
    y = jnp.maximum(y, 0.2 * y)
    m2 = jnp.dot((y * y).astype(bf16), mn_ref[...],
                 preferred_element_type=jnp.float32)
    y = y * jax.lax.rsqrt(m2 + 1e-8)

    o_ref[...] = y.astype(o_ref.dtype)                                          # lane-dense store


def gansynth_init_format_layer(x, w1, b1, w2, b2, output_shape):
    """x: (B, dimLatent). w1: (C, Cin, H, W). b1: (C,). w2: (C, C, 3, 3). b2: (C,).
    Returns NCHW (B, C, H, W), matching the PyTorch module output."""
    H, W = output_shape
    B, Cin = x.shape
    C = w1.shape[0]
    HW = H * W
    HWC = HW * C
    f32, bf16 = jnp.float32, jnp.bfloat16

    scale1 = math.sqrt(2.0 / (Cin * H * W))   # He constant of first EqualizedConv2d
    scale2 = math.sqrt(2.0 / (C * 3 * 3))     # He constant of second EqualizedConv2d

    # ---- Wrapper-side weight prep (glue, traced once); channel-major columns c*HW + p ----
    # Stage 1: with the single (1,1) pixel zero-padded, conv1 is a dense map
    # latent -> (chan, pixel) against the spatially flipped kernel.  Fold the He scale in.
    w1f = jnp.transpose(w1[:, :, ::-1, ::-1], (1, 0, 2, 3))                  # (Cin, C, H, W)
    w1_big = (w1f.reshape(Cin, HWC) * scale1).astype(f32)
    b1_big = jnp.repeat(b1.astype(f32) * scale1, HW).reshape(1, HWC)

    # Stage 2: block matrix so the whole 3x3 'same' conv is one matmul:
    #   w2_big[ci*HW + p_in, co*HW + p_out] = w2[co, ci, ki, kj] * scale2
    # when pixel p_in is the (ki,kj)-neighbor of p_out, else 0.
    sel = np.zeros((9, HW, HW), np.float32)
    for ki in range(3):
        for kj in range(3):
            for io in range(H):
                for jo in range(W):
                    ii, jj = io + ki - 1, jo + kj - 1
                    if 0 <= ii < H and 0 <= jj < W:
                        sel[ki * 3 + kj, ii * W + jj, io * W + jo] = 1.0
    w2t = jnp.transpose(w2, (2, 3, 1, 0)).reshape(9, C, C)                   # (tap, ci, co)
    w2_big = (jnp.einsum('tpq,tcd->cpdq', jnp.asarray(sel), w2t)
              .reshape(HWC, HWC) * scale2).astype(bf16)
    b2_big = jnp.repeat(b2.astype(f32) * scale2, HW).reshape(1, HWC)

    # Fused AudioNorm matrix: (h^2 @ M)[b, c*HW + p] = mean_{c'} h^2[b, c'*HW + p].
    # Entries are 0 or 1/C (bf16-exact for power-of-two C).
    mnorm = jnp.asarray(np.kron(np.full((C, C), 1.0 / C, np.float32),
                                np.eye(HW, dtype=np.float32))).astype(bf16)  # (HWC, HWC)

    # ---- Batch tiling: >=2 grid steps when possible (both v7x TCs), cap 256 for big B ----
    if B <= 8:
        TB = _round_up(B, 8)
    else:
        cap = 256 if B >= 512 else 128
        TB = min(cap, _round_up((B + 1) // 2, 8))
    BP = _round_up(B, TB)
    xp = jnp.zeros((BP, Cin), f32).at[:B].set(x.astype(f32))

    # Scoped-VMEM budget (matters at production scaleDepth, esp. v5e's 16 MiB default).
    const_bytes = Cin * HWC * 4 + 2 * HWC * 4 + 2 * HWC * HWC * 2
    tile_bytes = 2 * TB * Cin * 4 + 2 * TB * HWC * 4
    work_bytes = 8 * TB * HWC * 4
    est = 2 * const_bytes + tile_bytes + work_bytes
    vmem_limit = int(min(100 * 2**20, max(32 * 2**20, 2 * est)))

    def call(single_buffer_consts):
        if single_buffer_consts:
            const = lambda shape: pl.BlockSpec(shape, lambda b: (0, 0),
                                               pipeline_mode=pl.Buffered(1))
        else:
            const = lambda shape: pl.BlockSpec(shape, lambda b: (0, 0))
        return pl.pallas_call(
            _kernel,
            out_shape=jax.ShapeDtypeStruct((BP, HWC), f32),
            grid_spec=pltpu.PrefetchScalarGridSpec(
                num_scalar_prefetch=0,
                grid=(BP // TB,),
                in_specs=[
                    pl.BlockSpec((TB, Cin), lambda b: (b, 0)),   # latent rows for this tile
                    const((Cin, HWC)),                           # stage-1 weight (resident, f32)
                    const((1, HWC)),                             # stage-1 bias (pre-scaled)
                    const((HWC, HWC)),                           # stage-2 block weight (bf16)
                    const((1, HWC)),                             # stage-2 bias (pre-scaled)
                    const((HWC, HWC)),                           # fused norm matrix (bf16)
                ],
                out_specs=pl.BlockSpec((TB, HWC), lambda b: (b, 0)),  # lane-dense output
            ),
            compiler_params=pltpu.CompilerParams(
                dimension_semantics=("parallel",),
                vmem_limit_bytes=vmem_limit),
        )(xp, w1_big, b1_big, w2_big, b2_big, mnorm)

    try:
        out = call(True)
    except Exception:
        # Fallback for jax versions where pipeline_mode=pl.Buffered(1) is not accepted.
        out = call(False)

    # Columns are channel-major (c*HW + p): reshape straight to NCHW -> no transpose pass.
    return out[:B].reshape(B, C, H, W)


def _reference(x, w1, b1, w2, b2, H, W):
    """Pure-JAX f32 reference of the PyTorch forward (NCHW output)."""
    B, Cin = x.shape
    C = w1.shape[0]
    s1 = math.sqrt(2.0 / (Cin * H * W))
    s2 = math.sqrt(2.0 / (C * 9))
    hi = jax.lax.Precision.HIGHEST
    w1f = jnp.transpose(w1[:, :, ::-1, ::-1], (2, 3, 1, 0))        # (H, W, Cin, C)
    h = (jnp.einsum('bc,hwcd->bhwd', x, w1f, precision=hi) + b1) * s1
    h = jnp.where(h > 0, h, 0.2 * h)
    h = h / jnp.sqrt(jnp.mean(h * h, axis=-1, keepdims=True) + 1e-8)
    hp = jnp.pad(h, ((0, 0), (1, 1), (1, 1), (0, 0)))
    w2t = jnp.transpose(w2, (2, 3, 1, 0))                          # (3, 3, C, C)
    y = jnp.zeros((B, H, W, C), jnp.float32)
    for ki in range(3):
        for kj in range(3):
            y = y + jnp.einsum('bhwc,cd->bhwd',
                               hp[:, ki:ki + H, kj:kj + W, :], w2t[ki, kj], precision=hi)
    y = (y + b2) * s2
    y = jnp.where(y > 0, y, 0.2 * y)
    y = y / jnp.sqrt(jnp.mean(y * y, axis=-1, keepdims=True) + 1e-8)
    return jnp.transpose(y, (0, 3, 1, 2))


if __name__ == "__main__":
    # Small config consistent with GANsynthInitFormatLayer(dimLatent, scaleDepth, outputShape,
    # equalizedlR=True, initBiasToZero=True, pixelNorm=True)
    B, dimLatent, scaleDepth = 2, 32, 32
    outputShape = (4, 4)
    H, W = outputShape

    key = jax.random.PRNGKey(0)
    kx, kw1, kb1, kw2, kb2 = jax.random.split(key, 5)
    x = jax.random.normal(kx, (B, dimLatent), jnp.float32)
    # Equalized init: weights ~ N(0, 1) (lrMul=1).  Biases are exercised with NONZERO values
    # here to validate the He-scale bias folding (the module inits them to zero, but trained
    # checkpoints have nonzero biases).
    w1 = jax.random.normal(kw1, (scaleDepth, dimLatent, H, W), jnp.float32)
    b1 = jax.random.normal(kb1, (scaleDepth,), jnp.float32)
    w2 = jax.random.normal(kw2, (scaleDepth, scaleDepth, 3, 3), jnp.float32)
    b2 = jax.random.normal(kb2, (scaleDepth,), jnp.float32)

    out = gansynth_init_format_layer(x, w1, b1, w2, b2, outputShape)
    out = jax.block_until_ready(out)

    ref = _reference(x, w1, b1, w2, b2, H, W)
    assert out.shape == (B, scaleDepth, H, W), out.shape
    err = float(jnp.max(jnp.abs(out - ref)))
    # bf16 MXU operands in stage 2 / norms -> loosened tolerance vs the f32 reference.
    assert jnp.allclose(out, ref, rtol=3e-2, atol=3e-2), err
    print("KERNEL_OK")
</pallas_src>

<mosaic_0001>
module attributes {stable_mosaic.version = 11 : i64} {
  func.func @_kernel(%arg0: i32, %arg1: memref<8x32xf32, #tpu.memory_space<vmem>>, %arg2: memref<32x512xf32, #tpu.memory_space<vmem>>, %arg3: memref<1x512xf32, #tpu.memory_space<vmem>>, %arg4: memref<512x512xbf16, #tpu.memory_space<vmem>>, %arg5: memref<1x512xf32, #tpu.memory_space<vmem>>, %arg6: memref<512x512xbf16, #tpu.memory_space<vmem>>, %arg7: memref<8x512xf32, #tpu.memory_space<vmem>>) attributes {dimension_semantics = [#tpu.dimension_semantics<parallel>], iteration_bounds = array<i64: 1>, scalar_prefetch = 0 : i64, scratch_operands = 0 : i64, tpu.core_type = #tpu.core_type<tc>, window_params = [{transform_indices = @transform_0, window_bounds = array<i64: 8, 32>}, {pipeline_mode = #tpu.pipeline_mode<synchronous>, transform_indices = @transform_1, window_bounds = array<i64: 32, 512>}, {pipeline_mode = #tpu.pipeline_mode<synchronous>, transform_indices = @transform_2, window_bounds = array<i64: 1, 512>}, {pipeline_mode = #tpu.pipeline_mode<synchronous>, transform_indices = @transform_3, window_bounds = array<i64: 512, 512>}, {pipeline_mode = #tpu.pipeline_mode<synchronous>, transform_indices = @transform_4, window_bounds = array<i64: 1, 512>}, {pipeline_mode = #tpu.pipeline_mode<synchronous>, transform_indices = @transform_5, window_bounds = array<i64: 512, 512>}, {transform_indices = @transform_6, window_bounds = array<i64: 8, 512>}]} {
    %c0 = arith.constant 0 : index
    %c0_0 = arith.constant 0 : index
    %0 = vector.load %arg1[%c0, %c0_0] : memref<8x32xf32, #tpu.memory_space<vmem>>, vector<8x32xf32>
    %c0_1 = arith.constant 0 : index
    %c0_2 = arith.constant 0 : index
    %1 = vector.load %arg2[%c0_1, %c0_2] : memref<32x512xf32, #tpu.memory_space<vmem>>, vector<32x512xf32>
    %cst = arith.constant dense<0.000000e+00> : vector<8x512xf32>
    %2 = tpu.matmul %0, %1, %cst {dimension_numbers = #tpu.dot_dimension_numbers<[1], [0], [0], [1], [0, 0, 1, 1], [], []>} : vector<8x32xf32>, vector<32x512xf32>, vector<8x512xf32> -> vector<8x512xf32>
    %c0_3 = arith.constant 0 : index
    %c0_4 = arith.constant 0 : index
    %3 = vector.load %arg3[%c0_3, %c0_4] : memref<1x512xf32, #tpu.memory_space<vmem>>, vector<1x512xf32>
    %4 = vector.broadcast %3 : vector<1x512xf32> to vector<8x512xf32>
    %5 = arith.addf %2, %4 : vector<8x512xf32>
    %cst_5 = arith.constant 2.000000e-01 : f32
    %6 = vector.broadcast %cst_5 : f32 to vector<8x512xf32>
    %7 = arith.mulf %6, %5 : vector<8x512xf32>
    %8 = arith.maximumf %5, %7 : vector<8x512xf32>
    %9 = arith.mulf %8, %8 : vector<8x512xf32>
    %10 = arith.truncf %9 : vector<8x512xf32> to vector<8x512xbf16>
    %c0_6 = arith.constant 0 : index
    %c0_7 = arith.constant 0 : index
    %11 = vector.load %arg6[%c0_6, %c0_7] : memref<512x512xbf16, #tpu.memory_space<vmem>>, vector<512x512xbf16>
    %cst_8 = arith.constant dense<0.000000e+00> : vector<8x512xf32>
    %12 = tpu.matmul %10, %11, %cst_8 {dimension_numbers = #tpu.dot_dimension_numbers<[1], [0], [0], [1], [0, 0, 1, 1], [], []>} : vector<8x512xbf16>, vector<512x512xbf16>, vector<8x512xf32> -> vector<8x512xf32>
    %cst_9 = arith.constant 9.99999993E-9 : f32
    %13 = vector.broadcast %cst_9 : f32 to vector<8x512xf32>
    %14 = arith.addf %12, %13 : vector<8x512xf32>
    %15 = math.rsqrt %14 : vector<8x512xf32>
    %16 = arith.mulf %8, %15 : vector<8x512xf32>
    %17 = arith.truncf %16 : vector<8x512xf32> to vector<8x512xbf16>
    %c0_10 = arith.constant 0 : index
    %c0_11 = arith.constant 0 : index
    %18 = vector.load %arg4[%c0_10, %c0_11] : memref<512x512xbf16, #tpu.memory_space<vmem>>, vector<512x512xbf16>
    %cst_12 = arith.constant dense<0.000000e+00> : vector<8x512xf32>
    %19 = tpu.matmul %17, %18, %cst_12 {dimension_numbers = #tpu.dot_dimension_numbers<[1], [0], [0], [1], [0, 0, 1, 1], [], []>} : vector<8x512xbf16>, vector<512x512xbf16>, vector<8x512xf32> -> vector<8x512xf32>
    %c0_13 = arith.constant 0 : index
    %c0_14 = arith.constant 0 : index
    %20 = vector.load %arg5[%c0_13, %c0_14] : memref<1x512xf32, #tpu.memory_space<vmem>>, vector<1x512xf32>
    %21 = vector.broadcast %20 : vector<1x512xf32> to vector<8x512xf32>
    %22 = arith.addf %19, %21 : vector<8x512xf32>
    %cst_15 = arith.constant 2.000000e-01 : f32
    %23 = vector.broadcast %cst_15 : f32 to vector<8x512xf32>
    %24 = arith.mulf %23, %22 : vector<8x512xf32>
    %25 = arith.maximumf %22, %24 : vector<8x512xf32>
    %26 = arith.mulf %25, %25 : vector<8x512xf32>
    %27 = arith.truncf %26 : vector<8x512xf32> to vector<8x512xbf16>
    %c0_16 = arith.constant 0 : index
    %c0_17 = arith.constant 0 : index
    %28 = vector.load %arg6[%c0_16, %c0_17] : memref<512x512xbf16, #tpu.memory_space<vmem>>, vector<512x512xbf16>
    %cst_18 = arith.constant dense<0.000000e+00> : vector<8x512xf32>
    %29 = tpu.matmul %27, %28, %cst_18 {dimension_numbers = #tpu.dot_dimension_numbers<[1], [0], [0], [1], [0, 0, 1, 1], [], []>} : vector<8x512xbf16>, vector<512x512xbf16>, vector<8x512xf32> -> vector<8x512xf32>
    %cst_19 = arith.constant 9.99999993E-9 : f32
    %30 = vector.broadcast %cst_19 : f32 to vector<8x512xf32>
    %31 = arith.addf %29, %30 : vector<8x512xf32>
    %32 = math.rsqrt %31 : vector<8x512xf32>
    %33 = arith.mulf %25, %32 : vector<8x512xf32>
    %c0_20 = arith.constant 0 : index
    %c0_21 = arith.constant 0 : index
    %34 = vector.load %arg7[%c0_20, %c0_21] : memref<8x512xf32, #tpu.memory_space<vmem>>, vector<8x512xf32>
    tpu.vector_store %arg7[%c0_20, %c0_21], %33 {strides = array<i32>} : memref<8x512xf32, #tpu.memory_space<vmem>>, vector<8x512xf32>,
    return
  }
  func.func @transform_0(%arg0: i32) -> (i32, i32) {
    %c0_i32 = arith.constant 0 : i32
    %c0_i32_0 = arith.constant 0 : i32
    return %arg0, %c0_i32 : i32, i32
  }
  func.func @transform_1(%arg0: i32) -> (i32, i32) {
    %c0_i32 = arith.constant 0 : i32
    %c0_i32_0 = arith.constant 0 : i32
    %c0_i32_1 = arith.constant 0 : i32
    return %c0_i32, %c0_i32_0 : i32, i32
  }
  func.func @transform_2(%arg0: i32) -> (i32, i32) {
    %c0_i32 = arith.constant 0 : i32
    %c0_i32_0 = arith.constant 0 : i32
    %c0_i32_1 = arith.constant 0 : i32
    return %c0_i32, %c0_i32_0 : i32, i32
  }
  func.func @transform_3(%arg0: i32) -> (i32, i32) {
    %c0_i32 = arith.constant 0 : i32
    %c0_i32_0 = arith.constant 0 : i32
    %c0_i32_1 = arith.constant 0 : i32
    return %c0_i32, %c0_i32_0 : i32, i32
  }
  func.func @transform_4(%arg0: i32) -> (i32, i32) {
    %c0_i32 = arith.constant 0 : i32
    %c0_i32_0 = arith.constant 0 : i32
    %c0_i32_1 = arith.constant 0 : i32
    return %c0_i32, %c0_i32_0 : i32, i32
  }
  func.func @transform_5(%arg0: i32) -> (i32, i32) {
    %c0_i32 = arith.constant 0 : i32
    %c0_i32_0 = arith.constant 0 : i32
    %c0_i32_1 = arith.constant 0 : i32
    return %c0_i32, %c0_i32_0 : i32, i32
  }
  func.func @transform_6(%arg0: i32) -> (i32, i32) {
    %c0_i32 = arith.constant 0 : i32
    %c0_i32_0 = arith.constant 0 : i32
    return %arg0, %c0_i32 : i32, i32
  }
}

module attributes {stable_mosaic.version = 11 : i64} {
  func.func @_kernel(%arg0: i32, %arg1: memref<8x32xf32, #tpu.memory_space<vmem>>, %arg2: memref<32x512xf32, #tpu.memory_space<vmem>>, %arg3: memref<1x512xf32, #tpu.memory_space<vmem>>, %arg4: memref<512x512xbf16, #tpu.memory_space<vmem>>, %arg5: memref<1x512xf32, #tpu.memory_space<vmem>>, %arg6: memref<512x512xbf16, #tpu.memory_space<vmem>>, %arg7: memref<8x512xf32, #tpu.memory_space<vmem>>) attributes {dimension_semantics = [#tpu.dimension_semantics<parallel>], iteration_bounds = array<i64: 1>, scalar_prefetch = 0 : i64, scratch_operands = 0 : i64, tpu.core_type = #tpu.core_type<tc>, window_params = [{transform_indices = @transform_0, window_bounds = array<i64: 8, 32>}, {pipeline_mode = #tpu.pipeline_mode<synchronous>, transform_indices = @transform_1, window_bounds = array<i64: 32, 512>}, {pipeline_mode = #tpu.pipeline_mode<synchronous>, transform_indices = @transform_2, window_bounds = array<i64: 1, 512>}, {pipeline_mode = #tpu.pipeline_mode<synchronous>, transform_indices = @transform_3, window_bounds = array<i64: 512, 512>}, {pipeline_mode = #tpu.pipeline_mode<synchronous>, transform_indices = @transform_4, window_bounds = array<i64: 1, 512>}, {pipeline_mode = #tpu.pipeline_mode<synchronous>, transform_indices = @transform_5, window_bounds = array<i64: 512, 512>}, {transform_indices = @transform_6, window_bounds = array<i64: 8, 512>}]} {
    %c0 = arith.constant 0 : index
    %c0_0 = arith.constant 0 : index
    %0 = vector.load %arg1[%c0, %c0_0] : memref<8x32xf32, #tpu.memory_space<vmem>>, vector<8x32xf32>
    %c0_1 = arith.constant 0 : index
    %c0_2 = arith.constant 0 : index
    %1 = vector.load %arg2[%c0_1, %c0_2] : memref<32x512xf32, #tpu.memory_space<vmem>>, vector<32x512xf32>
    %cst = arith.constant dense<0.000000e+00> : vector<8x512xf32>
    %2 = tpu.matmul %0, %1, %cst {dimension_numbers = #tpu.dot_dimension_numbers<[1], [0], [0], [1], [0, 0, 1, 1], [], []>} : vector<8x32xf32>, vector<32x512xf32>, vector<8x512xf32> -> vector<8x512xf32>
    %c0_3 = arith.constant 0 : index
    %c0_4 = arith.constant 0 : index
    %3 = vector.load %arg3[%c0_3, %c0_4] : memref<1x512xf32, #tpu.memory_space<vmem>>, vector<1x512xf32>
    %4 = vector.broadcast %3 : vector<1x512xf32> to vector<8x512xf32>
    %5 = arith.addf %2, %4 : vector<8x512xf32>
    %cst_5 = arith.constant 2.000000e-01 : f32
    %6 = vector.broadcast %cst_5 : f32 to vector<8x512xf32>
    %7 = arith.mulf %6, %5 : vector<8x512xf32>
    %8 = arith.maximumf %5, %7 : vector<8x512xf32>
    %9 = arith.mulf %8, %8 : vector<8x512xf32>
    %10 = arith.truncf %9 : vector<8x512xf32> to vector<8x512xbf16>
    %c0_6 = arith.constant 0 : index
    %c0_7 = arith.constant 0 : index
    %11 = vector.load %arg6[%c0_6, %c0_7] : memref<512x512xbf16, #tpu.memory_space<vmem>>, vector<512x512xbf16>
    %cst_8 = arith.constant dense<0.000000e+00> : vector<8x512xf32>
    %12 = tpu.matmul %10, %11, %cst_8 {dimension_numbers = #tpu.dot_dimension_numbers<[1], [0], [0], [1], [0, 0, 1, 1], [], []>} : vector<8x512xbf16>, vector<512x512xbf16>, vector<8x512xf32> -> vector<8x512xf32>
    %cst_9 = arith.constant 9.99999993E-9 : f32
    %13 = vector.broadcast %cst_9 : f32 to vector<8x512xf32>
    %14 = arith.addf %12, %13 : vector<8x512xf32>
    %15 = math.rsqrt %14 : vector<8x512xf32>
    %16 = arith.mulf %8, %15 : vector<8x512xf32>
    %17 = arith.truncf %16 : vector<8x512xf32> to vector<8x512xbf16>
    %c0_10 = arith.constant 0 : index
    %c0_11 = arith.constant 0 : index
    %18 = vector.load %arg4[%c0_10, %c0_11] : memref<512x512xbf16, #tpu.memory_space<vmem>>, vector<512x512xbf16>
    %cst_12 = arith.constant dense<0.000000e+00> : vector<8x512xf32>
    %19 = tpu.matmul %17, %18, %cst_12 {dimension_numbers = #tpu.dot_dimension_numbers<[1], [0], [0], [1], [0, 0, 1, 1], [], []>} : vector<8x512xbf16>, vector<512x512xbf16>, vector<8x512xf32> -> vector<8x512xf32>
    %c0_13 = arith.constant 0 : index
    %c0_14 = arith.constant 0 : index
    %20 = vector.load %arg5[%c0_13, %c0_14] : memref<1x512xf32, #tpu.memory_space<vmem>>, vector<1x512xf32>
    %21 = vector.broadcast %20 : vector<1x512xf32> to vector<8x512xf32>
    %22 = arith.addf %19, %21 : vector<8x512xf32>
    %cst_15 = arith.constant 2.000000e-01 : f32
    %23 = vector.broadcast %cst_15 : f32 to vector<8x512xf32>
    %24 = arith.mulf %23, %22 : vector<8x512xf32>
    %25 = arith.maximumf %22, %24 : vector<8x512xf32>
    %26 = arith.mulf %25, %25 : vector<8x512xf32>
    %27 = arith.truncf %26 : vector<8x512xf32> to vector<8x512xbf16>
    %c0_16 = arith.constant 0 : index
    %c0_17 = arith.constant 0 : index
    %28 = vector.load %arg6[%c0_16, %c0_17] : memref<512x512xbf16, #tpu.memory_space<vmem>>, vector<512x512xbf16>
    %cst_18 = arith.constant dense<0.000000e+00> : vector<8x512xf32>
    %29 = tpu.matmul %27, %28, %cst_18 {dimension_numbers = #tpu.dot_dimension_numbers<[1], [0], [0], [1], [0, 0, 1, 1], [], []>} : vector<8x512xbf16>, vector<512x512xbf16>, vector<8x512xf32> -> vector<8x512xf32>
    %cst_19 = arith.constant 9.99999993E-9 : f32
    %30 = vector.broadcast %cst_19 : f32 to vector<8x512xf32>
    %31 = arith.addf %29, %30 : vector<8x512xf32>
    %32 = math.rsqrt %31 : vector<8x512xf32>
    %33 = arith.mulf %25, %32 : vector<8x512xf32>
    %c0_20 = arith.constant 0 : index
    %c0_21 = arith.constant 0 : index
    %34 = vector.load %arg7[%c0_20, %c0_21] : memref<8x512xf32, #tpu.memory_space<vmem>>, vector<8x512xf32>
    tpu.vector_store %arg7[%c0_20, %c0_21], %33 {strides = array<i32>} : memref<8x512xf32, #tpu.memory_space<vmem>>, vector<8x512xf32>,
    return
  }
  func.func @transform_0(%arg0: i32) -> (i32, i32) {
    %c0_i32 = arith.constant 0 : i32
    %c0_i32_0 = arith.constant 0 : i32
    return %arg0, %c0_i32 : i32, i32
  }
  func.func @transform_1(%arg0: i32) -> (i32, i32) {
    %c0_i32 = arith.constant 0 : i32
    %c0_i32_0 = arith.constant 0 : i32
    %c0_i32_1 = arith.constant 0 : i32
    return %c0_i32, %c0_i32_0 : i32, i32
  }
  func.func @transform_2(%arg0: i32) -> (i32, i32) {
    %c0_i32 = arith.constant 0 : i32
    %c0_i32_0 = arith.constant 0 : i32
    %c0_i32_1 = arith.constant 0 : i32
    return %c0_i32, %c0_i32_0 : i32, i32
  }
  func.func @transform_3(%arg0: i32) -> (i32, i32) {
    %c0_i32 = arith.constant 0 : i32
    %c0_i32_0 = arith.constant 0 : i32
    %c0_i32_1 = arith.constant 0 : i32
    return %c0_i32, %c0_i32_0 : i32, i32
  }
  func.func @transform_4(%arg0: i32) -> (i32, i32) {
    %c0_i32 = arith.constant 0 : i32
    %c0_i32_0 = arith.constant 0 : i32
    %c0_i32_1 = arith.constant 0 : i32
    return %c0_i32, %c0_i32_0 : i32, i32
  }
  func.func @transform_5(%arg0: i32) -> (i32, i32) {
    %c0_i32 = arith.constant 0 : i32
    %c0_i32_0 = arith.constant 0 : i32
    %c0_i32_1 = arith.constant 0 : i32
    return %c0_i32, %c0_i32_0 : i32, i32
  }
  func.func @transform_6(%arg0: i32) -> (i32, i32) {
    %c0_i32 = arith.constant 0 : i32
    %c0_i32_0 = arith.constant 0 : i32
    return %arg0, %c0_i32 : i32, i32
  }
}

</mosaic_0001>

<bundles_post_ra>
// kernel: tpu_custom_call.1
= control target key start
LH: loop header
LB: loop body
LE: loop exit
PB: predicated region body
PF: predicated region fallthrough
CT: control target
= control target key end

     0   :  { %11 = vsyncpa [#allocation3], 0  ;;  %s3571_s0 = inlined_call_operand.hbm [shape: f32[8,32], index: 0, kind: input, shape index: {}]   ;;  %s3572_s1 = inlined_call_operand.hbm [shape: f32[32,512], index: 1, kind: input, shape index: {}]   ;;  %s3573_s2 = inlined_call_operand.hbm [shape: f32[1,512], index: 2, kind: input, shape index: {}]   ;;  %s3574_s3 = inlined_call_operand.hbm [shape: bf16[512,512], index: 3, kind: input, shape index: {}]   ;;  %s3575_s4 = inlined_call_operand.vmem [shape: f32[1,512], index: 4, kind: input, shape index: {}]   ;;  %s3576_s5 = inlined_call_operand.hbm [shape: bf16[512,512], index: 5, kind: input, shape index: {}]   ;;  %s3577_s6 = inlined_call_operand.hbm [shape: f32[8,512], index: 6, kind: output, shape index: {}]  }
   0x1   :  { %12 = vsyncpa [#allocation6], 0 }
   0x2   :  { %13 = vsyncpa [#allocation9], 0 }
   0x3   :  { %14 = vsyncpa [#allocation4], 0  ;;  %s3288_s21 = smov [#allocation5]  }
   0x4   :  { %s30_s22 = sshll.u32 %s3288_s21, 4  ;;  %s31_s22 = int_to_ptr.vmem [resolvable:$true] %s30_s22 }
   0x5   :  { %s3168_s23 = scalar_lea.vmem %s31_s22, 2048  ;;  %p3173_p1 = scmp.lt.s32.totalorder %s31_s22, %s31_s22 }
   0x6   :  { %p3169_p0 = scmp.ne.s32.totalorder %s31_s22, %s3168_s23  ;;  %p3174_p2 = scmp.lt.s32.totalorder %s3168_s23, %s3168_s23 }
   0x8   :  { %p3175_p3 = por %p3174_p2, %p3173_p1 }
   0xa   :  { %p3176_p4 = pnand %p3175_p3, %p3169_p0 }
   0xc   :  { %3179 = shalt.err (!%p3176_p4)
}
   0xd   :  { %s3289_s24 = smov 512   ;;  %s3290_s25 = smov 32  }
   0xe   :  { %36 = dma.hbm_to_vmem [thread:$0]  %s3572_s1, 2048, %s31_s22, [#allocation6], %s3289_s24, %s3289_s24, %s3290_s25  }
   0xf   :  { %s3291_s28 = smov [#allocation8]  }
  0x10   :  { %s52_s29 = sshll.u32 %s3291_s28, 4  ;;  %s53_s29 = int_to_ptr.vmem [resolvable:$true] %s52_s29 }
  0x11   :  { %s3188_s30 = scalar_lea.vmem %s53_s29, 16384  ;;  %p3193_p6 = scmp.lt.s32.totalorder %s53_s29, %s53_s29 }
  0x12   :  { %p3189_p5 = scmp.ne.s32.totalorder %s53_s29, %s3188_s30  ;;  %p3194_p7 = scmp.lt.s32.totalorder %s3188_s30, %s3188_s30 }
  0x14   :  { %p3195_p8 = por %p3194_p7, %p3193_p6 }
  0x16   :  { %p3196_p9 = pnand %p3195_p8, %p3189_p5 }
  0x18   :  { %3199 = shalt.err (!%p3196_p9)
}
  0x19   :  { %s3292_s7 = smov 256   ;;  %s3293_s8 = smov 16  }
  0x1a   :  { %58 = dma.hbm_to_vmem [thread:$0]  %s3574_s3, 16384, %s53_s29, [#allocation9], %s3292_s7, %s3292_s7, %s3293_s8  }
  0x1b   :  { %s3294_s1 = smov [#allocation2]   ;;  %s3295_s12 = smov [#allocation7]  }
  0x1c   :  { %s21_s11 = sshll.u32 %s3294_s1, 4  ;;  %s43_s13 = sshll.u32 %s3295_s12, 4  ;;  %s22_s11 = int_to_ptr.vmem [resolvable:$true] %s21_s11  ;;  %s44_s13 = int_to_ptr.vmem [resolvable:$true] %s43_s13 }
  0x1d   :  { %s3208_s14 = scalar_lea.vmem %s22_s11, 128  ;;  %p3213_p11 = scmp.lt.s32.totalorder %s22_s11, %s22_s11 }
  0x1e   :  { %p3209_p10 = scmp.ne.s32.totalorder %s22_s11, %s3208_s14  ;;  %p3214_p12 = scmp.lt.s32.totalorder %s3208_s14, %s3208_s14 }
  0x20   :  { %p3215_p13 = por %p3214_p12, %p3213_p11 }
  0x22   :  { %p3216_p0 = pnand %p3215_p13, %p3209_p10 }
  0x24   :  { %3219 = shalt.err (!%p3216_p0)
}
  0x25   :  { %24 = dma.hbm_to_vmem [thread:$0]  %s3571_s0, 128, %s22_s11, [#allocation3]  }
  0x26   :  { %s3228_s17 = scalar_lea.vmem %s44_s13, 64  ;;  %p3233_p2 = scmp.lt.s32.totalorder %s44_s13, %s44_s13 }
  0x27   :  { %p3229_p1 = scmp.ne.s32.totalorder %s44_s13, %s3228_s17  ;;  %p3234_p3 = scmp.lt.s32.totalorder %s3228_s17, %s3228_s17 }
  0x29   :  { %p3235_p4 = por %p3234_p3, %p3233_p2 }
  0x2b   :  { %p3236_p5 = pnand %p3235_p4, %p3229_p1 }
  0x2d   :  { %3239 = shalt.err (!%p3236_p5)
}
  0x2e   :  { %46 = dma.hbm_to_vmem [thread:$0]  %s3573_s2, 64, %s44_s13, [#allocation6]  }
  0x2f   :  { %s3296_s19 = smov [#allocation10]  }
  0x30   :  { %s66_s20 = sshll.u32 %s3296_s19, 4  ;;  %s67_s20 = int_to_ptr.vmem [resolvable:$true] %s66_s20 }
  0x31   :  { %s3248_s21 = scalar_lea.vmem %s67_s20, 16384  ;;  %p3253_p7 = scmp.lt.s32.totalorder %s67_s20, %s67_s20 }
  0x32   :  { %p3249_p6 = scmp.ne.s32.totalorder %s67_s20, %s3248_s21  ;;  %p3254_p8 = scmp.lt.s32.totalorder %s3248_s21, %s3248_s21 }
  0x34   :  { %p3255_p9 = por %p3254_p8, %p3253_p7 }
  0x36   :  { %p3256_p10 = pnand %p3255_p9, %p3249_p6 }
  0x38   :  { %3259 = shalt.err (!%p3256_p10)
}
  0x39   :  { %72 = dma.hbm_to_vmem [thread:$0]  %s3576_s5, 16384, %s67_s20, [#allocation9], %s3292_s7, %s3292_s7, %s3293_s8  }
  0x3a   :  { %3280 = dma.done.wait [#allocation3], 128  }
  0x3b   :  { %3281 = vsyncadd [#allocation3], 4294967168 }
  0x3c   :  { %3282 = dma.done.wait [#allocation6], 2112  }
  0x3d   :  { %3283 = vsyncadd [#allocation6], 4294965184 }
  0x3e   :  { %3284 = dma.done.wait [#allocation9], 32768  }
  0x3f   :  { %3285 = vsyncadd [#allocation9], 4294934528  ;;  %v3297_v0 = vmov 0.0   ;;  %v102_v1 = vld [vmem:[#allocation5 + $0x68] sm:$0xff]  ;;  %v104_v2 = vld [vmem:[#allocation5 + $0x78] sm:$0xff]  ;;  %vm127_vm0 = vcmask 261120  }
  0x40   :  { %195 = vmatprep.mubr.f32.mxu0 %v3297_v0  ;;  %266 = vmatprep.mubr.f32.mxu1 %v3297_v0  ;;  %v101_v3 = vld [vmem:[#allocation5 + $0x60] sm:$0xff]  ;;  %v103_v4 = vld [vmem:[#allocation5 + $0x70] sm:$0xff]  ;;  %v98_v5 = vld [vmem:[#allocation5 + $0x48] sm:$0xff] }
  0x41   :  { %155 = vmatprep.subr.mxu0 %v102_v1  ;;  %226 = vmatprep.subr.mxu1 %v104_v2  ;;  %v100_v6 = vld [vmem:[#allocation5 + $0x58] sm:$0xff]  ;;  %v97_v7 = vld [vmem:[#allocation5 + $0x40] sm:$0xff]  ;;  %v99_v8 = vld [vmem:[#allocation5 + $0x50] sm:$0xff] }
  0x42   :  { %156 = vmatpush1.msra.mxu0 %v101_v3  ;;  %227 = vmatpush1.msra.mxu1 %v103_v4  ;;  %v94_v9 = vld [vmem:[#allocation5 + $0x28] sm:$0xff]  ;;  %v96_v10 = vld [vmem:[#allocation5 + $0x38] sm:$0xff]  ;;  %v93_v11 = vld [vmem:[#allocation5 + $0x20] sm:$0xff] }
  0x43   :  { %157 = vmatprep.subr.mxu0 %v98_v5  ;;  %228 = vmatprep.subr.mxu1 %v100_v6  ;;  %v95_v12 = vld [vmem:[#allocation5 + $0x30] sm:$0xff]  ;;  %v90_v13 = vld [vmem:[#allocation5 + $0x8] sm:$0xff]  ;;  %v92_v14 = vld [vmem:[#allocation5 + $0x18] sm:$0xff] }
  0x44   :  { %158 = vmatpush1.msra.mxu0 %v97_v7  ;;  %229 = vmatpush1.msra.mxu1 %v99_v8  ;;  %v89_v15 = vld [vmem:[#allocation5] sm:$0xff]  ;;  %v91_v16 = vld [vmem:[#allocation5 + $0x10] sm:$0xff]  ;;  %v88_v17 = vld [vmem:[#allocation2] sm:$0xff] }
  0x45   :  { %159 = vmatprep.subr.mxu0 %v94_v9  ;;  %230 = vmatprep.subr.mxu1 %v96_v10  ;;  %v2665_v18 = vld [vmem:[#allocation10 + $0xe0] ss:$16 sps:$4 sm:$0xff]   ;;  %v2667_v19 = vld [vmem:[#allocation10 + $0xe4] ss:$16 sps:$4 sm:$0xff]  }
  0x46   :  { %160 = vmatpush1.msra.mxu0 %v93_v11  ;;  %231 = vmatpush1.msra.mxu1 %v95_v12  ;;  %v2668_v20 = vld [vmem:[#allocation10 + $0x2e0] ss:$16 sps:$4 sm:$0xff]   ;;  %v2670_v21 = vld [vmem:[#allocation10 + $0x2e4] ss:$16 sps:$4 sm:$0xff]  }
  0x47   :  { %161 = vmatprep.subr.mxu0 %v90_v13  ;;  %232 = vmatprep.subr.mxu1 %v92_v14  ;;  %v2673_v22 = vld [vmem:[#allocation10 + $0xc4] ss:$16 sps:$4 sm:$0xff]   ;;  %v2671_v23 = vld [vmem:[#allocation10 + $0xc0] ss:$16 sps:$4 sm:$0xff]  }
  0x48   :  { %162 = vmatpush1.msra.mxu0 %v89_v15  ;;  %233 = vmatpush1.msra.mxu1 %v91_v16  ;;  %v2676_v24 = vld [vmem:[#allocation10 + $0x2c4] ss:$16 sps:$4 sm:$0xff]   ;;  %v2674_v25 = vld [vmem:[#allocation10 + $0x2c0] ss:$16 sps:$4 sm:$0xff]  }
  0x49   :  { %2396 = vmatmul.mubr.msk.f32.vlgmr.msra.gmra.mxu0 %vm127_vm0, %v88_v17  ;;  %2397 = vmatmul.mubr.msk.f32.vlgmr.msra.gmra.mxu1 %vm127_vm0, %v88_v17  ;;  %v2679_v26 = vld [vmem:[#allocation10 + $0xa4] ss:$16 sps:$4 sm:$0xff]   ;;  %v2677_v28 = vld [vmem:[#allocation10 + $0xa0] ss:$16 sps:$4 sm:$0xff]  }
  0x4a   :  { %1057 = vmatprep.subr.bf16.mxu0 %v2667_v19  ;;  %1098 = vmatprep.subr.bf16.mxu1 %v2670_v21  ;;  %v2682_v27 = vld [vmem:[#allocation10 + $0x2a4] ss:$16 sps:$4 sm:$0xff]   ;;  %v2680_v29 = vld [vmem:[#allocation10 + $0x2a0] ss:$16 sps:$4 sm:$0xff]   ;;  %v2766_v19 = vld [vmem:[#allocation10 + $0x2ec] ss:$16 sps:$4 sm:$0xff]  }
  0x4b   :  { %1058 = vmatpush1.bf16.msra.mxu0 %v2665_v18  ;;  %1099 = vmatpush1.bf16.msra.mxu1 %v2668_v20  ;;  %v2685_v30 = vld [vmem:[#allocation10 + $0x84] ss:$16 sps:$4 sm:$0xff]   ;;  %v2683_v32 = vld [vmem:[#allocation10 + $0x80] ss:$16 sps:$4 sm:$0xff]   ;;  %v2763_v18 = vld [vmem:[#allocation10 + $0xec] ss:$16 sps:$4 sm:$0xff]   ;;  %v107_v20 = vlaneseq }
  0x4c   :  { %1059 = vmatprep.subr.bf16.mxu0 %v2673_v22  ;;  %1100 = vmatprep.subr.bf16.mxu1 %v2676_v24  ;;  %v2688_v31 = vld [vmem:[#allocation10 + $0x284] ss:$16 sps:$4 sm:$0xff]   ;;  %v2686_v33 = vld [vmem:[#allocation10 + $0x280] ss:$16 sps:$4 sm:$0xff]   ;;  %v105_v24 = vld [vmem:[#allocation7] sm:$0xf] }
  0x4d   :  { %v2691_v34 = vld [vmem:[#allocation10 + $0x64] ss:$16 sps:$4 sm:$0xff]   ;;  %v2689_v36 = vld [vmem:[#allocation10 + $0x60] ss:$16 sps:$4 sm:$0xff]   ;;  %v3355_v21 = vshrl.u32 %v107_v20, 7 }
  0x4e   :  { %v2694_v35 = vld [vmem:[#allocation10 + $0x264] ss:$16 sps:$4 sm:$0xff]   ;;  %v2692_v37 = vld [vmem:[#allocation10 + $0x260] ss:$16 sps:$4 sm:$0xff]   ;;  %v2806_v20 = vld [vmem:[#allocation10 + $0x208] ss:$16 sps:$4 sm:$0xff]  }
  0x4f   :  { %1060 = vmatpush1.bf16.msra.mxu0 %v2671_v23  ;;  %1101 = vmatpush1.bf16.msra.mxu1 %v2674_v25  ;;  %v2697_v38 = vld [vmem:[#allocation10 + $0x44] ss:$16 sps:$4 sm:$0xff]   ;;  %v2695_v40 = vld [vmem:[#allocation10 + $0x40] ss:$16 sps:$4 sm:$0xff]   ;;  %v109_v22 = vsub.s32 0, %v3355_v21  ;;  %v117_v23 = vsub.s32 2, %v3355_v21 }
  0x50   :  { %1061 = vmatprep.subr.bf16.mxu0 %v2679_v26  ;;  %1102 = vmatprep.subr.bf16.mxu1 %v2682_v27  ;;  %v2700_v39 = vld [vmem:[#allocation10 + $0x244] ss:$16 sps:$4 sm:$0xff]   ;;  %v2698_v41 = vld [vmem:[#allocation10 + $0x240] ss:$16 sps:$4 sm:$0xff]   ;;  %v113_v25 = vsub.s32 1, %v3355_v21  ;;  %v121_v26 = vsub.s32 3, %v3355_v21 }
  0x51   :  { %v2703_v42 = vld [vmem:[#allocation10 + $0x24] ss:$16 sps:$4 sm:$0xff]   ;;  %v2701_v44 = vld [vmem:[#allocation10 + $0x20] ss:$16 sps:$4 sm:$0xff]   ;;  %v110_v27 = vrot.slane %v105_v24, %v109_v22 }
  0x52   :  { %v2706_v43 = vld [vmem:[#allocation10 + $0x224] ss:$16 sps:$4 sm:$0xff]   ;;  %v2704_v45 = vld [vmem:[#allocation10 + $0x220] ss:$16 sps:$4 sm:$0xff]  }
  0x53   :  { %1062 = vmatpush1.bf16.msra.mxu0 %v2677_v28  ;;  %1103 = vmatpush1.bf16.msra.mxu1 %v2680_v29  ;;  %v2709_v46 = vld [vmem:[#allocation10 + $0x4] ss:$16 sps:$4 sm:$0xff]   ;;  %v2707_v48 = vld [vmem:[#allocation10] ss:$16 sps:$4 sm:$0xff]   ;;  %v118_v28 = vrot.slane %v105_v24, %v117_v23  ;;  %v114_v29 = vrot.slane %v105_v24, %v113_v25 }
  0x54   :  { %1063 = vmatprep.subr.bf16.mxu0 %v2685_v30  ;;  %1104 = vmatprep.subr.bf16.mxu1 %v2688_v31  ;;  %v2712_v47 = vld [vmem:[#allocation10 + $0x204] ss:$16 sps:$4 sm:$0xff]   ;;  %v2710_v49 = vld [vmem:[#allocation10 + $0x200] ss:$16 sps:$4 sm:$0xff]   ;;  %v122_v30 = vrot.slane %v105_v24, %v121_v26  ;;  %v3417_v24 = vld [vmem:[#allocation10 + $0x1ec] ss:$16 sps:$4 sm:$0xff]  }
  0x55   :  { %v2715_v50 = vld [vmem:[#allocation10 + $0x1e4] ss:$16 sps:$4 sm:$0xff]   ;;  %v2713_v52 = vld [vmem:[#allocation10 + $0x1e0] ss:$16 sps:$4 sm:$0xff]  }
  0x56   :  { %v2718_v51 = vld [vmem:[#allocation10 + $0x3e4] ss:$16 sps:$4 sm:$0xff]   ;;  %v2716_v53 = vld [vmem:[#allocation10 + $0x3e0] ss:$16 sps:$4 sm:$0xff]  }
  0x57   :  { %1064 = vmatpush1.bf16.msra.mxu0 %v2683_v32  ;;  %1105 = vmatpush1.bf16.msra.mxu1 %v2686_v33  ;;  %v2721_v54 = vld [vmem:[#allocation10 + $0x1c4] ss:$16 sps:$4 sm:$0xff]   ;;  %v2719_v56 = vld [vmem:[#allocation10 + $0x1c0] ss:$16 sps:$4 sm:$0xff]  }
  0x58   :  { %1065 = vmatprep.subr.bf16.mxu0 %v2691_v34  ;;  %1106 = vmatprep.subr.bf16.mxu1 %v2694_v35  ;;  %v2724_v55 = vld [vmem:[#allocation10 + $0x3c4] ss:$16 sps:$4 sm:$0xff]   ;;  %v2722_v57 = vld [vmem:[#allocation10 + $0x3c0] ss:$16 sps:$4 sm:$0xff]  }
  0x59   :  { %v2727_v58 = vld [vmem:[#allocation10 + $0x1a4] ss:$16 sps:$4 sm:$0xff]   ;;  %v2725_v60 = vld [vmem:[#allocation10 + $0x1a0] ss:$16 sps:$4 sm:$0xff]  }
  0x5a   :  { %v2730_v59 = vld [vmem:[#allocation10 + $0x3a4] ss:$16 sps:$4 sm:$0xff]   ;;  %v2728_v61 = vld [vmem:[#allocation10 + $0x3a0] ss:$16 sps:$4 sm:$0xff]  }
  0x5b   :  { %1066 = vmatpush1.bf16.msra.mxu0 %v2689_v36  ;;  %1107 = vmatpush1.bf16.msra.mxu1 %v2692_v37  ;;  %v2733_v62 = vld [vmem:[#allocation10 + $0x184] ss:$16 sps:$4 sm:$0xff]   ;;  %v2731_v0 = vld [vmem:[#allocation10 + $0x180] ss:$16 sps:$4 sm:$0xff]  }
  0x5c   :  { %1067 = vmatprep.subr.bf16.mxu0 %v2697_v38  ;;  %1108 = vmatprep.subr.bf16.mxu1 %v2700_v39  ;;  %v2736_v63 = vld [vmem:[#allocation10 + $0x384] ss:$16 sps:$4 sm:$0xff]   ;;  %v2734_v1 = vld [vmem:[#allocation10 + $0x380] ss:$16 sps:$4 sm:$0xff]  }
  0x5d   :  { %v2739_v2 = vld [vmem:[#allocation10 + $0x164] ss:$16 sps:$4 sm:$0xff]   ;;  %v2737_v4 = vld [vmem:[#allocation10 + $0x160] ss:$16 sps:$4 sm:$0xff]  }
  0x5e   :  { %v2742_v3 = vld [vmem:[#allocation10 + $0x364] ss:$16 sps:$4 sm:$0xff]   ;;  %v2740_v5 = vld [vmem:[#allocation10 + $0x360] ss:$16 sps:$4 sm:$0xff]  }
  0x5f   :  { %1068 = vmatpush1.bf16.msra.mxu0 %v2695_v40  ;;  %1109 = vmatpush1.bf16.msra.mxu1 %v2698_v41  ;;  %v2745_v6 = vld [vmem:[#allocation10 + $0x144] ss:$16 sps:$4 sm:$0xff]   ;;  %v2743_v8 = vld [vmem:[#allocation10 + $0x140] ss:$16 sps:$4 sm:$0xff]  }
  0x60   :  { %1069 = vmatprep.subr.bf16.mxu0 %v2703_v42  ;;  %1110 = vmatprep.subr.bf16.mxu1 %v2706_v43  ;;  %v2748_v7 = vld [vmem:[#allocation10 + $0x344] ss:$16 sps:$4 sm:$0xff]   ;;  %v2746_v9 = vld [vmem:[#allocation10 + $0x340] ss:$16 sps:$4 sm:$0xff]  }
  0x61   :  { %v2751_v10 = vld [vmem:[#allocation10 + $0x124] ss:$16 sps:$4 sm:$0xff]   ;;  %v2749_v12 = vld [vmem:[#allocation10 + $0x120] ss:$16 sps:$4 sm:$0xff]  }
  0x62   :  { %v2754_v11 = vld [vmem:[#allocation10 + $0x324] ss:$16 sps:$4 sm:$0xff]   ;;  %v2752_v13 = vld [vmem:[#allocation10 + $0x320] ss:$16 sps:$4 sm:$0xff]  }
  0x63   :  { %1070 = vmatpush1.bf16.msra.mxu0 %v2701_v44  ;;  %1111 = vmatpush1.bf16.msra.mxu1 %v2704_v45  ;;  %v2757_v14 = vld [vmem:[#allocation10 + $0x104] ss:$16 sps:$4 sm:$0xff]   ;;  %v2755_v16 = vld [vmem:[#allocation10 + $0x100] ss:$16 sps:$4 sm:$0xff]  }
  0x64   :  { %1071 = vmatprep.subr.bf16.mxu0 %v2709_v46  ;;  %1112 = vmatprep.subr.bf16.mxu1 %v2712_v47  ;;  %v2760_v15 = vld [vmem:[#allocation10 + $0x304] ss:$16 sps:$4 sm:$0xff]   ;;  %v2758_v17 = vld [vmem:[#allocation10 + $0x300] ss:$16 sps:$4 sm:$0xff]  }
  0x67   :  { %1072 = vmatpush1.bf16.msra.mxu0 %v2707_v48  ;;  %1113 = vmatpush1.bf16.msra.mxu1 %v2710_v49 }
  0x68   :  { %1073 = vmatprep.subr.bf16.mxu0 %v2715_v50  ;;  %1114 = vmatprep.subr.bf16.mxu1 %v2718_v51 }
  0x6b   :  { %1074 = vmatpush2.bf16.msra.mxu0 %v2713_v52  ;;  %1115 = vmatpush2.bf16.msra.mxu1 %v2716_v53  ;;  %v2761_v53 = vld [vmem:[#allocation10 + $0xe8] ss:$16 sps:$4 sm:$0xff]  }
  0x6c   :  { %1075 = vmatprep.subr.bf16.mxu0 %v2721_v54  ;;  %1116 = vmatprep.subr.bf16.mxu1 %v2724_v55  ;;  %v2764_v54 = vld [vmem:[#allocation10 + $0x2e8] ss:$16 sps:$4 sm:$0xff]  }
  0x6f   :  { %1076 = vmatpush2.bf16.msra.mxu0 %v2719_v56  ;;  %1117 = vmatpush2.bf16.msra.mxu1 %v2722_v57  ;;  %v2769_v57 = vld [vmem:[#allocation10 + $0xcc] ss:$16 sps:$4 sm:$0xff]  }
  0x70   :  { %1077 = vmatprep.subr.bf16.mxu0 %v2727_v58  ;;  %1118 = vmatprep.subr.bf16.mxu1 %v2730_v59  ;;  %v2772_v58 = vld [vmem:[#allocation10 + $0x2cc] ss:$16 sps:$4 sm:$0xff]   ;;  %v2767_v59 = vld [vmem:[#allocation10 + $0xc8] ss:$16 sps:$4 sm:$0xff]  }
  0x73   :  { %1078 = vmatpush2.bf16.msra.mxu0 %v2725_v60  ;;  %1119 = vmatpush2.bf16.msra.mxu1 %v2728_v61  ;;  %v2770_v60 = vld [vmem:[#allocation10 + $0x2c8] ss:$16 sps:$4 sm:$0xff]   ;;  %v2775_v61 = vld [vmem:[#allocation10 + $0xac] ss:$16 sps:$4 sm:$0xff]  }
  0x74   :  { %1079 = vmatprep.subr.bf16.mxu0 %v2733_v62  ;;  %1120 = vmatprep.subr.bf16.mxu1 %v2736_v63  ;;  %v2778_v62 = vld [vmem:[#allocation10 + $0x2ac] ss:$16 sps:$4 sm:$0xff]   ;;  %v2773_v63 = vld [vmem:[#allocation10 + $0xa8] ss:$16 sps:$4 sm:$0xff]  }
  0x77   :  { %1080 = vmatpush2.bf16.msra.mxu0 %v2731_v0  ;;  %1121 = vmatpush2.bf16.msra.mxu1 %v2734_v1  ;;  %v2776_v0 = vld [vmem:[#allocation10 + $0x2a8] ss:$16 sps:$4 sm:$0xff]   ;;  %v2781_v1 = vld [vmem:[#allocation10 + $0x8c] ss:$16 sps:$4 sm:$0xff]  }
  0x78   :  { %1081 = vmatprep.subr.bf16.mxu0 %v2739_v2  ;;  %1122 = vmatprep.subr.bf16.mxu1 %v2742_v3  ;;  %v2784_v2 = vld [vmem:[#allocation10 + $0x28c] ss:$16 sps:$4 sm:$0xff]   ;;  %v3391_v3 = vld [vmem:[#allocation10 + $0x88] ss:$16 sps:$4 sm:$0xff]  }
  0x7b   :  { %1082 = vmatpush2.bf16.msra.mxu0 %v2737_v4  ;;  %1123 = vmatpush2.bf16.msra.mxu1 %v2740_v5  ;;  %v2782_v4 = vld [vmem:[#allocation10 + $0x288] ss:$16 sps:$4 sm:$0xff]   ;;  %v3393_v5 = vld [vmem:[#allocation10 + $0x6c] ss:$16 sps:$4 sm:$0xff]  }
  0x7c   :  { %1083 = vmatprep.subr.bf16.mxu0 %v2745_v6  ;;  %1124 = vmatprep.subr.bf16.mxu1 %v2748_v7  ;;  %v2790_v6 = vld [vmem:[#allocation10 + $0x26c] ss:$16 sps:$4 sm:$0xff]   ;;  %v3396_v7 = vld [vmem:[#allocation10 + $0x68] ss:$16 sps:$4 sm:$0xff]  }
  0x7f   :  { %1084 = vmatpush2.bf16.msra.mxu0 %v2743_v8  ;;  %1125 = vmatpush2.bf16.msra.mxu1 %v2746_v9  ;;  %v2788_v8 = vld [vmem:[#allocation10 + $0x268] ss:$16 sps:$4 sm:$0xff]   ;;  %v3399_v9 = vld [vmem:[#allocation10 + $0x4c] ss:$16 sps:$4 sm:$0xff]  }
  0x80   :  { %1085 = vmatprep.subr.bf16.mxu0 %v2751_v10  ;;  %1126 = vmatprep.subr.bf16.mxu1 %v2754_v11  ;;  %v2796_v10 = vld [vmem:[#allocation10 + $0x24c] ss:$16 sps:$4 sm:$0xff]   ;;  %v3402_v11 = vld [vmem:[#allocation10 + $0x48] ss:$16 sps:$4 sm:$0xff]  }
  0x83   :  { %1086 = vmatpush2.bf16.msra.mxu0 %v2749_v12  ;;  %1127 = vmatpush2.bf16.msra.mxu1 %v2752_v13  ;;  %v2794_v12 = vld [vmem:[#allocation10 + $0x248] ss:$16 sps:$4 sm:$0xff]   ;;  %v3405_v13 = vld [vmem:[#allocation10 + $0x2c] ss:$16 sps:$4 sm:$0xff]  }
  0x84   :  { %1087 = vmatprep.subr.bf16.mxu0 %v2757_v14  ;;  %1128 = vmatprep.subr.bf16.mxu1 %v2760_v15  ;;  %v2802_v14 = vld [vmem:[#allocation10 + $0x22c] ss:$16 sps:$4 sm:$0xff]   ;;  %v3408_v15 = vld [vmem:[#allocation10 + $0x28] ss:$16 sps:$4 sm:$0xff]  }
  0x87   :  { %1088 = vmatpush2.bf16.msra.mxu0 %v2755_v16  ;;  %1129 = vmatpush2.bf16.msra.mxu1 %v2758_v17  ;;  %v2800_v16 = vld [vmem:[#allocation10 + $0x228] ss:$16 sps:$4 sm:$0xff]   ;;  %v3411_v17 = vld [vmem:[#allocation10 + $0xc] ss:$16 sps:$4 sm:$0xff]  }
  0x88   :  { %1139 = vmatprep.subr.bf16.mxu0 %v2763_v18  ;;  %1180 = vmatprep.subr.bf16.mxu1 %v2766_v19  ;;  %v2808_v18 = vld [vmem:[#allocation10 + $0x20c] ss:$16 sps:$4 sm:$0xff]   ;;  %v3414_v19 = vld [vmem:[#allocation10 + $0x8] ss:$16 sps:$4 sm:$0xff]  }
 0x109   :  { %v197_v31 = vpop.f32.mrf.mxu0  ;;  %v268_v32 = vpop.f32.mrf.mxu1 }
 0x10a   :  { %v198_v33 = vadd.f32 %v197_v31, %v110_v27  ;;  %v269_v34 = vadd.f32 %v268_v32, %v118_v28  ;;  %v2814_v27 = vld [vmem:[#allocation10 + $0x3ec] ss:$16 sps:$4 sm:$0xff]   ;;  %v3420_v28 = vld [vmem:[#allocation10 + $0x1e8] ss:$16 sps:$4 sm:$0xff]  }
 0x10b   :  { %v199_v35 = vpop.f32.mrf.mxu0  ;;  %v270_v36 = vpop.f32.mrf.mxu1  ;;  %v2820_v31 = vld [vmem:[#allocation10 + $0x3cc] ss:$16 sps:$4 sm:$0xff]   ;;  %v3426_v32 = vld [vmem:[#allocation10 + $0x1c8] ss:$16 sps:$4 sm:$0xff]  }
 0x10c   :  { %v273_v37 = vmul.f32 0.2, %v198_v33  ;;  %v275_v38 = vmul.f32 0.2, %v269_v34  ;;  %v200_v39 = vadd.f32 %v199_v35, %v114_v29  ;;  %v271_v40 = vadd.f32 %v270_v36, %v122_v30  ;;  %v2812_v29 = vld [vmem:[#allocation10 + $0x3e8] ss:$16 sps:$4 sm:$0xff]  }
 0x10d   :  { %v3423_v30 = vld [vmem:[#allocation10 + $0x1cc] ss:$16 sps:$4 sm:$0xff]   ;;  %v3432_v36 = vld [vmem:[#allocation10 + $0x1a8] ss:$16 sps:$4 sm:$0xff]  }
 0x10e   :  { %v3369_v41 = vmax.f32 %v198_v33, %v273_v37  ;;  %v3371_v42 = vmax.f32 %v269_v34, %v275_v38  ;;  %v274_v43 = vmul.f32 0.2, %v200_v39  ;;  %v276_v44 = vmul.f32 0.2, %v271_v40  ;;  %v2818_v33 = vld [vmem:[#allocation10 + $0x3c8] ss:$16 sps:$4 sm:$0xff]  }
 0x10f   :  { %v3429_v34 = vld [vmem:[#allocation10 + $0x1ac] ss:$16 sps:$4 sm:$0xff]   ;;  %v2824_v37 = vld [vmem:[#allocation10 + $0x3a8] ss:$16 sps:$4 sm:$0xff]  }
 0x110   :  { %v3373_v45 = vmax.f32 %v200_v39, %v274_v43  ;;  %v3375_v46 = vmax.f32 %v271_v40, %v276_v44  ;;  %v281_v47 = vmul.f32 %v3369_v41, %v3369_v41  ;;  %v283_v48 = vmul.f32 %v3371_v42, %v3371_v42  ;;  %v2826_v35 = vld [vmem:[#allocation10 + $0x3ac] ss:$16 sps:$4 sm:$0xff]   ;;  %v3438_v40 = vld [vmem:[#allocation10 + $0x188] ss:$16 sps:$4 sm:$0xff]  }
 0x111   :  { %v3435_v38 = vld [vmem:[#allocation10 + $0x18c] ss:$16 sps:$4 sm:$0xff]   ;;  %v2830_v43 = vld [vmem:[#allocation10 + $0x388] ss:$16 sps:$4 sm:$0xff]  }
 0x112   :  { %v282_v49 = vmul.f32 %v3373_v45, %v3373_v45  ;;  %v284_v50 = vmul.f32 %v3375_v46, %v3375_v46  ;;  %v3385_v55 = vpack.c.bf16 %v281_v47, %v281_v47  ;;  %v3387_v56 = vpack.c.bf16 %v283_v48, %v283_v48  ;;  %v2832_v39 = vld [vmem:[#allocation10 + $0x38c] ss:$16 sps:$4 sm:$0xff]   ;;  %v3446_v48 = vld [vmem:[#allocation10 + $0x168] ss:$16 sps:$4 sm:$0xff]  }
 0x113   :  { %v3441_v44 = vld [vmem:[#allocation10 + $0x16c] ss:$16 sps:$4 sm:$0xff]  }
 0x114   :  { %v286_v51 = vpack.c.bf16 %v282_v49, %v282_v49  ;;  %v288_v52 = vpack.c.bf16 %v284_v50, %v284_v50  ;;  %v3443_v47 = vld [vmem:[#allocation10 + $0x36c] ss:$16 sps:$4 sm:$0xff]   ;;  %v3448_v49 = vld [vmem:[#allocation10 + $0x368] ss:$16 sps:$4 sm:$0xff]  }
 0x115   :  { %v3452_v50 = vld [vmem:[#allocation10 + $0x14c] ss:$16 sps:$4 sm:$0xff]  }
 0x116   :  { %1089 = vmatprep.mubr.bf16.mxu0 %v286_v51  ;;  %1130 = vmatprep.mubr.bf16.mxu1 %v288_v52 }
 0x117   :  { %1090 = vmatmul.mubr.bf16.vlgmr.msra.gmra.mxu0 %v3385_v55  ;;  %1131 = vmatmul.mubr.bf16.vlgmr.msra.gmra.mxu1 %v3387_v56 }
 0x118   :  { %1140 = vmatpush1.bf16.msra.mxu0 %v2761_v53  ;;  %1181 = vmatpush1.bf16.msra.mxu1 %v2764_v54  ;;  %v3460_v53 = vld [vmem:[#allocation10 + $0x348] ss:$16 sps:$4 sm:$0xff]   ;;  %v3464_v54 = vld [vmem:[#allocation10 + $0x12c] ss:$16 sps:$4 sm:$0xff]  }
 0x119   :  { %1171 = vmatprep.mubr.bf16.mxu0 %v286_v51  ;;  %1212 = vmatprep.mubr.bf16.mxu1 %v288_v52  ;;  %v3454_v51 = vld [vmem:[#allocation10 + $0x34c] ss:$16 sps:$4 sm:$0xff]   ;;  %v3458_v52 = vld [vmem:[#allocation10 + $0x148] ss:$16 sps:$4 sm:$0xff]  }
 0x11a   :  { %1141 = vmatprep.subr.bf16.mxu0 %v2769_v57  ;;  %1182 = vmatprep.subr.bf16.mxu1 %v2772_v58  ;;  %v3466_v57 = vld [vmem:[#allocation10 + $0x32c] ss:$16 sps:$4 sm:$0xff]   ;;  %v3470_v58 = vld [vmem:[#allocation10 + $0x128] ss:$16 sps:$4 sm:$0xff]  }
 0x11c   :  { %1142 = vmatpush1.bf16.msra.mxu0 %v2767_v59  ;;  %1183 = vmatpush1.bf16.msra.mxu1 %v2770_v60  ;;  %v3472_v59 = vld [vmem:[#allocation10 + $0x328] ss:$16 sps:$4 sm:$0xff]   ;;  %v3476_v60 = vld [vmem:[#allocation10 + $0x10c] ss:$16 sps:$4 sm:$0xff]  }
 0x11d   :  { %1143 = vmatprep.subr.bf16.mxu0 %v2775_v61  ;;  %1184 = vmatprep.subr.bf16.mxu1 %v2778_v62  ;;  %v3478_v61 = vld [vmem:[#allocation10 + $0x30c] ss:$16 sps:$4 sm:$0xff]   ;;  %v3482_v62 = vld [vmem:[#allocation10 + $0x108] ss:$16 sps:$4 sm:$0xff]  }
 0x120   :  { %1144 = vmatpush1.bf16.msra.mxu0 %v2773_v63  ;;  %1185 = vmatpush1.bf16.msra.mxu1 %v2776_v0  ;;  %v3484_v63 = vld [vmem:[#allocation10 + $0x308] ss:$16 sps:$4 sm:$0xff]   ;;  %v2859_v0 = vld [vmem:[#allocation8 + $0xe4] ss:$16 sps:$4 sm:$0xff]  }
 0x121   :  { %1145 = vmatprep.subr.bf16.mxu0 %v2781_v1  ;;  %1186 = vmatprep.subr.bf16.mxu1 %v2784_v2  ;;  %v2857_v1 = vld [vmem:[#allocation8 + $0xe0] ss:$16 sps:$4 sm:$0xff]   ;;  %v2862_v2 = vld [vmem:[#allocation8 + $0xc4] ss:$16 sps:$4 sm:$0xff]  }
 0x124   :  { %1146 = vmatpush1.bf16.msra.mxu0 %v3391_v3  ;;  %1187 = vmatpush1.bf16.msra.mxu1 %v2782_v4  ;;  %v2860_v4 = vld [vmem:[#allocation8 + $0xc0] ss:$16 sps:$4 sm:$0xff]  }
 0x125   :  { %1147 = vmatprep.subr.bf16.mxu0 %v3393_v5  ;;  %1188 = vmatprep.subr.bf16.mxu1 %v2790_v6  ;;  %v2865_v6 = vld [vmem:[#allocation8 + $0xa4] ss:$16 sps:$4 sm:$0xff]  }
 0x128   :  { %1148 = vmatpush1.bf16.msra.mxu0 %v3396_v7  ;;  %1189 = vmatpush1.bf16.msra.mxu1 %v2788_v8  ;;  %v2863_v8 = vld [vmem:[#allocation8 + $0xa0] ss:$16 sps:$4 sm:$0xff]  }
 0x129   :  { %1149 = vmatprep.subr.bf16.mxu0 %v3399_v9  ;;  %1190 = vmatprep.subr.bf16.mxu1 %v2796_v10  ;;  %v2868_v10 = vld [vmem:[#allocation8 + $0x84] ss:$16 sps:$4 sm:$0xff]  }
 0x12c   :  { %1150 = vmatpush1.bf16.msra.mxu0 %v3402_v11  ;;  %1191 = vmatpush1.bf16.msra.mxu1 %v2794_v12  ;;  %v2866_v12 = vld [vmem:[#allocation8 + $0x80] ss:$16 sps:$4 sm:$0xff]  }
 0x12d   :  { %1151 = vmatprep.subr.bf16.mxu0 %v3405_v13  ;;  %1192 = vmatprep.subr.bf16.mxu1 %v2802_v14  ;;  %v2905_v14 = vld [vmem:[#allocation8 + $0x2e0] ss:$16 sps:$4 sm:$0xff]  }
 0x130   :  { %1152 = vmatpush1.bf16.msra.mxu0 %v3408_v15  ;;  %1193 = vmatpush1.bf16.msra.mxu1 %v2800_v16  ;;  %v2871_v16 = vld [vmem:[#allocation8 + $0x64] ss:$16 sps:$4 sm:$0xff]  }
 0x131   :  { %1153 = vmatprep.subr.bf16.mxu0 %v3411_v17  ;;  %1194 = vmatprep.subr.bf16.mxu1 %v2808_v18  ;;  %v2907_v18 = vld [vmem:[#allocation8 + $0x2e4] ss:$16 sps:$4 sm:$0xff]  }
 0x134   :  { %1154 = vmatpush1.bf16.msra.mxu0 %v3414_v19  ;;  %1195 = vmatpush1.bf16.msra.mxu1 %v2806_v20  ;;  %v2869_v20 = vld [vmem:[#allocation8 + $0x60] ss:$16 sps:$4 sm:$0xff]  }
 0x135   :  { %1155 = vmatprep.subr.bf16.mxu0 %v3417_v24  ;;  %1196 = vmatprep.subr.bf16.mxu1 %v2814_v27  ;;  %v2877_v27 = vld [vmem:[#allocation8 + $0x24] ss:$16 sps:$4 sm:$0xff]  }
 0x138   :  { %1156 = vmatpush2.bf16.msra.mxu0 %v3420_v28  ;;  %1197 = vmatpush2.bf16.msra.mxu1 %v2812_v29  ;;  %v2875_v29 = vld [vmem:[#allocation8 + $0x20] ss:$16 sps:$4 sm:$0xff]  }
 0x139   :  { %1157 = vmatprep.subr.bf16.mxu0 %v3423_v30  ;;  %1198 = vmatprep.subr.bf16.mxu1 %v2820_v31  ;;  %v2880_v31 = vld [vmem:[#allocation8 + $0x4] ss:$16 sps:$4 sm:$0xff]  }
 0x13c   :  { %1158 = vmatpush2.bf16.msra.mxu0 %v3426_v32  ;;  %1199 = vmatpush2.bf16.msra.mxu1 %v2818_v33  ;;  %v2878_v33 = vld [vmem:[#allocation8] ss:$16 sps:$4 sm:$0xff]  }
 0x13d   :  { %1159 = vmatprep.subr.bf16.mxu0 %v3429_v34  ;;  %1200 = vmatprep.subr.bf16.mxu1 %v2826_v35  ;;  %v2883_v35 = vld [vmem:[#allocation8 + $0x1e4] ss:$16 sps:$4 sm:$0xff]  }
 0x140   :  { %1160 = vmatpush2.bf16.msra.mxu0 %v3432_v36  ;;  %1201 = vmatpush2.bf16.msra.mxu1 %v2824_v37  ;;  %v2911_v37 = vld [vmem:[#allocation8 + $0x2c0] ss:$16 sps:$4 sm:$0xff]  }
 0x141   :  { %1161 = vmatprep.subr.bf16.mxu0 %v3435_v38  ;;  %1202 = vmatprep.subr.bf16.mxu1 %v2832_v39  ;;  %v2913_v39 = vld [vmem:[#allocation8 + $0x2c4] ss:$16 sps:$4 sm:$0xff]  }
 0x144   :  { %1162 = vmatpush2.bf16.msra.mxu0 %v3438_v40  ;;  %1203 = vmatpush2.bf16.msra.mxu1 %v2830_v43  ;;  %v2881_v43 = vld [vmem:[#allocation8 + $0x1e0] ss:$16 sps:$4 sm:$0xff]  }
 0x145   :  { %1163 = vmatprep.subr.bf16.mxu0 %v3441_v44  ;;  %1204 = vmatprep.subr.bf16.mxu1 %v3443_v47 }
 0x148   :  { %1164 = vmatpush2.bf16.msra.mxu0 %v3446_v48  ;;  %1205 = vmatpush2.bf16.msra.mxu1 %v3448_v49 }
 0x149   :  { %1165 = vmatprep.subr.bf16.mxu0 %v3452_v50  ;;  %1206 = vmatprep.subr.bf16.mxu1 %v3454_v51 }
 0x14c   :  { %1166 = vmatpush2.bf16.msra.mxu0 %v3458_v52  ;;  %1207 = vmatpush2.bf16.msra.mxu1 %v3460_v53 }
 0x14d   :  { %1167 = vmatprep.subr.bf16.mxu0 %v3464_v54  ;;  %1208 = vmatprep.subr.bf16.mxu1 %v3466_v57 }
 0x150   :  { %1168 = vmatpush2.bf16.msra.mxu0 %v3470_v58  ;;  %1209 = vmatpush2.bf16.msra.mxu1 %v3472_v59 }
 0x151   :  { %1169 = vmatprep.subr.bf16.mxu0 %v3476_v60  ;;  %1210 = vmatprep.subr.bf16.mxu1 %v3478_v61 }
 0x154   :  { %1170 = vmatpush2.bf16.msra.mxu0 %v3482_v62  ;;  %1211 = vmatpush2.bf16.msra.mxu1 %v3484_v63 }
 0x155   :  { %2023 = vmatprep.subr.bf16.mxu0 %v2859_v0  ;;  %2064 = vmatprep.subr.bf16.mxu1 %v2907_v18  ;;  %v2886_v0 = vld [vmem:[#allocation8 + $0x1c4] ss:$16 sps:$4 sm:$0xff]  }
 0x156   :  { %v2931_v18 = vld [vmem:[#allocation8 + $0x264] ss:$16 sps:$4 sm:$0xff]  }
 0x157   :  { %1172 = vmatmul.mubr.bf16.vlgmr.msra.gmra.mxu0 %v3385_v55  ;;  %1213 = vmatmul.mubr.bf16.vlgmr.msra.gmra.mxu1 %v3387_v56  ;;  %v2874_v55 = vld [vmem:[#allocation8 + $0x44] ss:$16 sps:$4 sm:$0xff]   ;;  %v2872_v56 = vld [vmem:[#allocation8 + $0x40] ss:$16 sps:$4 sm:$0xff]  }
 0x158   :  { %2024 = vmatpush1.bf16.msra.mxu0 %v2857_v1  ;;  %2065 = vmatpush1.bf16.msra.mxu1 %v2905_v14  ;;  %v2917_v1 = vld [vmem:[#allocation8 + $0x2a0] ss:$16 sps:$4 sm:$0xff]   ;;  %v2892_v14 = vld [vmem:[#allocation8 + $0x184] ss:$16 sps:$4 sm:$0xff]  }
 0x159   :  { %2025 = vmatprep.subr.bf16.mxu0 %v2862_v2  ;;  %2066 = vmatprep.subr.bf16.mxu1 %v2913_v39  ;;  %v2919_v2 = vld [vmem:[#allocation8 + $0x2a4] ss:$16 sps:$4 sm:$0xff]  }
 0x15a   :  { %v2901_v39 = vld [vmem:[#allocation8 + $0x124] ss:$16 sps:$4 sm:$0xff]  }
 0x15c   :  { %2026 = vmatpush1.bf16.msra.mxu0 %v2860_v4  ;;  %2067 = vmatpush1.bf16.msra.mxu1 %v2911_v37  ;;  %v2884_v4 = vld [vmem:[#allocation8 + $0x1c0] ss:$16 sps:$4 sm:$0xff]  }
 0x15d   :  { %2027 = vmatprep.subr.bf16.mxu0 %v2865_v6  ;;  %2068 = vmatprep.subr.bf16.mxu1 %v2919_v2  ;;  %v2889_v6 = vld [vmem:[#allocation8 + $0x1a4] ss:$16 sps:$4 sm:$0xff]   ;;  %v2896_v37 = vld [vmem:[#allocation8 + $0x140] ss:$16 sps:$4 sm:$0xff]  }
 0x15e   :  { %v2904_v2 = vld [vmem:[#allocation8 + $0x104] ss:$16 sps:$4 sm:$0xff]  }
 0x160   :  { %2028 = vmatpush1.bf16.msra.mxu0 %v2863_v8  ;;  %2069 = vmatpush1.bf16.msra.mxu1 %v2917_v1  ;;  %v2923_v8 = vld [vmem:[#allocation8 + $0x280] ss:$16 sps:$4 sm:$0xff]  }
 0x161   :  { %2029 = vmatprep.subr.bf16.mxu0 %v2868_v10  ;;  %v2925_v10 = vld [vmem:[#allocation8 + $0x284] ss:$16 sps:$4 sm:$0xff]   ;;  %v2899_v1 = vld [vmem:[#allocation8 + $0x120] ss:$16 sps:$4 sm:$0xff]  }
 0x162   :  { %2070 = vmatprep.subr.bf16.mxu1 %v2925_v10  ;;  %v2910_v10 = vld [vmem:[#allocation8 + $0xec] ss:$16 sps:$4 sm:$0xff]  }
 0x164   :  { %2030 = vmatpush1.bf16.msra.mxu0 %v2866_v12  ;;  %v2887_v12 = vld [vmem:[#allocation8 + $0x1a0] ss:$16 sps:$4 sm:$0xff]   ;;  %2071 = vmatpush1.bf16.msra.mxu1 %v2923_v8 }
 0x165   :  { %2031 = vmatprep.subr.bf16.mxu0 %v2871_v16  ;;  %v2929_v16 = vld [vmem:[#allocation8 + $0x260] ss:$16 sps:$4 sm:$0xff]   ;;  %2072 = vmatprep.subr.bf16.mxu1 %v2931_v18 }
 0x166   :  { %v2902_v8 = vld [vmem:[#allocation8 + $0x100] ss:$16 sps:$4 sm:$0xff]  }
 0x167   :  { %v2965_v18 = vld [vmem:[#allocation8 + $0x3a0] ss:$16 sps:$4 sm:$0xff]  }
 0x168   :  { %2032 = vmatpush1.bf16.msra.mxu0 %v2869_v20  ;;  %v2890_v20 = vld [vmem:[#allocation8 + $0x180] ss:$16 sps:$4 sm:$0xff]   ;;  %2073 = vmatpush1.bf16.msra.mxu1 %v2929_v16  ;;  %v2967_v16 = vld [vmem:[#allocation8 + $0x3a4] ss:$16 sps:$4 sm:$0xff]  }
 0x169   :  { %2033 = vmatprep.subr.bf16.mxu0 %v2874_v55  ;;  %v2895_v55 = vld [vmem:[#allocation8 + $0x164] ss:$16 sps:$4 sm:$0xff]  }
 0x16c   :  { %2034 = vmatpush1.bf16.msra.mxu0 %v2872_v56  ;;  %v2935_v56 = vld [vmem:[#allocation8 + $0x240] ss:$16 sps:$4 sm:$0xff]  }
 0x16d   :  { %2035 = vmatprep.subr.bf16.mxu0 %v2877_v27  ;;  %v2937_v27 = vld [vmem:[#allocation8 + $0x244] ss:$16 sps:$4 sm:$0xff]  }
 0x16e   :  { %2074 = vmatprep.subr.bf16.mxu1 %v2937_v27  ;;  %v2979_v27 = vld [vmem:[#allocation8 + $0x364] ss:$16 sps:$4 sm:$0xff]  }
 0x16f   :  { %2075 = vmatpush1.bf16.msra.mxu1 %v2935_v56  ;;  %v2977_v56 = vld [vmem:[#allocation8 + $0x360] ss:$16 sps:$4 sm:$0xff]  }
 0x170   :  { %2036 = vmatpush1.bf16.msra.mxu0 %v2875_v29  ;;  %v2893_v29 = vld [vmem:[#allocation8 + $0x160] ss:$16 sps:$4 sm:$0xff]  }
 0x171   :  { %2037 = vmatprep.subr.bf16.mxu0 %v2880_v31  ;;  %v2898_v31 = vld [vmem:[#allocation8 + $0x144] ss:$16 sps:$4 sm:$0xff]  }
 0x174   :  { %2038 = vmatpush1.bf16.msra.mxu0 %v2878_v33  ;;  %v2941_v33 = vld [vmem:[#allocation8 + $0x220] ss:$16 sps:$4 sm:$0xff]  }
 0x175   :  { %2039 = vmatprep.subr.bf16.mxu0 %v2883_v35  ;;  %v2943_v35 = vld [vmem:[#allocation8 + $0x224] ss:$16 sps:$4 sm:$0xff]  }
 0x176   :  { %2076 = vmatprep.subr.bf16.mxu1 %v2943_v35  ;;  %v2991_v35 = vld [vmem:[#allocation8 + $0x324] ss:$16 sps:$4 sm:$0xff]  }
 0x177   :  { %2077 = vmatpush1.bf16.msra.mxu1 %v2941_v33  ;;  %v2989_v33 = vld [vmem:[#allocation8 + $0x320] ss:$16 sps:$4 sm:$0xff]  }
 0x178   :  { %2040 = vmatpush2.bf16.msra.mxu0 %v2881_v43  ;;  %v2947_v43 = vld [vmem:[#allocation8 + $0x200] ss:$16 sps:$4 sm:$0xff]  }
 0x179   :  { %2041 = vmatprep.subr.bf16.mxu0 %v2886_v0  ;;  %v2949_v0 = vld [vmem:[#allocation8 + $0x204] ss:$16 sps:$4 sm:$0xff]  }
 0x17a   :  { %2078 = vmatprep.subr.bf16.mxu1 %v2949_v0 }
 0x17b   :  { %2079 = vmatpush1.bf16.msra.mxu1 %v2947_v43  ;;  %v3003_v43 = vld [vmem:[#allocation8 + $0x2ec] ss:$16 sps:$4 sm:$0xff]  }
 0x17c   :  { %2042 = vmatpush2.bf16.msra.mxu0 %v2884_v4  ;;  %v2953_v4 = vld [vmem:[#allocation8 + $0x3e0] ss:$16 sps:$4 sm:$0xff]  }
 0x17d   :  { %2043 = vmatprep.subr.bf16.mxu0 %v2889_v6  ;;  %v2955_v6 = vld [vmem:[#allocation8 + $0x3e4] ss:$16 sps:$4 sm:$0xff]  }
 0x17e   :  { %2080 = vmatprep.subr.bf16.mxu1 %v2955_v6 }
 0x17f   :  { %2081 = vmatpush2.bf16.msra.mxu1 %v2953_v4 }
 0x180   :  { %2044 = vmatpush2.bf16.msra.mxu0 %v2887_v12  ;;  %v2959_v12 = vld [vmem:[#allocation8 + $0x3c0] ss:$16 sps:$4 sm:$0xff]  }
 0x181   :  { %2045 = vmatprep.subr.bf16.mxu0 %v2892_v14  ;;  %v2961_v14 = vld [vmem:[#allocation8 + $0x3c4] ss:$16 sps:$4 sm:$0xff]  }
 0x182   :  { %2082 = vmatprep.subr.bf16.mxu1 %v2961_v14 }
 0x183   :  { %2083 = vmatpush2.bf16.msra.mxu1 %v2959_v12 }
 0x184   :  { %2046 = vmatpush2.bf16.msra.mxu0 %v2890_v20  ;;  %2084 = vmatprep.subr.bf16.mxu1 %v2967_v16  ;;  %v2973_v20 = vld [vmem:[#allocation8 + $0x384] ss:$16 sps:$4 sm:$0xff]  }
 0x185   :  { %2047 = vmatprep.subr.bf16.mxu0 %v2895_v55  ;;  %v2971_v55 = vld [vmem:[#allocation8 + $0x380] ss:$16 sps:$4 sm:$0xff]  }
 0x187   :  { %2085 = vmatpush2.bf16.msra.mxu1 %v2965_v18 }
 0x188   :  { %2048 = vmatpush2.bf16.msra.mxu0 %v2893_v29  ;;  %2086 = vmatprep.subr.bf16.mxu1 %v2973_v20  ;;  %v2983_v29 = vld [vmem:[#allocation8 + $0x340] ss:$16 sps:$4 sm:$0xff]  }
 0x189   :  { %2049 = vmatprep.subr.bf16.mxu0 %v2898_v31  ;;  %v2985_v31 = vld [vmem:[#allocation8 + $0x344] ss:$16 sps:$4 sm:$0xff]  }
 0x18b   :  { %2087 = vmatpush2.bf16.msra.mxu1 %v2971_v55 }
 0x18c   :  { %2050 = vmatpush2.bf16.msra.mxu0 %v2896_v37  ;;  %2088 = vmatprep.subr.bf16.mxu1 %v2979_v27  ;;  %v2995_v37 = vld [vmem:[#allocation8 + $0x300] ss:$16 sps:$4 sm:$0xff]  }
 0x18d   :  { %2051 = vmatprep.subr.bf16.mxu0 %v2901_v39  ;;  %v2997_v39 = vld [vmem:[#allocation8 + $0x304] ss:$16 sps:$4 sm:$0xff]  }
 0x18f   :  { %2089 = vmatpush2.bf16.msra.mxu1 %v2977_v56 }
 0x190   :  { %2052 = vmatpush2.bf16.msra.mxu0 %v2899_v1  ;;  %2090 = vmatprep.subr.bf16.mxu1 %v2985_v31 }
 0x191   :  { %2053 = vmatprep.subr.bf16.mxu0 %v2904_v2 }
 0x193   :  { %2091 = vmatpush2.bf16.msra.mxu1 %v2983_v29 }
 0x194   :  { %2054 = vmatpush2.bf16.msra.mxu0 %v2902_v8  ;;  %2092 = vmatprep.subr.bf16.mxu1 %v2991_v35 }
 0x195   :  { %2105 = vmatprep.subr.bf16.mxu0 %v2910_v10 }
 0x197   :  { %2093 = vmatpush2.bf16.msra.mxu1 %v2989_v33  ;;  %v2908_v33 = vld [vmem:[#allocation8 + $0xe8] ss:$16 sps:$4 sm:$0xff]  }
 0x198   :  { %2094 = vmatprep.subr.bf16.mxu1 %v2997_v39  ;;  %v2914_v39 = vld [vmem:[#allocation8 + $0xc8] ss:$16 sps:$4 sm:$0xff]  }
 0x19b   :  { %2095 = vmatpush2.bf16.msra.mxu1 %v2995_v37  ;;  %v2916_v37 = vld [vmem:[#allocation8 + $0xcc] ss:$16 sps:$4 sm:$0xff]  }
 0x19c   :  { %2146 = vmatprep.subr.bf16.mxu1 %v3003_v43  ;;  %v2922_v43 = vld [vmem:[#allocation8 + $0xac] ss:$16 sps:$4 sm:$0xff]  }
 0x1d7   :  { %v1091_v0 = vpop.f32.mrf.mxu0  ;;  %v1132_v1 = vpop.f32.mrf.mxu1 }
 0x1d8   :  { %v1092_v2 = vadd.f32 1e-08, %v1091_v0  ;;  %v2920_v0 = vld [vmem:[#allocation8 + $0xa8] ss:$16 sps:$4 sm:$0xff]  }
 0x1d9   :  { %v1093_v4 = vpop.f32.mrf.mxu0  ;;  %v1134_v6 = vpop.f32.mrf.mxu1 }
 0x1da   :  { %v1133_v8 = vadd.f32 %v1132_v1, %v1092_v2  ;;  %v1094_v10 = vadd.f32 1e-08, %v1093_v4  ;;  %v2928_v1 = vld [vmem:[#allocation8 + $0x8c] ss:$16 sps:$4 sm:$0xff]   ;;  %v2932_v2 = vld [vmem:[#allocation8 + $0x68] ss:$16 sps:$4 sm:$0xff]  }
 0x1db   :  { %v1095_v12 = vpop.f32.mrf.mxu0  ;;  %v1136_v14 = vpop.f32.mrf.mxu1  ;;  %v2940_v4 = vld [vmem:[#allocation8 + $0x4c] ss:$16 sps:$4 sm:$0xff]  }
 0x1dc   :  { %3049 = vrsqrt.f32 %v1133_v8  ;;  %v1135_v16 = vadd.f32 %v1134_v6, %v1094_v10  ;;  %v2938_v6 = vld [vmem:[#allocation8 + $0x48] ss:$16 sps:$4 sm:$0xff]   ;;  %v2946_v8 = vld [vmem:[#allocation8 + $0x2c] ss:$16 sps:$4 sm:$0xff]  }
 0x1dd   :  { %v1096_v18 = vpop.f32.mrf.mxu0  ;;  %v1137_v20 = vpop.f32.mrf.mxu1  ;;  %v2944_v10 = vld [vmem:[#allocation8 + $0x28] ss:$16 sps:$4 sm:$0xff]   ;;  %v2952_v12 = vld [vmem:[#allocation8 + $0xc] ss:$16 sps:$4 sm:$0xff]  }
 0x1de   :  { %3051 = vrsqrt.f32 %v1135_v16  ;;  %v2950_v14 = vld [vmem:[#allocation8 + $0x8] ss:$16 sps:$4 sm:$0xff]   ;;  %v2958_v16 = vld [vmem:[#allocation8 + $0x1ec] ss:$16 sps:$4 sm:$0xff]  }
 0x1df   :  { %v2956_v18 = vld [vmem:[#allocation8 + $0x1e8] ss:$16 sps:$4 sm:$0xff]   ;;  %v2964_v20 = vld [vmem:[#allocation8 + $0x1cc] ss:$16 sps:$4 sm:$0xff]  }
 0x1e9   :  { %v3050_v55 = vpop.eup %3049 }
 0x1ea   :  { %v1225_v27 = vmul.f32 %v3050_v55, %v3369_v41  ;;  %v2926_v41 = vld [vmem:[#allocation8 + $0x88] ss:$16 sps:$4 sm:$0xff]  }
 0x1eb   :  { %v3052_v56 = vpop.eup %3051  ;;  %v2962_v55 = vld [vmem:[#allocation8 + $0x1c8] ss:$16 sps:$4 sm:$0xff]  }
 0x1ec   :  { %v1226_v29 = vmul.f32 %v3052_v56, %v3373_v45  ;;  %v3494_v35 = vpack.c.bf16 %v1225_v27, %v1225_v27  ;;  %v2934_v45 = vld [vmem:[#allocation8 + $0x6c] ss:$16 sps:$4 sm:$0xff]   ;;  %v2968_v27 = vld [vmem:[#allocation8 + $0x1a8] ss:$16 sps:$4 sm:$0xff]  }
 0x1ed   :  { %v2970_v56 = vld [vmem:[#allocation8 + $0x1ac] ss:$16 sps:$4 sm:$0xff]  }
 0x1ee   :  { %v1230_v31 = vpack.c.bf16 %v1226_v29, %v1226_v29 }
 0x1f0   :  { %2055 = vmatprep.mubr.bf16.mxu0 %v1230_v31 }
 0x1f1   :  { %2056 = vmatmul.mubr.bf16.vlgmr.msra.gmra.mxu0 %v3494_v35 }
 0x1f2   :  { %2106 = vmatpush1.bf16.msra.mxu0 %v2908_v33  ;;  %2137 = vmatprep.mubr.bf16.mxu0 %v1230_v31  ;;  %v2976_v33 = vld [vmem:[#allocation8 + $0x18c] ss:$16 sps:$4 sm:$0xff]  }
 0x1f3   :  { %2107 = vmatprep.subr.bf16.mxu0 %v2916_v37 }
 0x1f6   :  { %2108 = vmatpush1.bf16.msra.mxu0 %v2914_v39 }
 0x1f7   :  { %2109 = vmatprep.subr.bf16.mxu0 %v2922_v43 }
 0x1fa   :  { %2110 = vmatpush1.bf16.msra.mxu0 %v2920_v0 }
 0x1fb   :  { %2111 = vmatprep.subr.bf16.mxu0 %v2928_v1 }
 0x1fe   :  { %2112 = vmatpush1.bf16.msra.mxu0 %v2926_v41  ;;  %v2974_v41 = vld [vmem:[#allocation8 + $0x188] ss:$16 sps:$4 sm:$0xff]  }
 0x1ff   :  { %2113 = vmatprep.subr.bf16.mxu0 %v2934_v45 }
 0x202   :  { %2114 = vmatpush1.bf16.msra.mxu0 %v2932_v2 }
 0x203   :  { %2115 = vmatprep.subr.bf16.mxu0 %v2940_v4  ;;  %v2982_v4 = vld [vmem:[#allocation8 + $0x16c] ss:$16 sps:$4 sm:$0xff]  }
 0x206   :  { %2116 = vmatpush1.bf16.msra.mxu0 %v2938_v6 }
 0x207   :  { %2117 = vmatprep.subr.bf16.mxu0 %v2946_v8 }
 0x20a   :  { %2118 = vmatpush1.bf16.msra.mxu0 %v2944_v10 }
 0x20b   :  { %2119 = vmatprep.subr.bf16.mxu0 %v2952_v12  ;;  %v2980_v12 = vld [vmem:[#allocation8 + $0x168] ss:$16 sps:$4 sm:$0xff]  }
 0x20e   :  { %2120 = vmatpush1.bf16.msra.mxu0 %v2950_v14  ;;  %v2988_v14 = vld [vmem:[#allocation8 + $0x14c] ss:$16 sps:$4 sm:$0xff]  }
 0x20f   :  { %2121 = vmatprep.subr.bf16.mxu0 %v2958_v16  ;;  %v2986_v16 = vld [vmem:[#allocation8 + $0x148] ss:$16 sps:$4 sm:$0xff]  }
 0x212   :  { %2122 = vmatpush2.bf16.msra.mxu0 %v2956_v18  ;;  %v2994_v18 = vld [vmem:[#allocation8 + $0x12c] ss:$16 sps:$4 sm:$0xff]  }
 0x213   :  { %2123 = vmatprep.subr.bf16.mxu0 %v2964_v20  ;;  %v2992_v20 = vld [vmem:[#allocation8 + $0x128] ss:$16 sps:$4 sm:$0xff]  }
 0x216   :  { %2124 = vmatpush2.bf16.msra.mxu0 %v2962_v55  ;;  %v3000_v55 = vld [vmem:[#allocation8 + $0x10c] ss:$16 sps:$4 sm:$0xff]  }
 0x217   :  { %v1173_v29 = vpop.f32.mrf.mxu0  ;;  %v1214_v31 = vpop.f32.mrf.mxu1  ;;  %2125 = vmatprep.subr.bf16.mxu0 %v2970_v56 }
 0x218   :  { %v1174_v37 = vadd.f32 1e-08, %v1173_v29 }
 0x219   :  { %v1175_v39 = vpop.f32.mrf.mxu0  ;;  %v1216_v43 = vpop.f32.mrf.mxu1 }
 0x21a   :  { %v1215_v0 = vadd.f32 %v1214_v31, %v1174_v37  ;;  %v1176_v1 = vadd.f32 1e-08, %v1175_v39  ;;  %2126 = vmatpush2.bf16.msra.mxu0 %v2968_v27  ;;  %v2998_v27 = vld [vmem:[#allocation8 + $0x108] ss:$16 sps:$4 sm:$0xff]  }
 0x21b   :  { %v1177_v45 = vpop.f32.mrf.mxu0  ;;  %v1218_v2 = vpop.f32.mrf.mxu1  ;;  %2127 = vmatprep.subr.bf16.mxu0 %v2976_v33  ;;  %v3001_v39 = vld [vmem:[#allocation8 + $0x2e8] ss:$16 sps:$4 sm:$0xff]  }
 0x21c   :  { %3053 = vrsqrt.f32 %v1215_v0  ;;  %v1217_v6 = vadd.f32 %v1216_v43, %v1176_v1  ;;  %v3006_v0 = vld [vmem:[#allocation8 + $0x2cc] ss:$16 sps:$4 sm:$0xff]   ;;  %v3065_v1 = vld [vmem:[#allocation10 + $0xe4] ss:$16 sps:$4 sm:$0xff]   ;;  %v3066_v45 = vld [vmem:[#allocation10 + $0xe0] ss:$16 sps:$4 sm:$0xff]  }
 0x21d   :  { %v1178_v8 = vpop.f32.mrf.mxu0  ;;  %v1219_v10 = vpop.f32.mrf.mxu1  ;;  %v3007_v2 = vld [vmem:[#allocation8 + $0x2a8] ss:$16 sps:$4 sm:$0xff]  }
 0x21e   :  { %3055 = vrsqrt.f32 %v1217_v6  ;;  %2128 = vmatpush2.bf16.msra.mxu0 %v2974_v41  ;;  %v3004_v41 = vld [vmem:[#allocation8 + $0x2c8] ss:$16 sps:$4 sm:$0xff]   ;;  %v3068_v6 = vld [vmem:[#allocation10 + $0xc0] ss:$16 sps:$4 sm:$0xff]   ;;  %v3069_v8 = vld [vmem:[#allocation10 + $0xa4] ss:$16 sps:$4 sm:$0xff]  }
 0x21f   :  { %2129 = vmatprep.subr.bf16.mxu0 %v2982_v4  ;;  %v3012_v4 = vld [vmem:[#allocation8 + $0x28c] ss:$16 sps:$4 sm:$0xff]   ;;  %v3010_v10 = vld [vmem:[#allocation8 + $0x288] ss:$16 sps:$4 sm:$0xff]  }
 0x222   :  { %2130 = vmatpush2.bf16.msra.mxu0 %v2980_v12  ;;  %v3070_v12 = vld [vmem:[#allocation10 + $0xa0] ss:$16 sps:$4 sm:$0xff]  }
 0x223   :  { %2131 = vmatprep.subr.bf16.mxu0 %v2988_v14  ;;  %v3071_v14 = vld [vmem:[#allocation10 + $0x84] ss:$16 sps:$4 sm:$0xff]  }
 0x226   :  { %2132 = vmatpush2.bf16.msra.mxu0 %v2986_v16  ;;  %v3013_v16 = vld [vmem:[#allocation8 + $0x268] ss:$16 sps:$4 sm:$0xff]  }
 0x227   :  { %2133 = vmatprep.subr.bf16.mxu0 %v2994_v18  ;;  %v3018_v18 = vld [vmem:[#allocation8 + $0x24c] ss:$16 sps:$4 sm:$0xff]  }
 0x229   :  { %v3054_v56 = vpop.eup %3053 }
 0x22a   :  { %2134 = vmatpush2.bf16.msra.mxu0 %v2992_v20  ;;  %v1227_v31 = vmul.f32 %v3054_v56, %v3371_v42  ;;  %v3009_v42 = vld [vmem:[#allocation8 + $0x2ac] ss:$16 sps:$4 sm:$0xff]   ;;  %v3072_v20 = vld [vmem:[#allocation10 + $0x80] ss:$16 sps:$4 sm:$0xff]   ;;  %v3016_v56 = vld [vmem:[#allocation8 + $0x248] ss:$16 sps:$4 sm:$0xff]  }
 0x22b   :  { %v3056_v29 = vpop.eup %3055  ;;  %2135 = vmatprep.subr.bf16.mxu0 %v3000_v55  ;;  %v3073_v55 = vld [vmem:[#allocation10 + $0x64] ss:$16 sps:$4 sm:$0xff]  }
 0x22c   :  { %v1228_v33 = vmul.f32 %v3056_v29, %v3375_v46  ;;  %v3499_v43 = vpack.c.bf16 %v1227_v31, %v1227_v31  ;;  %v3067_v46 = vld [vmem:[#allocation10 + $0xc4] ss:$16 sps:$4 sm:$0xff]   ;;  %v3074_v29 = vld [vmem:[#allocation10 + $0x60] ss:$16 sps:$4 sm:$0xff]  }
 0x22d   :  { %v3075_v31 = vld [vmem:[#allocation10 + $0x44] ss:$16 sps:$4 sm:$0xff]  }
 0x22e   :  { %2136 = vmatpush2.bf16.msra.mxu0 %v2998_v27  ;;  %v1232_v37 = vpack.c.bf16 %v1228_v33, %v1228_v33  ;;  %v3021_v27 = vld [vmem:[#allocation8 + $0x22c] ss:$16 sps:$4 sm:$0xff]   ;;  %v3019_v33 = vld [vmem:[#allocation8 + $0x228] ss:$16 sps:$4 sm:$0xff]  }
 0x22f   :  { %2203 = vmatprep.subr.bf16.mxu0 %v3065_v1  ;;  %v3022_v1 = vld [vmem:[#allocation8 + $0x208] ss:$16 sps:$4 sm:$0xff]  }
 0x230   :  { %2096 = vmatprep.mubr.bf16.mxu1 %v1232_v37 }
 0x231   :  { %2097 = vmatmul.mubr.bf16.vlgmr.msra.gmra.mxu1 %v3499_v43  ;;  %2138 = vmatmul.mubr.bf16.vlgmr.msra.gmra.mxu0 %v3494_v35  ;;  %v3015_v35 = vld [vmem:[#allocation8 + $0x26c] ss:$16 sps:$4 sm:$0xff]  }
 0x232   :  { %2147 = vmatpush1.bf16.msra.mxu1 %v3001_v39  ;;  %2178 = vmatprep.mubr.bf16.mxu1 %v1232_v37  ;;  %v3024_v37 = vld [vmem:[#allocation8 + $0x20c] ss:$16 sps:$4 sm:$0xff]   ;;  %v3076_v39 = vld [vmem:[#allocation10 + $0x40] ss:$16 sps:$4 sm:$0xff]  }
 0x233   :  { %2148 = vmatprep.subr.bf16.mxu1 %v3006_v0  ;;  %2204 = vmatpush1.bf16.msra.mxu0 %v3066_v45  ;;  %v3077_v0 = vld [vmem:[#allocation10 + $0x24] ss:$16 sps:$4 sm:$0xff]  }
 0x234   :  { %2205 = vmatprep.subr.bf16.mxu0 %v3067_v46  ;;  %v3079_v45 = vld [vmem:[#allocation10 + $0x4] ss:$16 sps:$4 sm:$0xff]   ;;  %v3025_v46 = vld [vmem:[#allocation8 + $0x3e8] ss:$16 sps:$4 sm:$0xff]  }
 0x236   :  { %2149 = vmatpush1.bf16.msra.mxu1 %v3004_v41  ;;  %v3027_v41 = vld [vmem:[#allocation8 + $0x3ec] ss:$16 sps:$4 sm:$0xff]  }
 0x237   :  { %2150 = vmatprep.subr.bf16.mxu1 %v3009_v42  ;;  %2206 = vmatpush1.bf16.msra.mxu0 %v3068_v6  ;;  %v3078_v42 = vld [vmem:[#allocation10 + $0x20] ss:$16 sps:$4 sm:$0xff]   ;;  %v3081_v6 = vld [vmem:[#allocation10 + $0x1e4] ss:$16 sps:$4 sm:$0xff]  }
 0x238   :  { %2207 = vmatprep.subr.bf16.mxu0 %v3069_v8  ;;  %v3028_v8 = vld [vmem:[#allocation8 + $0x3c8] ss:$16 sps:$4 sm:$0xff]  }
 0x23a   :  { %2151 = vmatpush1.bf16.msra.mxu1 %v3007_v2  ;;  %v3030_v2 = vld [vmem:[#allocation8 + $0x3cc] ss:$16 sps:$4 sm:$0xff]  }
 0x23b   :  { %2152 = vmatprep.subr.bf16.mxu1 %v3012_v4  ;;  %2208 = vmatpush1.bf16.msra.mxu0 %v3070_v12  ;;  %v3080_v4 = vld [vmem:[#allocation10] ss:$16 sps:$4 sm:$0xff]   ;;  %v3083_v12 = vld [vmem:[#allocation10 + $0x1c4] ss:$16 sps:$4 sm:$0xff]  }
 0x23c   :  { %2209 = vmatprep.subr.bf16.mxu0 %v3071_v14  ;;  %v3031_v14 = vld [vmem:[#allocation8 + $0x3a8] ss:$16 sps:$4 sm:$0xff]  }
 0x23e   :  { %2153 = vmatpush1.bf16.msra.mxu1 %v3010_v10  ;;  %v3033_v10 = vld [vmem:[#allocation8 + $0x3ac] ss:$16 sps:$4 sm:$0xff]  }
 0x23f   :  { %2154 = vmatprep.subr.bf16.mxu1 %v3015_v35  ;;  %2210 = vmatpush1.bf16.msra.mxu0 %v3072_v20  ;;  %v3082_v35 = vld [vmem:[#allocation10 + $0x1e0] ss:$16 sps:$4 sm:$0xff]   ;;  %v3085_v20 = vld [vmem:[#allocation10 + $0x1a4] ss:$16 sps:$4 sm:$0xff]  }
 0x240   :  { %2211 = vmatprep.subr.bf16.mxu0 %v3073_v55  ;;  %v3034_v55 = vld [vmem:[#allocation8 + $0x388] ss:$16 sps:$4 sm:$0xff]  }
 0x242   :  { %2155 = vmatpush1.bf16.msra.mxu1 %v3013_v16  ;;  %v3036_v16 = vld [vmem:[#allocation8 + $0x38c] ss:$16 sps:$4 sm:$0xff]  }
 0x243   :  { %2156 = vmatprep.subr.bf16.mxu1 %v3018_v18  ;;  %2212 = vmatpush1.bf16.msra.mxu0 %v3074_v29  ;;  %v3084_v18 = vld [vmem:[#allocation10 + $0x1c0] ss:$16 sps:$4 sm:$0xff]   ;;  %v3087_v29 = vld [vmem:[#allocation10 + $0x184] ss:$16 sps:$4 sm:$0xff]  }
 0x244   :  { %2213 = vmatprep.subr.bf16.mxu0 %v3075_v31  ;;  %v3037_v31 = vld [vmem:[#allocation8 + $0x368] ss:$16 sps:$4 sm:$0xff]  }
 0x246   :  { %2157 = vmatpush1.bf16.msra.mxu1 %v3016_v56  ;;  %v3039_v56 = vld [vmem:[#allocation8 + $0x36c] ss:$16 sps:$4 sm:$0xff]  }
 0x247   :  { %2158 = vmatprep.subr.bf16.mxu1 %v3021_v27  ;;  %2214 = vmatpush1.bf16.msra.mxu0 %v3076_v39  ;;  %v3086_v27 = vld [vmem:[#allocation10 + $0x1a0] ss:$16 sps:$4 sm:$0xff]   ;;  %v3089_v39 = vld [vmem:[#allocation10 + $0x164] ss:$16 sps:$4 sm:$0xff]  }
 0x248   :  { %2215 = vmatprep.subr.bf16.mxu0 %v3077_v0  ;;  %v3040_v0 = vld [vmem:[#allocation8 + $0x348] ss:$16 sps:$4 sm:$0xff]  }
 0x24a   :  { %2159 = vmatpush1.bf16.msra.mxu1 %v3019_v33  ;;  %v3042_v33 = vld [vmem:[#allocation8 + $0x34c] ss:$16 sps:$4 sm:$0xff]  }
 0x24b   :  { %2160 = vmatprep.subr.bf16.mxu1 %v3024_v37  ;;  %2216 = vmatpush1.bf16.msra.mxu0 %v3078_v42  ;;  %v3088_v37 = vld [vmem:[#allocation10 + $0x180] ss:$16 sps:$4 sm:$0xff]   ;;  %v3091_v42 = vld [vmem:[#allocation10 + $0x144] ss:$16 sps:$4 sm:$0xff]  }
 0x24c   :  { %2217 = vmatprep.subr.bf16.mxu0 %v3079_v45  ;;  %v3043_v45 = vld [vmem:[#allocation8 + $0x328] ss:$16 sps:$4 sm:$0xff]  }
 0x24e   :  { %2161 = vmatpush1.bf16.msra.mxu1 %v3022_v1  ;;  %v3045_v1 = vld [vmem:[#allocation8 + $0x32c] ss:$16 sps:$4 sm:$0xff]  }
 0x24f   :  { %2162 = vmatprep.subr.bf16.mxu1 %v3027_v41  ;;  %2218 = vmatpush1.bf16.msra.mxu0 %v3080_v4  ;;  %v3090_v41 = vld [vmem:[#allocation10 + $0x160] ss:$16 sps:$4 sm:$0xff]   ;;  %v3093_v4 = vld [vmem:[#allocation10 + $0x124] ss:$16 sps:$4 sm:$0xff]  }
 0x250   :  { %2219 = vmatprep.subr.bf16.mxu0 %v3081_v6  ;;  %v3046_v6 = vld [vmem:[#allocation8 + $0x308] ss:$16 sps:$4 sm:$0xff]  }
 0x252   :  { %2163 = vmatpush2.bf16.msra.mxu1 %v3025_v46  ;;  %v3048_v46 = vld [vmem:[#allocation8 + $0x30c] ss:$16 sps:$4 sm:$0xff]  }
 0x253   :  { %2164 = vmatprep.subr.bf16.mxu1 %v3030_v2  ;;  %2220 = vmatpush2.bf16.msra.mxu0 %v3082_v35  ;;  %v3092_v2 = vld [vmem:[#allocation10 + $0x140] ss:$16 sps:$4 sm:$0xff]  }
 0x254   :  { %2221 = vmatprep.subr.bf16.mxu0 %v3083_v12  ;;  %v3096_v35 = vld [vmem:[#allocation10 + $0x100] ss:$16 sps:$4 sm:$0xff]   ;;  %v3097_v12 = vld [vmem:[#allocation10 + $0x2e4] ss:$16 sps:$4 sm:$0xff]  }
 0x256   :  { %2165 = vmatpush2.bf16.msra.mxu1 %v3028_v8  ;;  %v3094_v8 = vld [vmem:[#allocation10 + $0x120] ss:$16 sps:$4 sm:$0xff]  }
 0x257   :  { %2166 = vmatprep.subr.bf16.mxu1 %v3033_v10  ;;  %2222 = vmatpush2.bf16.msra.mxu0 %v3084_v18  ;;  %v3095_v10 = vld [vmem:[#allocation10 + $0x104] ss:$16 sps:$4 sm:$0xff]  }
 0x258   :  { %2223 = vmatprep.subr.bf16.mxu0 %v3085_v20  ;;  %v3100_v18 = vld [vmem:[#allocation10 + $0x2c4] ss:$16 sps:$4 sm:$0xff]   ;;  %v3101_v20 = vld [vmem:[#allocation10 + $0x2c0] ss:$16 sps:$4 sm:$0xff]  }
 0x25a   :  { %2167 = vmatpush2.bf16.msra.mxu1 %v3031_v14  ;;  %v3098_v14 = vld [vmem:[#allocation10 + $0xec] ss:$16 sps:$4 sm:$0xff]  }
 0x25b   :  { %2168 = vmatprep.subr.bf16.mxu1 %v3036_v16  ;;  %2224 = vmatpush2.bf16.msra.mxu0 %v3086_v27  ;;  %v3099_v16 = vld [vmem:[#allocation10 + $0x2e0] ss:$16 sps:$4 sm:$0xff]   ;;  %v3104_v27 = vld [vmem:[#allocation10 + $0x284] ss:$16 sps:$4 sm:$0xff]  }
 0x25c   :  { %2225 = vmatprep.subr.bf16.mxu0 %v3087_v29  ;;  %v3105_v29 = vld [vmem:[#allocation10 + $0x280] ss:$16 sps:$4 sm:$0xff]  }
 0x25e   :  { %2169 = vmatpush2.bf16.msra.mxu1 %v3034_v55  ;;  %v3102_v55 = vld [vmem:[#allocation10 + $0x2a4] ss:$16 sps:$4 sm:$0xff]  }
 0x25f   :  { %2170 = vmatprep.subr.bf16.mxu1 %v3039_v56  ;;  %2226 = vmatpush2.bf16.msra.mxu0 %v3088_v37  ;;  %v3103_v56 = vld [vmem:[#allocation10 + $0x2a0] ss:$16 sps:$4 sm:$0xff]   ;;  %v3108_v37 = vld [vmem:[#allocation10 + $0x244] ss:$16 sps:$4 sm:$0xff]  }
 0x260   :  { %2227 = vmatprep.subr.bf16.mxu0 %v3089_v39  ;;  %v3110_v39 = vld [vmem:[#allocation10 + $0x224] ss:$16 sps:$4 sm:$0xff]  }
 0x262   :  { %2171 = vmatpush2.bf16.msra.mxu1 %v3037_v31  ;;  %v3106_v31 = vld [vmem:[#allocation10 + $0x264] ss:$16 sps:$4 sm:$0xff]  }
 0x263   :  { %2172 = vmatprep.subr.bf16.mxu1 %v3042_v33  ;;  %2228 = vmatpush2.bf16.msra.mxu0 %v3090_v41  ;;  %v3107_v33 = vld [vmem:[#allocation10 + $0x260] ss:$16 sps:$4 sm:$0xff]  }
 0x264   :  { %2229 = vmatprep.subr.bf16.mxu0 %v3091_v42  ;;  %v3113_v41 = vld [vmem:[#allocation10 + $0x200] ss:$16 sps:$4 sm:$0xff]   ;;  %v3114_v42 = vld [vmem:[#allocation10 + $0x3e4] ss:$16 sps:$4 sm:$0xff]  }
 0x266   :  { %2173 = vmatpush2.bf16.msra.mxu1 %v3040_v0  ;;  %v3111_v0 = vld [vmem:[#allocation10 + $0x220] ss:$16 sps:$4 sm:$0xff]  }
 0x267   :  { %2174 = vmatprep.subr.bf16.mxu1 %v3045_v1  ;;  %2230 = vmatpush2.bf16.msra.mxu0 %v3092_v2  ;;  %v3112_v1 = vld [vmem:[#allocation10 + $0x204] ss:$16 sps:$4 sm:$0xff]   ;;  %v3117_v2 = vld [vmem:[#allocation10 + $0x3c0] ss:$16 sps:$4 sm:$0xff]  }
 0x268   :  { %2231 = vmatprep.subr.bf16.mxu0 %v3093_v4  ;;  %v3118_v4 = vld [vmem:[#allocation10 + $0x3a4] ss:$16 sps:$4 sm:$0xff]  }
 0x26a   :  { %2175 = vmatpush2.bf16.msra.mxu1 %v3043_v45  ;;  %v3115_v45 = vld [vmem:[#allocation10 + $0x3e0] ss:$16 sps:$4 sm:$0xff]  }
 0x26b   :  { %2176 = vmatprep.subr.bf16.mxu1 %v3048_v46  ;;  %2232 = vmatpush2.bf16.msra.mxu0 %v3094_v8  ;;  %v3116_v46 = vld [vmem:[#allocation10 + $0x3c4] ss:$16 sps:$4 sm:$0xff]  }
 0x26c   :  { %2233 = vmatprep.subr.bf16.mxu0 %v3095_v10  ;;  %v3120_v8 = vld [vmem:[#allocation10 + $0x384] ss:$16 sps:$4 sm:$0xff]   ;;  %v3121_v10 = vld [vmem:[#allocation10 + $0x380] ss:$16 sps:$4 sm:$0xff]  }
 0x26e   :  { %2177 = vmatpush2.bf16.msra.mxu1 %v3046_v6  ;;  %v3119_v6 = vld [vmem:[#allocation10 + $0x3a0] ss:$16 sps:$4 sm:$0xff]  }
 0x26f   :  { %2234 = vmatpush2.bf16.msra.mxu0 %v3096_v35  ;;  %2244 = vmatprep.subr.bf16.mxu1 %v3097_v12  ;;  %v3122_v35 = vld [vmem:[#allocation10 + $0x364] ss:$16 sps:$4 sm:$0xff]   ;;  %v3123_v12 = vld [vmem:[#allocation10 + $0x360] ss:$16 sps:$4 sm:$0xff]  }
 0x270   :  { %2285 = vmatprep.subr.bf16.mxu0 %v3098_v14  ;;  %v3124_v14 = vld [vmem:[#allocation10 + $0x344] ss:$16 sps:$4 sm:$0xff]  }
 0x271   :  { %2179 = vmatmul.mubr.bf16.vlgmr.msra.gmra.mxu1 %v3499_v43  ;;  %v3109_v43 = vld [vmem:[#allocation10 + $0x240] ss:$16 sps:$4 sm:$0xff]  }
 0x272   :  { %2245 = vmatpush1.bf16.msra.mxu1 %v3099_v16  ;;  %v3125_v16 = vld [vmem:[#allocation10 + $0x340] ss:$16 sps:$4 sm:$0xff]  }
 0x273   :  { %2246 = vmatprep.subr.bf16.mxu1 %v3100_v18  ;;  %v3126_v18 = vld [vmem:[#allocation10 + $0x324] ss:$16 sps:$4 sm:$0xff]  }
 0x276   :  { %2247 = vmatpush1.bf16.msra.mxu1 %v3101_v20  ;;  %v3127_v20 = vld [vmem:[#allocation10 + $0x320] ss:$16 sps:$4 sm:$0xff]  }
 0x277   :  { %2248 = vmatprep.subr.bf16.mxu1 %v3102_v55  ;;  %v3128_v55 = vld [vmem:[#allocation10 + $0x304] ss:$16 sps:$4 sm:$0xff]  }
 0x27a   :  { %2249 = vmatpush1.bf16.msra.mxu1 %v3103_v56  ;;  %v3129_v56 = vld [vmem:[#allocation10 + $0x300] ss:$16 sps:$4 sm:$0xff]  }
 0x27b   :  { %2250 = vmatprep.subr.bf16.mxu1 %v3104_v27  ;;  %v3130_v27 = vld [vmem:[#allocation10 + $0x2ec] ss:$16 sps:$4 sm:$0xff]  }
 0x27e   :  { %2251 = vmatpush1.bf16.msra.mxu1 %v3105_v29 }
 0x27f   :  { %2252 = vmatprep.subr.bf16.mxu1 %v3106_v31 }
 0x282   :  { %2253 = vmatpush1.bf16.msra.mxu1 %v3107_v33 }
 0x283   :  { %2254 = vmatprep.subr.bf16.mxu1 %v3108_v37 }
 0x286   :  { %2255 = vmatpush1.bf16.msra.mxu1 %v3109_v43  ;;  %v1361_v43 = vld [vmem:[%s3575_s4] sm:$0xf]  ;;  %s3298_s4 = smov [#allocation11]  }
 0x287   :  { %2256 = vmatprep.subr.bf16.mxu1 %v3110_v39  ;;  %v1366_v39 = vrot.slane %v1361_v43, %v109_v22  ;;  %s2385_s23 = sshll.u32 %s3298_s4, 4  ;;  %s2386_s23 = int_to_ptr.vmem [resolvable:$true] %s2385_s23 }
 0x288   :  { %s3260_s24 = scalar_lea.vmem %s2386_s23, 512  ;;  %p3265_p12 = scmp.lt.s32.totalorder %s2386_s23, %s2386_s23 }
 0x289   :  { %p3261_p11 = scmp.ne.s32.totalorder %s2386_s23, %s3260_s24  ;;  %p3266_p13 = scmp.lt.s32.totalorder %s3260_s24, %s3260_s24 }
 0x28a   :  { %2257 = vmatpush1.bf16.msra.mxu1 %v3111_v0  ;;  %v1370_v0 = vrot.slane %v1361_v43, %v113_v25 }
 0x28b   :  { %2258 = vmatprep.subr.bf16.mxu1 %v3112_v1  ;;  %p3267_p0 = por %p3266_p13, %p3265_p12 }
 0x28d   :  { %p3268_p1 = pnand %p3267_p0, %p3261_p11 }
 0x28e   :  { %2259 = vmatpush1.bf16.msra.mxu1 %v3113_v41 }
 0x28f   :  { %2260 = vmatprep.subr.bf16.mxu1 %v3114_v42 }
 0x292   :  { %2261 = vmatpush2.bf16.msra.mxu1 %v3115_v45 }
 0x293   :  { %2262 = vmatprep.subr.bf16.mxu1 %v3116_v46 }
 0x296   :  { %2263 = vmatpush2.bf16.msra.mxu1 %v3117_v2 }
 0x297   :  { %2264 = vmatprep.subr.bf16.mxu1 %v3118_v4 }
 0x29a   :  { %2265 = vmatpush2.bf16.msra.mxu1 %v3119_v6 }
 0x29b   :  { %2266 = vmatprep.subr.bf16.mxu1 %v3120_v8 }
 0x29e   :  { %2267 = vmatpush2.bf16.msra.mxu1 %v3121_v10 }
 0x29f   :  { %2268 = vmatprep.subr.bf16.mxu1 %v3122_v35 }
 0x2a2   :  { %2269 = vmatpush2.bf16.msra.mxu1 %v3123_v12 }
 0x2a3   :  { %2270 = vmatprep.subr.bf16.mxu1 %v3124_v14 }
 0x2a6   :  { %2271 = vmatpush2.bf16.msra.mxu1 %v3125_v16 }
 0x2a7   :  { %2272 = vmatprep.subr.bf16.mxu1 %v3126_v18 }
 0x2aa   :  { %2273 = vmatpush2.bf16.msra.mxu1 %v3127_v20 }
 0x2ab   :  { %2274 = vmatprep.subr.bf16.mxu1 %v3128_v55 }
 0x2ae   :  { %2275 = vmatpush2.bf16.msra.mxu1 %v3129_v56 }
 0x2af   :  { %2326 = vmatprep.subr.bf16.mxu1 %v3130_v27  ;;  %v3131_v27 = vld [vmem:[#allocation10 + $0xe8] ss:$16 sps:$4 sm:$0xff]  }
 0x2b1   :  { %v2057_v29 = vpop.f32.mrf.mxu0 }
 0x2b2   :  { %v2058_v1 = vadd.f32 %v2057_v29, %v1366_v39  ;;  %v3132_v29 = vld [vmem:[#allocation10 + $0xcc] ss:$16 sps:$4 sm:$0xff]  }
 0x2b3   :  { %v2059_v31 = vpop.f32.mrf.mxu0  ;;  %v3136_v39 = vld [vmem:[#allocation10 + $0x8c] ss:$16 sps:$4 sm:$0xff]  }
 0x2b4   :  { %v2060_v45 = vadd.f32 %v2059_v31, %v1370_v0  ;;  %v3133_v31 = vld [vmem:[#allocation10 + $0xc8] ss:$16 sps:$4 sm:$0xff]   ;;  %v3148_v0 = vld [vmem:[#allocation10 + $0x22c] ss:$16 sps:$4 sm:$0xff]  }
 0x2b5   :  { %v2061_v33 = vpop.f32.mrf.mxu0 }
 0x2b6   :  { %v3134_v33 = vld [vmem:[#allocation10 + $0xac] ss:$16 sps:$4 sm:$0xff]  }
 0x2b7   :  { %v2062_v37 = vpop.f32.mrf.mxu0 }
 0x2b8   :  { %v3135_v37 = vld [vmem:[#allocation10 + $0xa8] ss:$16 sps:$4 sm:$0xff]  }
 0x2f1   :  { %v2098_v41 = vpop.f32.mrf.mxu1  ;;  %v2139_v42 = vpop.f32.mrf.mxu0 }
 0x2f2   :  { %v2099_v46 = vadd.f32 %v2098_v41, %v2058_v1  ;;  %v3149_v1 = vld [vmem:[#allocation10 + $0x228] ss:$16 sps:$4 sm:$0xff]   ;;  %v3150_v41 = vld [vmem:[#allocation10 + $0x20c] ss:$16 sps:$4 sm:$0xff]  }
 0x2f3   :  { %v2100_v2 = vpop.f32.mrf.mxu1  ;;  %v2141_v4 = vpop.f32.mrf.mxu0 }
 0x2f4   :  { %v2187_v6 = vmul.f32 0.2, %v2099_v46  ;;  %v2101_v8 = vadd.f32 %v2100_v2, %v2060_v45  ;;  %v3152_v45 = vld [vmem:[#allocation10 + $0x3ec] ss:$16 sps:$4 sm:$0xff]  }
 0x2f5   :  { %v2102_v10 = vpop.f32.mrf.mxu1  ;;  %v2143_v35 = vpop.f32.mrf.mxu0  ;;  %v3154_v2 = vld [vmem:[#allocation10 + $0x3cc] ss:$16 sps:$4 sm:$0xff]  }
 0x2f6   :  { %v3511_v12 = vmax.f32 %v2099_v46, %v2187_v6  ;;  %v2188_v14 = vmul.f32 0.2, %v2101_v8  ;;  %v3153_v46 = vld [vmem:[#allocation10 + $0x3e8] ss:$16 sps:$4 sm:$0xff]   ;;  %v3156_v6 = vld [vmem:[#allocation10 + $0x3ac] ss:$16 sps:$4 sm:$0xff]  }
 0x2f7   :  { %v2103_v16 = vpop.f32.mrf.mxu1  ;;  %v2144_v18 = vpop.f32.mrf.mxu0  ;;  %v3158_v10 = vld [vmem:[#allocation10 + $0x38c] ss:$16 sps:$4 sm:$0xff]   ;;  %v3159_v35 = vld [vmem:[#allocation10 + $0x388] ss:$16 sps:$4 sm:$0xff]  }
 0x2f8   :  { %v3513_v22 = vmax.f32 %v2101_v8, %v2188_v14  ;;  %v2195_v25 = vmul.f32 %v3511_v12, %v3511_v12  ;;  %v3157_v8 = vld [vmem:[#allocation10 + $0x3a8] ss:$16 sps:$4 sm:$0xff]  }
 0x2fa   :  { %v2196_v20 = vmul.f32 %v3513_v22, %v3513_v22  ;;  %v2199_v56 = vpack.c.bf16 %v2195_v25, %v2195_v25 }
 0x2fc   :  { %v2200_v55 = vpack.c.bf16 %v2196_v20, %v2196_v20 }
 0x2fe   :  { %2235 = vmatprep.mubr.bf16.mxu0 %v2200_v55 }
 0x2ff   :  { %2236 = vmatmul.mubr.bf16.vlgmr.msra.gmra.mxu0 %v2199_v56 }
 0x300   :  { %2286 = vmatpush1.bf16.msra.mxu0 %v3131_v27  ;;  %2317 = vmatprep.mubr.bf16.mxu0 %v2200_v55 }
 0x301   :  { %2287 = vmatprep.subr.bf16.mxu0 %v3132_v29 }
 0x304   :  { %2288 = vmatpush1.bf16.msra.mxu0 %v3133_v31 }
 0x305   :  { %2289 = vmatprep.subr.bf16.mxu0 %v3134_v33 }
 0x308   :  { %2290 = vmatpush1.bf16.msra.mxu0 %v3135_v37 }
 0x309   :  { %2291 = vmatprep.subr.bf16.mxu0 %v3136_v39 }
 0x30c   :  { %2292 = vmatpush1.bf16.msra.mxu0 %v3391_v3  ;;  %v1374_v3 = vrot.slane %v1361_v43, %v117_v23 }
 0x30d   :  { %2293 = vmatprep.subr.bf16.mxu0 %v3393_v5  ;;  %v1378_v5 = vrot.slane %v1361_v43, %v121_v26  ;;  %v3147_v43 = vld [vmem:[#allocation10 + $0x248] ss:$16 sps:$4 sm:$0xff]  }
 0x310   :  { %2294 = vmatpush1.bf16.msra.mxu0 %v3396_v7  ;;  %v2140_v7 = vadd.f32 %v2139_v42, %v1374_v3  ;;  %v3151_v42 = vld [vmem:[#allocation10 + $0x208] ss:$16 sps:$4 sm:$0xff]  }
 0x311   :  { %2295 = vmatprep.subr.bf16.mxu0 %v3399_v9 }
 0x314   :  { %2296 = vmatpush1.bf16.msra.mxu0 %v3402_v11  ;;  %v2142_v11 = vadd.f32 %v2141_v4, %v1378_v5  ;;  %v3155_v4 = vld [vmem:[#allocation10 + $0x3c8] ss:$16 sps:$4 sm:$0xff]  }
 0x315   :  { %2297 = vmatprep.subr.bf16.mxu0 %v3405_v13 }
 0x318   :  { %2298 = vmatpush1.bf16.msra.mxu0 %v3408_v15 }
 0x319   :  { %2299 = vmatprep.subr.bf16.mxu0 %v3411_v17 }
 0x31c   :  { %2300 = vmatpush1.bf16.msra.mxu0 %v3414_v19 }
 0x31d   :  { %2301 = vmatprep.subr.bf16.mxu0 %v3417_v24 }
 0x320   :  { %2302 = vmatpush2.bf16.msra.mxu0 %v3420_v28 }
 0x321   :  { %2303 = vmatprep.subr.bf16.mxu0 %v3423_v30 }
 0x324   :  { %2304 = vmatpush2.bf16.msra.mxu0 %v3426_v32 }
 0x325   :  { %2305 = vmatprep.subr.bf16.mxu0 %v3429_v34 }
 0x328   :  { %2306 = vmatpush2.bf16.msra.mxu0 %v3432_v36 }
 0x329   :  { %2307 = vmatprep.subr.bf16.mxu0 %v3435_v38  ;;  %v3137_v38 = vld [vmem:[#allocation10 + $0x2e8] ss:$16 sps:$4 sm:$0xff]  }
 0x32c   :  { %2308 = vmatpush2.bf16.msra.mxu0 %v3438_v40  ;;  %v3138_v40 = vld [vmem:[#allocation10 + $0x2cc] ss:$16 sps:$4 sm:$0xff]  }
 0x32d   :  { %2309 = vmatprep.subr.bf16.mxu0 %v3441_v44  ;;  %v3139_v44 = vld [vmem:[#allocation10 + $0x2c8] ss:$16 sps:$4 sm:$0xff]  }
 0x330   :  { %2310 = vmatpush2.bf16.msra.mxu0 %v3446_v48  ;;  %v3140_v48 = vld [vmem:[#allocation10 + $0x2ac] ss:$16 sps:$4 sm:$0xff]  }
 0x331   :  { %v2180_v9 = vpop.f32.mrf.mxu1  ;;  %2311 = vmatprep.subr.bf16.mxu0 %v3452_v50  ;;  %v3141_v50 = vld [vmem:[#allocation10 + $0x2a8] ss:$16 sps:$4 sm:$0xff]  }
 0x332   :  { %v2181_v13 = vadd.f32 %v2180_v9, %v2140_v7 }
 0x333   :  { %v2182_v15 = vpop.f32.mrf.mxu1 }
 0x334   :  { %v2189_v17 = vmul.f32 0.2, %v2181_v13  ;;  %v2183_v19 = vadd.f32 %v2182_v15, %v2142_v11  ;;  %2312 = vmatpush2.bf16.msra.mxu0 %v3458_v52  ;;  %v3142_v52 = vld [vmem:[#allocation10 + $0x28c] ss:$16 sps:$4 sm:$0xff]  }
 0x335   :  { %v2184_v23 = vpop.f32.mrf.mxu1  ;;  %2313 = vmatprep.subr.bf16.mxu0 %v3464_v54  ;;  %v3143_v54 = vld [vmem:[#allocation10 + $0x288] ss:$16 sps:$4 sm:$0xff]  }
 0x336   :  { %v3545_v24 = vmax.f32 %v2181_v13, %v2189_v17  ;;  %v2190_v21 = vmul.f32 0.2, %v2183_v19 }
 0x337   :  { %v2185_v26 = vpop.f32.mrf.mxu1 }
 0x338   :  { %v3547_v28 = vmax.f32 %v2183_v19, %v2190_v21  ;;  %2314 = vmatpush2.bf16.msra.mxu0 %v3470_v58  ;;  %v2197_v30 = vmul.f32 %v3545_v24, %v3545_v24  ;;  %v3144_v58 = vld [vmem:[#allocation10 + $0x26c] ss:$16 sps:$4 sm:$0xff]  }
 0x339   :  { %2315 = vmatprep.subr.bf16.mxu0 %v3476_v60  ;;  %v3145_v60 = vld [vmem:[#allocation10 + $0x268] ss:$16 sps:$4 sm:$0xff]  }
 0x33a   :  { %v2198_v32 = vmul.f32 %v3547_v28, %v3547_v28  ;;  %v2201_v36 = vpack.c.bf16 %v2197_v30, %v2197_v30 }
 0x33c   :  { %2316 = vmatpush2.bf16.msra.mxu0 %v3482_v62  ;;  %v2202_v34 = vpack.c.bf16 %v2198_v32, %v2198_v32  ;;  %v3146_v62 = vld [vmem:[#allocation10 + $0x24c] ss:$16 sps:$4 sm:$0xff]  }
 0x33e   :  { %2276 = vmatprep.mubr.bf16.mxu1 %v2202_v34 }
 0x33f   :  { %2277 = vmatmul.mubr.bf16.vlgmr.msra.gmra.mxu1 %v2201_v36  ;;  %2318 = vmatmul.mubr.bf16.vlgmr.msra.gmra.mxu0 %v2199_v56 }
 0x340   :  { %2327 = vmatpush1.bf16.msra.mxu1 %v3137_v38  ;;  %2358 = vmatprep.mubr.bf16.mxu1 %v2202_v34 }
 0x341   :  { %2328 = vmatprep.subr.bf16.mxu1 %v3138_v40 }
 0x344   :  { %2329 = vmatpush1.bf16.msra.mxu1 %v3139_v44 }
 0x345   :  { %2330 = vmatprep.subr.bf16.mxu1 %v3140_v48 }
 0x348   :  { %2331 = vmatpush1.bf16.msra.mxu1 %v3141_v50 }
 0x349   :  { %2332 = vmatprep.subr.bf16.mxu1 %v3142_v52 }
 0x34c   :  { %2333 = vmatpush1.bf16.msra.mxu1 %v3143_v54 }
 0x34d   :  { %2334 = vmatprep.subr.bf16.mxu1 %v3144_v58 }
 0x350   :  { %2335 = vmatpush1.bf16.msra.mxu1 %v3145_v60 }
 0x351   :  { %2336 = vmatprep.subr.bf16.mxu1 %v3146_v62 }
 0x354   :  { %2337 = vmatpush1.bf16.msra.mxu1 %v3147_v43 }
 0x355   :  { %2338 = vmatprep.subr.bf16.mxu1 %v3148_v0 }
 0x358   :  { %2339 = vmatpush1.bf16.msra.mxu1 %v3149_v1 }
 0x359   :  { %2340 = vmatprep.subr.bf16.mxu1 %v3150_v41 }
 0x35c   :  { %2341 = vmatpush1.bf16.msra.mxu1 %v3151_v42 }
 0x35d   :  { %2342 = vmatprep.subr.bf16.mxu1 %v3152_v45 }
 0x360   :  { %2343 = vmatpush2.bf16.msra.mxu1 %v3153_v46 }
 0x361   :  { %2344 = vmatprep.subr.bf16.mxu1 %v3154_v2 }
 0x364   :  { %2345 = vmatpush2.bf16.msra.mxu1 %v3155_v4 }
 0x365   :  { %2346 = vmatprep.subr.bf16.mxu1 %v3156_v6 }
 0x368   :  { %2347 = vmatpush2.bf16.msra.mxu1 %v3157_v8 }
 0x369   :  { %2348 = vmatprep.subr.bf16.mxu1 %v3158_v10 }
 0x36c   :  { %2349 = vmatpush2.bf16.msra.mxu1 %v3159_v35 }
 0x36d   :  { %2350 = vmatprep.subr.bf16.mxu1 %v3443_v47 }
 0x370   :  { %2351 = vmatpush2.bf16.msra.mxu1 %v3448_v49 }
 0x371   :  { %2352 = vmatprep.subr.bf16.mxu1 %v3454_v51 }
 0x374   :  { %2353 = vmatpush2.bf16.msra.mxu1 %v3460_v53 }
 0x375   :  { %2354 = vmatprep.subr.bf16.mxu1 %v3466_v57 }
 0x378   :  { %2355 = vmatpush2.bf16.msra.mxu1 %v3472_v59 }
 0x379   :  { %2356 = vmatprep.subr.bf16.mxu1 %v3478_v61 }
 0x37c   :  { %2357 = vmatpush2.bf16.msra.mxu1 %v3484_v63 }
 0x37f   :  { %2359 = vmatmul.mubr.bf16.vlgmr.msra.gmra.mxu1 %v2201_v36 }
 0x3bf   :  { %v2237_v14 = vpop.f32.mrf.mxu0 }
 0x3c0   :  { %v2238_v47 = vadd.f32 1e-08, %v2237_v14 }
 0x3c1   :  { %v2239_v16 = vpop.f32.mrf.mxu0 }
 0x3c2   :  { %v2240_v55 = vadd.f32 1e-08, %v2239_v16 }
 0x3c3   :  { %v2241_v18 = vpop.f32.mrf.mxu0 }
 0x3c5   :  { %v2242_v25 = vpop.f32.mrf.mxu0 }
 0x3ff   :  { %v2278_v20 = vpop.f32.mrf.mxu1  ;;  %v2319_v49 = vpop.f32.mrf.mxu0 }
 0x400   :  { %v2279_v51 = vadd.f32 %v2278_v20, %v2238_v47  ;;  %v2320_v39 = vadd.f32 1e-08, %v2319_v49 }
 0x401   :  { %v2280_v56 = vpop.f32.mrf.mxu1  ;;  %v2321_v53 = vpop.f32.mrf.mxu0 }
 0x402   :  { %3057 = vrsqrt.f32 %v2279_v51  ;;  %v2281_v57 = vadd.f32 %v2280_v56, %v2240_v55  ;;  %v2322_v5 = vadd.f32 1e-08, %v2321_v53 }
 0x403   :  { %v2282_v27 = vpop.f32.mrf.mxu1  ;;  %v2323_v59 = vpop.f32.mrf.mxu0 }
 0x404   :  { %3059 = vrsqrt.f32 %v2281_v57 }
 0x405   :  { %v2283_v61 = vpop.f32.mrf.mxu1  ;;  %v2324_v29 = vpop.f32.mrf.mxu0 }
 0x40f   :  { %v3058_v63 = vpop.eup %3057 }
 0x410   :  { %v2371_v31 = vmul.f32 %v3058_v63, %v3511_v12 }
 0x411   :  { %v3060_v33 = vpop.eup %3059 }
 0x412   :  { %v2372_v37 = vmul.f32 %v3060_v33, %v3513_v22  ;;  %2375 = vst [vmem:[#allocation11] sm:$0xff] %v2371_v31 }
 0x414   :  { %2376 = vst [vmem:[#allocation11 + $0x8] sm:$0xff] %v2372_v37 }
 0x43f   :  { %v2360_v3 = vpop.f32.mrf.mxu1 }
 0x440   :  { %v2361_v7 = vadd.f32 %v2360_v3, %v2320_v39 }
 0x441   :  { %v2362_v9 = vpop.f32.mrf.mxu1 }
 0x442   :  { %3061 = vrsqrt.f32 %v2361_v7  ;;  %v2363_v11 = vadd.f32 %v2362_v9, %v2322_v5 }
 0x443   :  { %v2364_v13 = vpop.f32.mrf.mxu1 }
 0x444   :  { %3063 = vrsqrt.f32 %v2363_v11 }
 0x445   :  { %v2365_v15 = vpop.f32.mrf.mxu1 }
 0x44f   :  { %v3062_v17 = vpop.eup %3061 }
 0x450   :  { %v2373_v12 = vmul.f32 %v3062_v17, %v3545_v24 }
 0x451   :  { %v3064_v19 = vpop.eup %3063 }
 0x452   :  { %v2374_v22 = vmul.f32 %v3064_v19, %v3547_v28  ;;  %2377 = vst [vmem:[#allocation11 + $0x10] sm:$0xff] %v2373_v12 }
 0x454   :  { %2378 = vst [vmem:[#allocation11 + $0x18] sm:$0xff] %v2374_v22 }
 0x455   :  { %3271 = shalt.err (!%p3268_p1)
}
 0x456   :  { %2388 = dma.vmem_to_hbm [thread:$0]  %s2386_s23, 512, %s3577_s6, [#allocation4]  }
 0x457   :  { %3286 = dma.done.wait [#allocation4], 512  }
 0x458   :  { %3287 = vsyncadd [#allocation4], 4294966784 }
 0x459   :  { %2392 = vsyncpa [#allocation3], 1 }
 0x45a   :  { %2393 = vsyncpa [#allocation6], 1 }
 0x45b   :  { %2394 = vsyncpa [#allocation9], 1 }
 0x45c   :  { %2395 = vsyncpa [#allocation4], 1 }

// kernel: tpu_custom_call.1
= control target key start
LH: loop header
LB: loop body
LE: loop exit
PB: predicated region body
PF: predicated region fallthrough
CT: control target
= control target key end

     0   :  { %11 = vsyncpa [#allocation3], 0  ;;  %s3571_s0 = inlined_call_operand.hbm [shape: f32[8,32], index: 0, kind: input, shape index: {}]   ;;  %s3572_s1 = inlined_call_operand.hbm [shape: f32[32,512], index: 1, kind: input, shape index: {}]   ;;  %s3573_s2 = inlined_call_operand.hbm [shape: f32[1,512], index: 2, kind: input, shape index: {}]   ;;  %s3574_s3 = inlined_call_operand.hbm [shape: bf16[512,512], index: 3, kind: input, shape index: {}]   ;;  %s3575_s4 = inlined_call_operand.vmem [shape: f32[1,512], index: 4, kind: input, shape index: {}]   ;;  %s3576_s5 = inlined_call_operand.hbm [shape: bf16[512,512], index: 5, kind: input, shape index: {}]   ;;  %s3577_s6 = inlined_call_operand.hbm [shape: f32[8,512], index: 6, kind: output, shape index: {}]  }
   0x1   :  { %12 = vsyncpa [#allocation6], 0 }
   0x2   :  { %13 = vsyncpa [#allocation9], 0 }
   0x3   :  { %14 = vsyncpa [#allocation4], 0  ;;  %s3288_s21 = smov [#allocation5]  }
   0x4   :  { %s30_s22 = sshll.u32 %s3288_s21, 4  ;;  %s31_s22 = int_to_ptr.vmem [resolvable:$true] %s30_s22 }
   0x5   :  { %s3168_s23 = scalar_lea.vmem %s31_s22, 2048  ;;  %p3173_p1 = scmp.lt.s32.totalorder %s31_s22, %s31_s22 }
   0x6   :  { %p3169_p0 = scmp.ne.s32.totalorder %s31_s22, %s3168_s23  ;;  %p3174_p2 = scmp.lt.s32.totalorder %s3168_s23, %s3168_s23 }
   0x8   :  { %p3175_p3 = por %p3174_p2, %p3173_p1 }
   0xa   :  { %p3176_p4 = pnand %p3175_p3, %p3169_p0 }
   0xc   :  { %3179 = shalt.err (!%p3176_p4)
}
   0xd   :  { %s3289_s24 = smov 512   ;;  %s3290_s25 = smov 32  }
   0xe   :  { %36 = dma.hbm_to_vmem [thread:$0]  %s3572_s1, 2048, %s31_s22, [#allocation6], %s3289_s24, %s3289_s24, %s3290_s25  }
   0xf   :  { %s3291_s28 = smov [#allocation8]  }
  0x10   :  { %s52_s29 = sshll.u32 %s3291_s28, 4  ;;  %s53_s29 = int_to_ptr.vmem [resolvable:$true] %s52_s29 }
  0x11   :  { %s3188_s30 = scalar_lea.vmem %s53_s29, 16384  ;;  %p3193_p6 = scmp.lt.s32.totalorder %s53_s29, %s53_s29 }
  0x12   :  { %p3189_p5 = scmp.ne.s32.totalorder %s53_s29, %s3188_s30  ;;  %p3194_p7 = scmp.lt.s32.totalorder %s3188_s30, %s3188_s30 }
  0x14   :  { %p3195_p8 = por %p3194_p7, %p3193_p6 }
  0x16   :  { %p3196_p9 = pnand %p3195_p8, %p3189_p5 }
  0x18   :  { %3199 = shalt.err (!%p3196_p9)
}
  0x19   :  { %s3292_s7 = smov 256   ;;  %s3293_s8 = smov 16  }
  0x1a   :  { %58 = dma.hbm_to_vmem [thread:$0]  %s3574_s3, 16384, %s53_s29, [#allocation9], %s3292_s7, %s3292_s7, %s3293_s8  }
  0x1b   :  { %s3294_s1 = smov [#allocation2]   ;;  %s3295_s12 = smov [#allocation7]  }
  0x1c   :  { %s21_s11 = sshll.u32 %s3294_s1, 4  ;;  %s43_s13 = sshll.u32 %s3295_s12, 4  ;;  %s22_s11 = int_to_ptr.vmem [resolvable:$true] %s21_s11  ;;  %s44_s13 = int_to_ptr.vmem [resolvable:$true] %s43_s13 }
  0x1d   :  { %s3208_s14 = scalar_lea.vmem %s22_s11, 128  ;;  %p3213_p11 = scmp.lt.s32.totalorder %s22_s11, %s22_s11 }
  0x1e   :  { %p3209_p10 = scmp.ne.s32.totalorder %s22_s11, %s3208_s14  ;;  %p3214_p12 = scmp.lt.s32.totalorder %s3208_s14, %s3208_s14 }
  0x20   :  { %p3215_p13 = por %p3214_p12, %p3213_p11 }
  0x22   :  { %p3216_p0 = pnand %p3215_p13, %p3209_p10 }
  0x24   :  { %3219 = shalt.err (!%p3216_p0)
}
  0x25   :  { %24 = dma.hbm_to_vmem [thread:$0]  %s3571_s0, 128, %s22_s11, [#allocation3]  }
  0x26   :  { %s3228_s17 = scalar_lea.vmem %s44_s13, 64  ;;  %p3233_p2 = scmp.lt.s32.totalorder %s44_s13, %s44_s13 }
  0x27   :  { %p3229_p1 = scmp.ne.s32.totalorder %s44_s13, %s3228_s17  ;;  %p3234_p3 = scmp.lt.s32.totalorder %s3228_s17, %s3228_s17 }
  0x29   :  { %p3235_p4 = por %p3234_p3, %p3233_p2 }
  0x2b   :  { %p3236_p5 = pnand %p3235_p4, %p3229_p1 }
  0x2d   :  { %3239 = shalt.err (!%p3236_p5)
}
  0x2e   :  { %46 = dma.hbm_to_vmem [thread:$0]  %s3573_s2, 64, %s44_s13, [#allocation6]  }
  0x2f   :  { %s3296_s19 = smov [#allocation10]  }
  0x30   :  { %s66_s20 = sshll.u32 %s3296_s19, 4  ;;  %s67_s20 = int_to_ptr.vmem [resolvable:$true] %s66_s20 }
  0x31   :  { %s3248_s21 = scalar_lea.vmem %s67_s20, 16384  ;;  %p3253_p7 = scmp.lt.s32.totalorder %s67_s20, %s67_s20 }
  0x32   :  { %p3249_p6 = scmp.ne.s32.totalorder %s67_s20, %s3248_s21  ;;  %p3254_p8 = scmp.lt.s32.totalorder %s3248_s21, %s3248_s21 }
  0x34   :  { %p3255_p9 = por %p3254_p8, %p3253_p7 }
  0x36   :  { %p3256_p10 = pnand %p3255_p9, %p3249_p6 }
  0x38   :  { %3259 = shalt.err (!%p3256_p10)
}
  0x39   :  { %72 = dma.hbm_to_vmem [thread:$0]  %s3576_s5, 16384, %s67_s20, [#allocation9], %s3292_s7, %s3292_s7, %s3293_s8  }
  0x3a   :  { %3280 = dma.done.wait [#allocation3], 128  }
  0x3b   :  { %3281 = vsyncadd [#allocation3], 4294967168 }
  0x3c   :  { %3282 = dma.done.wait [#allocation6], 2112  }
  0x3d   :  { %3283 = vsyncadd [#allocation6], 4294965184 }
  0x3e   :  { %3284 = dma.done.wait [#allocation9], 32768  }
  0x3f   :  { %3285 = vsyncadd [#allocation9], 4294934528  ;;  %v3297_v0 = vmov 0.0   ;;  %v102_v1 = vld [vmem:[#allocation5 + $0x68] sm:$0xff]  ;;  %v104_v2 = vld [vmem:[#allocation5 + $0x78] sm:$0xff]  ;;  %vm127_vm0 = vcmask 261120  }
  0x40   :  { %195 = vmatprep.mubr.f32.mxu0 %v3297_v0  ;;  %266 = vmatprep.mubr.f32.mxu1 %v3297_v0  ;;  %v101_v3 = vld [vmem:[#allocation5 + $0x60] sm:$0xff]  ;;  %v103_v4 = vld [vmem:[#allocation5 + $0x70] sm:$0xff]  ;;  %v98_v5 = vld [vmem:[#allocation5 + $0x48] sm:$0xff] }
  0x41   :  { %155 = vmatprep.subr.mxu0 %v102_v1  ;;  %226 = vmatprep.subr.mxu1 %v104_v2  ;;  %v100_v6 = vld [vmem:[#allocation5 + $0x58] sm:$0xff]  ;;  %v97_v7 = vld [vmem:[#allocation5 + $0x40] sm:$0xff]  ;;  %v99_v8 = vld [vmem:[#allocation5 + $0x50] sm:$0xff] }
  0x42   :  { %156 = vmatpush1.msra.mxu0 %v101_v3  ;;  %227 = vmatpush1.msra.mxu1 %v103_v4  ;;  %v94_v9 = vld [vmem:[#allocation5 + $0x28] sm:$0xff]  ;;  %v96_v10 = vld [vmem:[#allocation5 + $0x38] sm:$0xff]  ;;  %v93_v11 = vld [vmem:[#allocation5 + $0x20] sm:$0xff] }
  0x43   :  { %157 = vmatprep.subr.mxu0 %v98_v5  ;;  %228 = vmatprep.subr.mxu1 %v100_v6  ;;  %v95_v12 = vld [vmem:[#allocation5 + $0x30] sm:$0xff]  ;;  %v90_v13 = vld [vmem:[#allocation5 + $0x8] sm:$0xff]  ;;  %v92_v14 = vld [vmem:[#allocation5 + $0x18] sm:$0xff] }
  0x44   :  { %158 = vmatpush1.msra.mxu0 %v97_v7  ;;  %229 = vmatpush1.msra.mxu1 %v99_v8  ;;  %v89_v15 = vld [vmem:[#allocation5] sm:$0xff]  ;;  %v91_v16 = vld [vmem:[#allocation5 + $0x10] sm:$0xff]  ;;  %v88_v17 = vld [vmem:[#allocation2] sm:$0xff] }
  0x45   :  { %159 = vmatprep.subr.mxu0 %v94_v9  ;;  %230 = vmatprep.subr.mxu1 %v96_v10  ;;  %v2665_v18 = vld [vmem:[#allocation10 + $0xe0] ss:$16 sps:$4 sm:$0xff]   ;;  %v2667_v19 = vld [vmem:[#allocation10 + $0xe4] ss:$16 sps:$4 sm:$0xff]  }
  0x46   :  { %160 = vmatpush1.msra.mxu0 %v93_v11  ;;  %231 = vmatpush1.msra.mxu1 %v95_v12  ;;  %v2668_v20 = vld [vmem:[#allocation10 + $0x2e0] ss:$16 sps:$4 sm:$0xff]   ;;  %v2670_v21 = vld [vmem:[#allocation10 + $0x2e4] ss:$16 sps:$4 sm:$0xff]  }
  0x47   :  { %161 = vmatprep.subr.mxu0 %v90_v13  ;;  %232 = vmatprep.subr.mxu1 %v92_v14  ;;  %v2673_v22 = vld [vmem:[#allocation10 + $0xc4] ss:$16 sps:$4 sm:$0xff]   ;;  %v2671_v23 = vld [vmem:[#allocation10 + $0xc0] ss:$16 sps:$4 sm:$0xff]  }
  0x48   :  { %162 = vmatpush1.msra.mxu0 %v89_v15  ;;  %233 = vmatpush1.msra.mxu1 %v91_v16  ;;  %v2676_v24 = vld [vmem:[#allocation10 + $0x2c4] ss:$16 sps:$4 sm:$0xff]   ;;  %v2674_v25 = vld [vmem:[#allocation10 + $0x2c0] ss:$16 sps:$4 sm:$0xff]  }
  0x49   :  { %2396 = vmatmul.mubr.msk.f32.vlgmr.msra.gmra.mxu0 %vm127_vm0, %v88_v17  ;;  %2397 = vmatmul.mubr.msk.f32.vlgmr.msra.gmra.mxu1 %vm127_vm0, %v88_v17  ;;  %v2679_v26 = vld [vmem:[#allocation10 + $0xa4] ss:$16 sps:$4 sm:$0xff]   ;;  %v2677_v28 = vld [vmem:[#allocation10 + $0xa0] ss:$16 sps:$4 sm:$0xff]  }
  0x4a   :  { %1057 = vmatprep.subr.bf16.mxu0 %v2667_v19  ;;  %1098 = vmatprep.subr.bf16.mxu1 %v2670_v21  ;;  %v2682_v27 = vld [vmem:[#allocation10 + $0x2a4] ss:$16 sps:$4 sm:$0xff]   ;;  %v2680_v29 = vld [vmem:[#allocation10 + $0x2a0] ss:$16 sps:$4 sm:$0xff]   ;;  %v2766_v19 = vld [vmem:[#allocation10 + $0x2ec] ss:$16 sps:$4 sm:$0xff]  }
  0x4b   :  { %1058 = vmatpush1.bf16.msra.mxu0 %v2665_v18  ;;  %1099 = vmatpush1.bf16.msra.mxu1 %v2668_v20  ;;  %v2685_v30 = vld [vmem:[#allocation10 + $0x84] ss:$16 sps:$4 sm:$0xff]   ;;  %v2683_v32 = vld [vmem:[#allocation10 + $0x80] ss:$16 sps:$4 sm:$0xff]   ;;  %v2763_v18 = vld [vmem:[#allocation10 + $0xec] ss:$16 sps:$4 sm:$0xff]   ;;  %v107_v20 = vlaneseq }
  0x4c   :  { %1059 = vmatprep.subr.bf16.mxu0 %v2673_v22  ;;  %1100 = vmatprep.subr.bf16.mxu1 %v2676_v24  ;;  %v2688_v31 = vld [vmem:[#allocation10 + $0x284] ss:$16 sps:$4 sm:$0xff]   ;;  %v2686_v33 = vld [vmem:[#allocation10 + $0x280] ss:$16 sps:$4 sm:$0xff]   ;;  %v105_v24 = vld [vmem:[#allocation7] sm:$0xf] }
  0x4d   :  { %v2691_v34 = vld [vmem:[#allocation10 + $0x64] ss:$16 sps:$4 sm:$0xff]   ;;  %v2689_v36 = vld [vmem:[#allocation10 + $0x60] ss:$16 sps:$4 sm:$0xff]   ;;  %v3355_v21 = vshrl.u32 %v107_v20, 7 }
  0x4e   :  { %v2694_v35 = vld [vmem:[#allocation10 + $0x264] ss:$16 sps:$4 sm:$0xff]   ;;  %v2692_v37 = vld [vmem:[#allocation10 + $0x260] ss:$16 sps:$4 sm:$0xff]   ;;  %v2806_v20 = vld [vmem:[#allocation10 + $0x208] ss:$16 sps:$4 sm:$0xff]  }
  0x4f   :  { %1060 = vmatpush1.bf16.msra.mxu0 %v2671_v23  ;;  %1101 = vmatpush1.bf16.msra.mxu1 %v2674_v25  ;;  %v2697_v38 = vld [vmem:[#allocation10 + $0x44] ss:$16 sps:$4 sm:$0xff]   ;;  %v2695_v40 = vld [vmem:[#allocation10 + $0x40] ss:$16 sps:$4 sm:$0xff]   ;;  %v109_v22 = vsub.s32 0, %v3355_v21  ;;  %v117_v23 = vsub.s32 2, %v3355_v21 }
  0x50   :  { %1061 = vmatprep.subr.bf16.mxu0 %v2679_v26  ;;  %1102 = vmatprep.subr.bf16.mxu1 %v2682_v27  ;;  %v2700_v39 = vld [vmem:[#allocation10 + $0x244] ss:$16 sps:$4 sm:$0xff]   ;;  %v2698_v41 = vld [vmem:[#allocation10 + $0x240] ss:$16 sps:$4 sm:$0xff]   ;;  %v113_v25 = vsub.s32 1, %v3355_v21  ;;  %v121_v26 = vsub.s32 3, %v3355_v21 }
  0x51   :  { %v2703_v42 = vld [vmem:[#allocation10 + $0x24] ss:$16 sps:$4 sm:$0xff]   ;;  %v2701_v44 = vld [vmem:[#allocation10 + $0x20] ss:$16 sps:$4 sm:$0xff]   ;;  %v110_v27 = vrot.slane %v105_v24, %v109_v22 }
  0x52   :  { %v2706_v43 = vld [vmem:[#allocation10 + $0x224] ss:$16 sps:$4 sm:$0xff]   ;;  %v2704_v45 = vld [vmem:[#allocation10 + $0x220] ss:$16 sps:$4 sm:$0xff]  }
  0x53   :  { %1062 = vmatpush1.bf16.msra.mxu0 %v2677_v28  ;;  %1103 = vmatpush1.bf16.msra.mxu1 %v2680_v29  ;;  %v2709_v46 = vld [vmem:[#allocation10 + $0x4] ss:$16 sps:$4 sm:$0xff]   ;;  %v2707_v48 = vld [vmem:[#allocation10] ss:$16 sps:$4 sm:$0xff]   ;;  %v118_v28 = vrot.slane %v105_v24, %v117_v23  ;;  %v114_v29 = vrot.slane %v105_v24, %v113_v25 }
  0x54   :  { %1063 = vmatprep.subr.bf16.mxu0 %v2685_v30  ;;  %1104 = vmatprep.subr.bf16.mxu1 %v2688_v31  ;;  %v2712_v47 = vld [vmem:[#allocation10 + $0x204] ss:$16 sps:$4 sm:$0xff]   ;;  %v2710_v49 = vld [vmem:[#allocation10 + $0x200] ss:$16 sps:$4 sm:$0xff]   ;;  %v122_v30 = vrot.slane %v105_v24, %v121_v26  ;;  %v3417_v24 = vld [vmem:[#allocation10 + $0x1ec] ss:$16 sps:$4 sm:$0xff]  }
  0x55   :  { %v2715_v50 = vld [vmem:[#allocation10 + $0x1e4] ss:$16 sps:$4 sm:$0xff]   ;;  %v2713_v52 = vld [vmem:[#allocation10 + $0x1e0] ss:$16 sps:$4 sm:$0xff]  }
  0x56   :  { %v2718_v51 = vld [vmem:[#allocation10 + $0x3e4] ss:$16 sps:$4 sm:$0xff]   ;;  %v2716_v53 = vld [vmem:[#allocation10 + $0x3e0] ss:$16 sps:$4 sm:$0xff]  }
  0x57   :  { %1064 = vmatpush1.bf16.msra.mxu0 %v2683_v32  ;;  %1105 = vmatpush1.bf16.msra.mxu1 %v2686_v33  ;;  %v2721_v54 = vld [vmem:[#allocation10 + $0x1c4] ss:$16 sps:$4 sm:$0xff]   ;;  %v2719_v56 = vld [vmem:[#allocation10 + $0x1c0] ss:$16 sps:$4 sm:$0xff]  }
  0x58   :  { %1065 = vmatprep.subr.bf16.mxu0 %v2691_v34  ;;  %1106 = vmatprep.subr.bf16.mxu1 %v2694_v35  ;;  %v2724_v55 = vld [vmem:[#allocation10 + $0x3c4] ss:$16 sps:$4 sm:$0xff]   ;;  %v2722_v57 = vld [vmem:[#allocation10 + $0x3c0] ss:$16 sps:$4 sm:$0xff]  }
  0x59   :  { %v2727_v58 = vld [vmem:[#allocation10 + $0x1a4] ss:$16 sps:$4 sm:$0xff]   ;;  %v2725_v60 = vld [vmem:[#allocation10 + $0x1a0] ss:$16 sps:$4 sm:$0xff]  }
  0x5a   :  { %v2730_v59 = vld [vmem:[#allocation10 + $0x3a4] ss:$16 sps:$4 sm:$0xff]   ;;  %v2728_v61 = vld [vmem:[#allocation10 + $0x3a0] ss:$16 sps:$4 sm:$0xff]  }
  0x5b   :  { %1066 = vmatpush1.bf16.msra.mxu0 %v2689_v36  ;;  %1107 = vmatpush1.bf16.msra.mxu1 %v2692_v37  ;;  %v2733_v62 = vld [vmem:[#allocation10 + $0x184] ss:$16 sps:$4 sm:$0xff]   ;;  %v2731_v0 = vld [vmem:[#allocation10 + $0x180] ss:$16 sps:$4 sm:$0xff]  }
  0x5c   :  { %1067 = vmatprep.subr.bf16.mxu0 %v2697_v38  ;;  %1108 = vmatprep.subr.bf16.mxu1 %v2700_v39  ;;  %v2736_v63 = vld [vmem:[#allocation10 + $0x384] ss:$16 sps:$4 sm:$0xff]   ;;  %v2734_v1 = vld [vmem:[#allocation10 + $0x380] ss:$16 sps:$4 sm:$0xff]  }
  0x5d   :  { %v2739_v2 = vld [vmem:[#allocation10 + $0x164] ss:$16 sps:$4 sm:$0xff]   ;;  %v2737_v4 = vld [vmem:[#allocation10 + $0x160] ss:$16 sps:$4 sm:$0xff]  }
  0x5e   :  { %v2742_v3 = vld [vmem:[#allocation10 + $0x364] ss:$16 sps:$4 sm:$0xff]   ;;  %v2740_v5 = vld [vmem:[#allocation10 + $0x360] ss:$16 sps:$4 sm:$0xff]  }
  0x5f   :  { %1068 = vmatpush1.bf16.msra.mxu0 %v2695_v40  ;;  %1109 = vmatpush1.bf16.msra.mxu1 %v2698_v41  ;;  %v2745_v6 = vld [vmem:[#allocation10 + $0x144] ss:$16 sps:$4 sm:$0xff]   ;;  %v2743_v8 = vld [vmem:[#allocation10 + $0x140] ss:$16 sps:$4 sm:$0xff]  }
  0x60   :  { %1069 = vmatprep.subr.bf16.mxu0 %v2703_v42  ;;  %1110 = vmatprep.subr.bf16.mxu1 %v2706_v43  ;;  %v2748_v7 = vld [vmem:[#allocation10 + $0x344] ss:$16 sps:$4 sm:$0xff]   ;;  %v2746_v9 = vld [vmem:[#allocation10 + $0x340] ss:$16 sps:$4 sm:$0xff]  }
  0x61   :  { %v2751_v10 = vld [vmem:[#allocation10 + $0x124] ss:$16 sps:$4 sm:$0xff]   ;;  %v2749_v12 = vld [vmem:[#allocation10 + $0x120] ss:$16 sps:$4 sm:$0xff]  }
  0x62   :  { %v2754_v11 = vld [vmem:[#allocation10 + $0x324] ss:$16 sps:$4 sm:$0xff]   ;;  %v2752_v13 = vld [vmem:[#allocation10 + $0x320] ss:$16 sps:$4 sm:$0xff]  }
  0x63   :  { %1070 = vmatpush1.bf16.msra.mxu0 %v2701_v44  ;;  %1111 = vmatpush1.bf16.msra.mxu1 %v2704_v45  ;;  %v2757_v14 = vld [vmem:[#allocation10 + $0x104] ss:$16 sps:$4 sm:$0xff]   ;;  %v2755_v16 = vld [vmem:[#allocation10 + $0x100] ss:$16 sps:$4 sm:$0xff]  }
  0x64   :  { %1071 = vmatprep.subr.bf16.mxu0 %v2709_v46  ;;  %1112 = vmatprep.subr.bf16.mxu1 %v2712_v47  ;;  %v2760_v15 = vld [vmem:[#allocation10 + $0x304] ss:$16 sps:$4 sm:$0xff]   ;;  %v2758_v17 = vld [vmem:[#allocation10 + $0x300] ss:$16 sps:$4 sm:$0xff]  }
  0x67   :  { %1072 = vmatpush1.bf16.msra.mxu0 %v2707_v48  ;;  %1113 = vmatpush1.bf16.msra.mxu1 %v2710_v49 }
  0x68   :  { %1073 = vmatprep.subr.bf16.mxu0 %v2715_v50  ;;  %1114 = vmatprep.subr.bf16.mxu1 %v2718_v51 }
  0x6b   :  { %1074 = vmatpush2.bf16.msra.mxu0 %v2713_v52  ;;  %1115 = vmatpush2.bf16.msra.mxu1 %v2716_v53  ;;  %v2761_v53 = vld [vmem:[#allocation10 + $0xe8] ss:$16 sps:$4 sm:$0xff]  }
  0x6c   :  { %1075 = vmatprep.subr.bf16.mxu0 %v2721_v54  ;;  %1116 = vmatprep.subr.bf16.mxu1 %v2724_v55  ;;  %v2764_v54 = vld [vmem:[#allocation10 + $0x2e8] ss:$16 sps:$4 sm:$0xff]  }
  0x6f   :  { %1076 = vmatpush2.bf16.msra.mxu0 %v2719_v56  ;;  %1117 = vmatpush2.bf16.msra.mxu1 %v2722_v57  ;;  %v2769_v57 = vld [vmem:[#allocation10 + $0xcc] ss:$16 sps:$4 sm:$0xff]  }
  0x70   :  { %1077 = vmatprep.subr.bf16.mxu0 %v2727_v58  ;;  %1118 = vmatprep.subr.bf16.mxu1 %v2730_v59  ;;  %v2772_v58 = vld [vmem:[#allocation10 + $0x2cc] ss:$16 sps:$4 sm:$0xff]   ;;  %v2767_v59 = vld [vmem:[#allocation10 + $0xc8] ss:$16 sps:$4 sm:$0xff]  }
  0x73   :  { %1078 = vmatpush2.bf16.msra.mxu0 %v2725_v60  ;;  %1119 = vmatpush2.bf16.msra.mxu1 %v2728_v61  ;;  %v2770_v60 = vld [vmem:[#allocation10 + $0x2c8] ss:$16 sps:$4 sm:$0xff]   ;;  %v2775_v61 = vld [vmem:[#allocation10 + $0xac] ss:$16 sps:$4 sm:$0xff]  }
  0x74   :  { %1079 = vmatprep.subr.bf16.mxu0 %v2733_v62  ;;  %1120 = vmatprep.subr.bf16.mxu1 %v2736_v63  ;;  %v2778_v62 = vld [vmem:[#allocation10 + $0x2ac] ss:$16 sps:$4 sm:$0xff]   ;;  %v2773_v63 = vld [vmem:[#allocation10 + $0xa8] ss:$16 sps:$4 sm:$0xff]  }
  0x77   :  { %1080 = vmatpush2.bf16.msra.mxu0 %v2731_v0  ;;  %1121 = vmatpush2.bf16.msra.mxu1 %v2734_v1  ;;  %v2776_v0 = vld [vmem:[#allocation10 + $0x2a8] ss:$16 sps:$4 sm:$0xff]   ;;  %v2781_v1 = vld [vmem:[#allocation10 + $0x8c] ss:$16 sps:$4 sm:$0xff]  }
  0x78   :  { %1081 = vmatprep.subr.bf16.mxu0 %v2739_v2  ;;  %1122 = vmatprep.subr.bf16.mxu1 %v2742_v3  ;;  %v2784_v2 = vld [vmem:[#allocation10 + $0x28c] ss:$16 sps:$4 sm:$0xff]   ;;  %v3391_v3 = vld [vmem:[#allocation10 + $0x88] ss:$16 sps:$4 sm:$0xff]  }
  0x7b   :  { %1082 = vmatpush2.bf16.msra.mxu0 %v2737_v4  ;;  %1123 = vmatpush2.bf16.msra.mxu1 %v2740_v5  ;;  %v2782_v4 = vld [vmem:[#allocation10 + $0x288] ss:$16 sps:$4 sm:$0xff]   ;;  %v3393_v5 = vld [vmem:[#allocation10 + $0x6c] ss:$16 sps:$4 sm:$0xff]  }
  0x7c   :  { %1083 = vmatprep.subr.bf16.mxu0 %v2745_v6  ;;  %1124 = vmatprep.subr.bf16.mxu1 %v2748_v7  ;;  %v2790_v6 = vld [vmem:[#allocation10 + $0x26c] ss:$16 sps:$4 sm:$0xff]   ;;  %v3396_v7 = vld [vmem:[#allocation10 + $0x68] ss:$16 sps:$4 sm:$0xff]  }
  0x7f   :  { %1084 = vmatpush2.bf16.msra.mxu0 %v2743_v8  ;;  %1125 = vmatpush2.bf16.msra.mxu1 %v2746_v9  ;;  %v2788_v8 = vld [vmem:[#allocation10 + $0x268] ss:$16 sps:$4 sm:$0xff]   ;;  %v3399_v9 = vld [vmem:[#allocation10 + $0x4c] ss:$16 sps:$4 sm:$0xff]  }
  0x80   :  { %1085 = vmatprep.subr.bf16.mxu0 %v2751_v10  ;;  %1126 = vmatprep.subr.bf16.mxu1 %v2754_v11  ;;  %v2796_v10 = vld [vmem:[#allocation10 + $0x24c] ss:$16 sps:$4 sm:$0xff]   ;;  %v3402_v11 = vld [vmem:[#allocation10 + $0x48] ss:$16 sps:$4 sm:$0xff]  }
  0x83   :  { %1086 = vmatpush2.bf16.msra.mxu0 %v2749_v12  ;;  %1127 = vmatpush2.bf16.msra.mxu1 %v2752_v13  ;;  %v2794_v12 = vld [vmem:[#allocation10 + $0x248] ss:$16 sps:$4 sm:$0xff]   ;;  %v3405_v13 = vld [vmem:[#allocation10 + $0x2c] ss:$16 sps:$4 sm:$0xff]  }
  0x84   :  { %1087 = vmatprep.subr.bf16.mxu0 %v2757_v14  ;;  %1128 = vmatprep.subr.bf16.mxu1 %v2760_v15  ;;  %v2802_v14 = vld [vmem:[#allocation10 + $0x22c] ss:$16 sps:$4 sm:$0xff]   ;;  %v3408_v15 = vld [vmem:[#allocation10 + $0x28] ss:$16 sps:$4 sm:$0xff]  }
  0x87   :  { %1088 = vmatpush2.bf16.msra.mxu0 %v2755_v16  ;;  %1129 = vmatpush2.bf16.msra.mxu1 %v2758_v17  ;;  %v2800_v16 = vld [vmem:[#allocation10 + $0x228] ss:$16 sps:$4 sm:$0xff]   ;;  %v3411_v17 = vld [vmem:[#allocation10 + $0xc] ss:$16 sps:$4 sm:$0xff]  }
  0x88   :  { %1139 = vmatprep.subr.bf16.mxu0 %v2763_v18  ;;  %1180 = vmatprep.subr.bf16.mxu1 %v2766_v19  ;;  %v2808_v18 = vld [vmem:[#allocation10 + $0x20c] ss:$16 sps:$4 sm:$0xff]   ;;  %v3414_v19 = vld [vmem:[#allocation10 + $0x8] ss:$16 sps:$4 sm:$0xff]  }
 0x109   :  { %v197_v31 = vpop.f32.mrf.mxu0  ;;  %v268_v32 = vpop.f32.mrf.mxu1 }
 0x10a   :  { %v198_v33 = vadd.f32 %v197_v31, %v110_v27  ;;  %v269_v34 = vadd.f32 %v268_v32, %v118_v28  ;;  %v2814_v27 = vld [vmem:[#allocation10 + $0x3ec] ss:$16 sps:$4 sm:$0xff]   ;;  %v3420_v28 = vld [vmem:[#allocation10 + $0x1e8] ss:$16 sps:$4 sm:$0xff]  }
 0x10b   :  { %v199_v35 = vpop.f32.mrf.mxu0  ;;  %v270_v36 = vpop.f32.mrf.mxu1  ;;  %v2820_v31 = vld [vmem:[#allocation10 + $0x3cc] ss:$16 sps:$4 sm:$0xff]   ;;  %v3426_v32 = vld [vmem:[#allocation10 + $0x1c8] ss:$16 sps:$4 sm:$0xff]  }
 0x10c   :  { %v273_v37 = vmul.f32 0.2, %v198_v33  ;;  %v275_v38 = vmul.f32 0.2, %v269_v34  ;;  %v200_v39 = vadd.f32 %v199_v35, %v114_v29  ;;  %v271_v40 = vadd.f32 %v270_v36, %v122_v30  ;;  %v2812_v29 = vld [vmem:[#allocation10 + $0x3e8] ss:$16 sps:$4 sm:$0xff]  }
 0x10d   :  { %v3423_v30 = vld [vmem:[#allocation10 + $0x1cc] ss:$16 sps:$4 sm:$0xff]   ;;  %v3432_v36 = vld [vmem:[#allocation10 + $0x1a8] ss:$16 sps:$4 sm:$0xff]  }
 0x10e   :  { %v3369_v41 = vmax.f32 %v198_v33, %v273_v37  ;;  %v3371_v42 = vmax.f32 %v269_v34, %v275_v38  ;;  %v274_v43 = vmul.f32 0.2, %v200_v39  ;;  %v276_v44 = vmul.f32 0.2, %v271_v40  ;;  %v2818_v33 = vld [vmem:[#allocation10 + $0x3c8] ss:$16 sps:$4 sm:$0xff]  }
 0x10f   :  { %v3429_v34 = vld [vmem:[#allocation10 + $0x1ac] ss:$16 sps:$4 sm:$0xff]   ;;  %v2824_v37 = vld [vmem:[#allocation10 + $0x3a8] ss:$16 sps:$4 sm:$0xff]  }
 0x110   :  { %v3373_v45 = vmax.f32 %v200_v39, %v274_v43  ;;  %v3375_v46 = vmax.f32 %v271_v40, %v276_v44  ;;  %v281_v47 = vmul.f32 %v3369_v41, %v3369_v41  ;;  %v283_v48 = vmul.f32 %v3371_v42, %v3371_v42  ;;  %v2826_v35 = vld [vmem:[#allocation10 + $0x3ac] ss:$16 sps:$4 sm:$0xff]   ;;  %v3438_v40 = vld [vmem:[#allocation10 + $0x188] ss:$16 sps:$4 sm:$0xff]  }
 0x111   :  { %v3435_v38 = vld [vmem:[#allocation10 + $0x18c] ss:$16 sps:$4 sm:$0xff]   ;;  %v2830_v43 = vld [vmem:[#allocation10 + $0x388] ss:$16 sps:$4 sm:$0xff]  }
 0x112   :  { %v282_v49 = vmul.f32 %v3373_v45, %v3373_v45  ;;  %v284_v50 = vmul.f32 %v3375_v46, %v3375_v46  ;;  %v3385_v55 = vpack.c.bf16 %v281_v47, %v281_v47  ;;  %v3387_v56 = vpack.c.bf16 %v283_v48, %v283_v48  ;;  %v2832_v39 = vld [vmem:[#allocation10 + $0x38c] ss:$16 sps:$4 sm:$0xff]   ;;  %v3446_v48 = vld [vmem:[#allocation10 + $0x168] ss:$16 sps:$4 sm:$0xff]  }
 0x113   :  { %v3441_v44 = vld [vmem:[#allocation10 + $0x16c] ss:$16 sps:$4 sm:$0xff]  }
 0x114   :  { %v286_v51 = vpack.c.bf16 %v282_v49, %v282_v49  ;;  %v288_v52 = vpack.c.bf16 %v284_v50, %v284_v50  ;;  %v3443_v47 = vld [vmem:[#allocation10 + $0x36c] ss:$16 sps:$4 sm:$0xff]   ;;  %v3448_v49 = vld [vmem:[#allocation10 + $0x368] ss:$16 sps:$4 sm:$0xff]  }
 0x115   :  { %v3452_v50 = vld [vmem:[#allocation10 + $0x14c] ss:$16 sps:$4 sm:$0xff]  }
 0x116   :  { %1089 = vmatprep.mubr.bf16.mxu0 %v286_v51  ;;  %1130 = vmatprep.mubr.bf16.mxu1 %v288_v52 }
 0x117   :  { %1090 = vmatmul.mubr.bf16.vlgmr.msra.gmra.mxu0 %v3385_v55  ;;  %1131 = vmatmul.mubr.bf16.vlgmr.msra.gmra.mxu1 %v3387_v56 }
 0x118   :  { %1140 = vmatpush1.bf16.msra.mxu0 %v2761_v53  ;;  %1181 = vmatpush1.bf16.msra.mxu1 %v2764_v54  ;;  %v3460_v53 = vld [vmem:[#allocation10 + $0x348] ss:$16 sps:$4 sm:$0xff]   ;;  %v3464_v54 = vld [vmem:[#allocation10 + $0x12c] ss:$16 sps:$4 sm:$0xff]  }
 0x119   :  { %1171 = vmatprep.mubr.bf16.mxu0 %v286_v51  ;;  %1212 = vmatprep.mubr.bf16.mxu1 %v288_v52  ;;  %v3454_v51 = vld [vmem:[#allocation10 + $0x34c] ss:$16 sps:$4 sm:$0xff]   ;;  %v3458_v52 = vld [vmem:[#allocation10 + $0x148] ss:$16 sps:$4 sm:$0xff]  }
 0x11a   :  { %1141 = vmatprep.subr.bf16.mxu0 %v2769_v57  ;;  %1182 = vmatprep.subr.bf16.mxu1 %v2772_v58  ;;  %v3466_v57 = vld [vmem:[#allocation10 + $0x32c] ss:$16 sps:$4 sm:$0xff]   ;;  %v3470_v58 = vld [vmem:[#allocation10 + $0x128] ss:$16 sps:$4 sm:$0xff]  }
 0x11c   :  { %1142 = vmatpush1.bf16.msra.mxu0 %v2767_v59  ;;  %1183 = vmatpush1.bf16.msra.mxu1 %v2770_v60  ;;  %v3472_v59 = vld [vmem:[#allocation10 + $0x328] ss:$16 sps:$4 sm:$0xff]   ;;  %v3476_v60 = vld [vmem:[#allocation10 + $0x10c] ss:$16 sps:$4 sm:$0xff]  }
 0x11d   :  { %1143 = vmatprep.subr.bf16.mxu0 %v2775_v61  ;;  %1184 = vmatprep.subr.bf16.mxu1 %v2778_v62  ;;  %v3478_v61 = vld [vmem:[#allocation10 + $0x30c] ss:$16 sps:$4 sm:$0xff]   ;;  %v3482_v62 = vld [vmem:[#allocation10 + $0x108] ss:$16 sps:$4 sm:$0xff]  }
 0x120   :  { %1144 = vmatpush1.bf16.msra.mxu0 %v2773_v63  ;;  %1185 = vmatpush1.bf16.msra.mxu1 %v2776_v0  ;;  %v3484_v63 = vld [vmem:[#allocation10 + $0x308] ss:$16 sps:$4 sm:$0xff]   ;;  %v2859_v0 = vld [vmem:[#allocation8 + $0xe4] ss:$16 sps:$4 sm:$0xff]  }
 0x121   :  { %1145 = vmatprep.subr.bf16.mxu0 %v2781_v1  ;;  %1186 = vmatprep.subr.bf16.mxu1 %v2784_v2  ;;  %v2857_v1 = vld [vmem:[#allocation8 + $0xe0] ss:$16 sps:$4 sm:$0xff]   ;;  %v2862_v2 = vld [vmem:[#allocation8 + $0xc4] ss:$16 sps:$4 sm:$0xff]  }
 0x124   :  { %1146 = vmatpush1.bf16.msra.mxu0 %v3391_v3  ;;  %1187 = vmatpush1.bf16.msra.mxu1 %v2782_v4  ;;  %v2860_v4 = vld [vmem:[#allocation8 + $0xc0] ss:$16 sps:$4 sm:$0xff]  }
 0x125   :  { %1147 = vmatprep.subr.bf16.mxu0 %v3393_v5  ;;  %1188 = vmatprep.subr.bf16.mxu1 %v2790_v6  ;;  %v2865_v6 = vld [vmem:[#allocation8 + $0xa4] ss:$16 sps:$4 sm:$0xff]  }
 0x128   :  { %1148 = vmatpush1.bf16.msra.mxu0 %v3396_v7  ;;  %1189 = vmatpush1.bf16.msra.mxu1 %v2788_v8  ;;  %v2863_v8 = vld [vmem:[#allocation8 + $0xa0] ss:$16 sps:$4 sm:$0xff]  }
 0x129   :  { %1149 = vmatprep.subr.bf16.mxu0 %v3399_v9  ;;  %1190 = vmatprep.subr.bf16.mxu1 %v2796_v10  ;;  %v2868_v10 = vld [vmem:[#allocation8 + $0x84] ss:$16 sps:$4 sm:$0xff]  }
 0x12c   :  { %1150 = vmatpush1.bf16.msra.mxu0 %v3402_v11  ;;  %1191 = vmatpush1.bf16.msra.mxu1 %v2794_v12  ;;  %v2866_v12 = vld [vmem:[#allocation8 + $0x80] ss:$16 sps:$4 sm:$0xff]  }
 0x12d   :  { %1151 = vmatprep.subr.bf16.mxu0 %v3405_v13  ;;  %1192 = vmatprep.subr.bf16.mxu1 %v2802_v14  ;;  %v2905_v14 = vld [vmem:[#allocation8 + $0x2e0] ss:$16 sps:$4 sm:$0xff]  }
 0x130   :  { %1152 = vmatpush1.bf16.msra.mxu0 %v3408_v15  ;;  %1193 = vmatpush1.bf16.msra.mxu1 %v2800_v16  ;;  %v2871_v16 = vld [vmem:[#allocation8 + $0x64] ss:$16 sps:$4 sm:$0xff]  }
 0x131   :  { %1153 = vmatprep.subr.bf16.mxu0 %v3411_v17  ;;  %1194 = vmatprep.subr.bf16.mxu1 %v2808_v18  ;;  %v2907_v18 = vld [vmem:[#allocation8 + $0x2e4] ss:$16 sps:$4 sm:$0xff]  }
 0x134   :  { %1154 = vmatpush1.bf16.msra.mxu0 %v3414_v19  ;;  %1195 = vmatpush1.bf16.msra.mxu1 %v2806_v20  ;;  %v2869_v20 = vld [vmem:[#allocation8 + $0x60] ss:$16 sps:$4 sm:$0xff]  }
 0x135   :  { %1155 = vmatprep.subr.bf16.mxu0 %v3417_v24  ;;  %1196 = vmatprep.subr.bf16.mxu1 %v2814_v27  ;;  %v2877_v27 = vld [vmem:[#allocation8 + $0x24] ss:$16 sps:$4 sm:$0xff]  }
 0x138   :  { %1156 = vmatpush2.bf16.msra.mxu0 %v3420_v28  ;;  %1197 = vmatpush2.bf16.msra.mxu1 %v2812_v29  ;;  %v2875_v29 = vld [vmem:[#allocation8 + $0x20] ss:$16 sps:$4 sm:$0xff]  }
 0x139   :  { %1157 = vmatprep.subr.bf16.mxu0 %v3423_v30  ;;  %1198 = vmatprep.subr.bf16.mxu1 %v2820_v31  ;;  %v2880_v31 = vld [vmem:[#allocation8 + $0x4] ss:$16 sps:$4 sm:$0xff]  }
 0x13c   :  { %1158 = vmatpush2.bf16.msra.mxu0 %v3426_v32  ;;  %1199 = vmatpush2.bf16.msra.mxu1 %v2818_v33  ;;  %v2878_v33 = vld [vmem:[#allocation8] ss:$16 sps:$4 sm:$0xff]  }
 0x13d   :  { %1159 = vmatprep.subr.bf16.mxu0 %v3429_v34  ;;  %1200 = vmatprep.subr.bf16.mxu1 %v2826_v35  ;;  %v2883_v35 = vld [vmem:[#allocation8 + $0x1e4] ss:$16 sps:$4 sm:$0xff]  }
 0x140   :  { %1160 = vmatpush2.bf16.msra.mxu0 %v3432_v36  ;;  %1201 = vmatpush2.bf16.msra.mxu1 %v2824_v37  ;;  %v2911_v37 = vld [vmem:[#allocation8 + $0x2c0] ss:$16 sps:$4 sm:$0xff]  }
 0x141   :  { %1161 = vmatprep.subr.bf16.mxu0 %v3435_v38  ;;  %1202 = vmatprep.subr.bf16.mxu1 %v2832_v39  ;;  %v2913_v39 = vld [vmem:[#allocation8 + $0x2c4] ss:$16 sps:$4 sm:$0xff]  }
 0x144   :  { %1162 = vmatpush2.bf16.msra.mxu0 %v3438_v40  ;;  %1203 = vmatpush2.bf16.msra.mxu1 %v2830_v43  ;;  %v2881_v43 = vld [vmem:[#allocation8 + $0x1e0] ss:$16 sps:$4 sm:$0xff]  }
 0x145   :  { %1163 = vmatprep.subr.bf16.mxu0 %v3441_v44  ;;  %1204 = vmatprep.subr.bf16.mxu1 %v3443_v47 }
 0x148   :  { %1164 = vmatpush2.bf16.msra.mxu0 %v3446_v48  ;;  %1205 = vmatpush2.bf16.msra.mxu1 %v3448_v49 }
 0x149   :  { %1165 = vmatprep.subr.bf16.mxu0 %v3452_v50  ;;  %1206 = vmatprep.subr.bf16.mxu1 %v3454_v51 }
 0x14c   :  { %1166 = vmatpush2.bf16.msra.mxu0 %v3458_v52  ;;  %1207 = vmatpush2.bf16.msra.mxu1 %v3460_v53 }
 0x14d   :  { %1167 = vmatprep.subr.bf16.mxu0 %v3464_v54  ;;  %1208 = vmatprep.subr.bf16.mxu1 %v3466_v57 }
 0x150   :  { %1168 = vmatpush2.bf16.msra.mxu0 %v3470_v58  ;;  %1209 = vmatpush2.bf16.msra.mxu1 %v3472_v59 }
 0x151   :  { %1169 = vmatprep.subr.bf16.mxu0 %v3476_v60  ;;  %1210 = vmatprep.subr.bf16.mxu1 %v3478_v61 }
 0x154   :  { %1170 = vmatpush2.bf16.msra.mxu0 %v3482_v62  ;;  %1211 = vmatpush2.bf16.msra.mxu1 %v3484_v63 }
 0x155   :  { %2023 = vmatprep.subr.bf16.mxu0 %v2859_v0  ;;  %2064 = vmatprep.subr.bf16.mxu1 %v2907_v18  ;;  %v2886_v0 = vld [vmem:[#allocation8 + $0x1c4] ss:$16 sps:$4 sm:$0xff]  }
 0x156   :  { %v2931_v18 = vld [vmem:[#allocation8 + $0x264] ss:$16 sps:$4 sm:$0xff]  }
 0x157   :  { %1172 = vmatmul.mubr.bf16.vlgmr.msra.gmra.mxu0 %v3385_v55  ;;  %1213 = vmatmul.mubr.bf16.vlgmr.msra.gmra.mxu1 %v3387_v56  ;;  %v2874_v55 = vld [vmem:[#allocation8 + $0x44] ss:$16 sps:$4 sm:$0xff]   ;;  %v2872_v56 = vld [vmem:[#allocation8 + $0x40] ss:$16 sps:$4 sm:$0xff]  }
 0x158   :  { %2024 = vmatpush1.bf16.msra.mxu0 %v2857_v1  ;;  %2065 = vmatpush1.bf16.msra.mxu1 %v2905_v14  ;;  %v2917_v1 = vld [vmem:[#allocation8 + $0x2a0] ss:$16 sps:$4 sm:$0xff]   ;;  %v2892_v14 = vld [vmem:[#allocation8 + $0x184] ss:$16 sps:$4 sm:$0xff]  }
 0x159   :  { %2025 = vmatprep.subr.bf16.mxu0 %v2862_v2  ;;  %2066 = vmatprep.subr.bf16.mxu1 %v2913_v39  ;;  %v2919_v2 = vld [vmem:[#allocation8 + $0x2a4] ss:$16 sps:$4 sm:$0xff]  }
 0x15a   :  { %v2901_v39 = vld [vmem:[#allocation8 + $0x124] ss:$16 sps:$4 sm:$0xff]  }
 0x15c   :  { %2026 = vmatpush1.bf16.msra.mxu0 %v2860_v4  ;;  %2067 = vmatpush1.bf16.msra.mxu1 %v2911_v37  ;;  %v2884_v4 = vld [vmem:[#allocation8 + $0x1c0] ss:$16 sps:$4 sm:$0xff]  }
 0x15d   :  { %2027 = vmatprep.subr.bf16.mxu0 %v2865_v6  ;;  %2068 = vmatprep.subr.bf16.mxu1 %v2919_v2  ;;  %v2889_v6 = vld [vmem:[#allocation8 + $0x1a4] ss:$16 sps:$4 sm:$0xff]   ;;  %v2896_v37 = vld [vmem:[#allocation8 + $0x140] ss:$16 sps:$4 sm:$0xff]  }
 0x15e   :  { %v2904_v2 = vld [vmem:[#allocation8 + $0x104] ss:$16 sps:$4 sm:$0xff]  }
 0x160   :  { %2028 = vmatpush1.bf16.msra.mxu0 %v2863_v8  ;;  %2069 = vmatpush1.bf16.msra.mxu1 %v2917_v1  ;;  %v2923_v8 = vld [vmem:[#allocation8 + $0x280] ss:$16 sps:$4 sm:$0xff]  }
 0x161   :  { %2029 = vmatprep.subr.bf16.mxu0 %v2868_v10  ;;  %v2925_v10 = vld [vmem:[#allocation8 + $0x284] ss:$16 sps:$4 sm:$0xff]   ;;  %v2899_v1 = vld [vmem:[#allocation8 + $0x120] ss:$16 sps:$4 sm:$0xff]  }
 0x162   :  { %2070 = vmatprep.subr.bf16.mxu1 %v2925_v10  ;;  %v2910_v10 = vld [vmem:[#allocation8 + $0xec] ss:$16 sps:$4 sm:$0xff]  }
 0x164   :  { %2030 = vmatpush1.bf16.msra.mxu0 %v2866_v12  ;;  %v2887_v12 = vld [vmem:[#allocation8 + $0x1a0] ss:$16 sps:$4 sm:$0xff]   ;;  %2071 = vmatpush1.bf16.msra.mxu1 %v2923_v8 }
 0x165   :  { %2031 = vmatprep.subr.bf16.mxu0 %v2871_v16  ;;  %v2929_v16 = vld [vmem:[#allocation8 + $0x260] ss:$16 sps:$4 sm:$0xff]   ;;  %2072 = vmatprep.subr.bf16.mxu1 %v2931_v18 }
 0x166   :  { %v2902_v8 = vld [vmem:[#allocation8 + $0x100] ss:$16 sps:$4 sm:$0xff]  }
 0x167   :  { %v2965_v18 = vld [vmem:[#allocation8 + $0x3a0] ss:$16 sps:$4 sm:$0xff]  }
 0x168   :  { %2032 = vmatpush1.bf16.msra.mxu0 %v2869_v20  ;;  %v2890_v20 = vld [vmem:[#allocation8 + $0x180] ss:$16 sps:$4 sm:$0xff]   ;;  %2073 = vmatpush1.bf16.msra.mxu1 %v2929_v16  ;;  %v2967_v16 = vld [vmem:[#allocation8 + $0x3a4] ss:$16 sps:$4 sm:$0xff]  }
 0x169   :  { %2033 = vmatprep.subr.bf16.mxu0 %v2874_v55  ;;  %v2895_v55 = vld [vmem:[#allocation8 + $0x164] ss:$16 sps:$4 sm:$0xff]  }
 0x16c   :  { %2034 = vmatpush1.bf16.msra.mxu0 %v2872_v56  ;;  %v2935_v56 = vld [vmem:[#allocation8 + $0x240] ss:$16 sps:$4 sm:$0xff]  }
 0x16d   :  { %2035 = vmatprep.subr.bf16.mxu0 %v2877_v27  ;;  %v2937_v27 = vld [vmem:[#allocation8 + $0x244] ss:$16 sps:$4 sm:$0xff]  }
 0x16e   :  { %2074 = vmatprep.subr.bf16.mxu1 %v2937_v27  ;;  %v2979_v27 = vld [vmem:[#allocation8 + $0x364] ss:$16 sps:$4 sm:$0xff]  }
 0x16f   :  { %2075 = vmatpush1.bf16.msra.mxu1 %v2935_v56  ;;  %v2977_v56 = vld [vmem:[#allocation8 + $0x360] ss:$16 sps:$4 sm:$0xff]  }
 0x170   :  { %2036 = vmatpush1.bf16.msra.mxu0 %v2875_v29  ;;  %v2893_v29 = vld [vmem:[#allocation8 + $0x160] ss:$16 sps:$4 sm:$0xff]  }
 0x171   :  { %2037 = vmatprep.subr.bf16.mxu0 %v2880_v31  ;;  %v2898_v31 = vld [vmem:[#allocation8 + $0x144] ss:$16 sps:$4 sm:$0xff]  }
 0x174   :  { %2038 = vmatpush1.bf16.msra.mxu0 %v2878_v33  ;;  %v2941_v33 = vld [vmem:[#allocation8 + $0x220] ss:$16 sps:$4 sm:$0xff]  }
 0x175   :  { %2039 = vmatprep.subr.bf16.mxu0 %v2883_v35  ;;  %v2943_v35 = vld [vmem:[#allocation8 + $0x224] ss:$16 sps:$4 sm:$0xff]  }
 0x176   :  { %2076 = vmatprep.subr.bf16.mxu1 %v2943_v35  ;;  %v2991_v35 = vld [vmem:[#allocation8 + $0x324] ss:$16 sps:$4 sm:$0xff]  }
 0x177   :  { %2077 = vmatpush1.bf16.msra.mxu1 %v2941_v33  ;;  %v2989_v33 = vld [vmem:[#allocation8 + $0x320] ss:$16 sps:$4 sm:$0xff]  }
 0x178   :  { %2040 = vmatpush2.bf16.msra.mxu0 %v2881_v43  ;;  %v2947_v43 = vld [vmem:[#allocation8 + $0x200] ss:$16 sps:$4 sm:$0xff]  }
 0x179   :  { %2041 = vmatprep.subr.bf16.mxu0 %v2886_v0  ;;  %v2949_v0 = vld [vmem:[#allocation8 + $0x204] ss:$16 sps:$4 sm:$0xff]  }
 0x17a   :  { %2078 = vmatprep.subr.bf16.mxu1 %v2949_v0 }
 0x17b   :  { %2079 = vmatpush1.bf16.msra.mxu1 %v2947_v43  ;;  %v3003_v43 = vld [vmem:[#allocation8 + $0x2ec] ss:$16 sps:$4 sm:$0xff]  }
 0x17c   :  { %2042 = vmatpush2.bf16.msra.mxu0 %v2884_v4  ;;  %v2953_v4 = vld [vmem:[#allocation8 + $0x3e0] ss:$16 sps:$4 sm:$0xff]  }
 0x17d   :  { %2043 = vmatprep.subr.bf16.mxu0 %v2889_v6  ;;  %v2955_v6 = vld [vmem:[#allocation8 + $0x3e4] ss:$16 sps:$4 sm:$0xff]  }
 0x17e   :  { %2080 = vmatprep.subr.bf16.mxu1 %v2955_v6 }
 0x17f   :  { %2081 = vmatpush2.bf16.msra.mxu1 %v2953_v4 }
 0x180   :  { %2044 = vmatpush2.bf16.msra.mxu0 %v2887_v12  ;;  %v2959_v12 = vld [vmem:[#allocation8 + $0x3c0] ss:$16 sps:$4 sm:$0xff]  }
 0x181   :  { %2045 = vmatprep.subr.bf16.mxu0 %v2892_v14  ;;  %v2961_v14 = vld [vmem:[#allocation8 + $0x3c4] ss:$16 sps:$4 sm:$0xff]  }
 0x182   :  { %2082 = vmatprep.subr.bf16.mxu1 %v2961_v14 }
 0x183   :  { %2083 = vmatpush2.bf16.msra.mxu1 %v2959_v12 }
 0x184   :  { %2046 = vmatpush2.bf16.msra.mxu0 %v2890_v20  ;;  %2084 = vmatprep.subr.bf16.mxu1 %v2967_v16  ;;  %v2973_v20 = vld [vmem:[#allocation8 + $0x384] ss:$16 sps:$4 sm:$0xff]  }
 0x185   :  { %2047 = vmatprep.subr.bf16.mxu0 %v2895_v55  ;;  %v2971_v55 = vld [vmem:[#allocation8 + $0x380] ss:$16 sps:$4 sm:$0xff]  }
 0x187   :  { %2085 = vmatpush2.bf16.msra.mxu1 %v2965_v18 }
 0x188   :  { %2048 = vmatpush2.bf16.msra.mxu0 %v2893_v29  ;;  %2086 = vmatprep.subr.bf16.mxu1 %v2973_v20  ;;  %v2983_v29 = vld [vmem:[#allocation8 + $0x340] ss:$16 sps:$4 sm:$0xff]  }
 0x189   :  { %2049 = vmatprep.subr.bf16.mxu0 %v2898_v31  ;;  %v2985_v31 = vld [vmem:[#allocation8 + $0x344] ss:$16 sps:$4 sm:$0xff]  }
 0x18b   :  { %2087 = vmatpush2.bf16.msra.mxu1 %v2971_v55 }
 0x18c   :  { %2050 = vmatpush2.bf16.msra.mxu0 %v2896_v37  ;;  %2088 = vmatprep.subr.bf16.mxu1 %v2979_v27  ;;  %v2995_v37 = vld [vmem:[#allocation8 + $0x300] ss:$16 sps:$4 sm:$0xff]  }
 0x18d   :  { %2051 = vmatprep.subr.bf16.mxu0 %v2901_v39  ;;  %v2997_v39 = vld [vmem:[#allocation8 + $0x304] ss:$16 sps:$4 sm:$0xff]  }
 0x18f   :  { %2089 = vmatpush2.bf16.msra.mxu1 %v2977_v56 }
 0x190   :  { %2052 = vmatpush2.bf16.msra.mxu0 %v2899_v1  ;;  %2090 = vmatprep.subr.bf16.mxu1 %v2985_v31 }
 0x191   :  { %2053 = vmatprep.subr.bf16.mxu0 %v2904_v2 }
 0x193   :  { %2091 = vmatpush2.bf16.msra.mxu1 %v2983_v29 }
 0x194   :  { %2054 = vmatpush2.bf16.msra.mxu0 %v2902_v8  ;;  %2092 = vmatprep.subr.bf16.mxu1 %v2991_v35 }
 0x195   :  { %2105 = vmatprep.subr.bf16.mxu0 %v2910_v10 }
 0x197   :  { %2093 = vmatpush2.bf16.msra.mxu1 %v2989_v33  ;;  %v2908_v33 = vld [vmem:[#allocation8 + $0xe8] ss:$16 sps:$4 sm:$0xff]  }
 0x198   :  { %2094 = vmatprep.subr.bf16.mxu1 %v2997_v39  ;;  %v2914_v39 = vld [vmem:[#allocation8 + $0xc8] ss:$16 sps:$4 sm:$0xff]  }
 0x19b   :  { %2095 = vmatpush2.bf16.msra.mxu1 %v2995_v37  ;;  %v2916_v37 = vld [vmem:[#allocation8 + $0xcc] ss:$16 sps:$4 sm:$0xff]  }
 0x19c   :  { %2146 = vmatprep.subr.bf16.mxu1 %v3003_v43  ;;  %v2922_v43 = vld [vmem:[#allocation8 + $0xac] ss:$16 sps:$4 sm:$0xff]  }
 0x1d7   :  { %v1091_v0 = vpop.f32.mrf.mxu0  ;;  %v1132_v1 = vpop.f32.mrf.mxu1 }
 0x1d8   :  { %v1092_v2 = vadd.f32 1e-08, %v1091_v0  ;;  %v2920_v0 = vld [vmem:[#allocation8 + $0xa8] ss:$16 sps:$4 sm:$0xff]  }
 0x1d9   :  { %v1093_v4 = vpop.f32.mrf.mxu0  ;;  %v1134_v6 = vpop.f32.mrf.mxu1 }
 0x1da   :  { %v1133_v8 = vadd.f32 %v1132_v1, %v1092_v2  ;;  %v1094_v10 = vadd.f32 1e-08, %v1093_v4  ;;  %v2928_v1 = vld [vmem:[#allocation8 + $0x8c] ss:$16 sps:$4 sm:$0xff]   ;;  %v2932_v2 = vld [vmem:[#allocation8 + $0x68] ss:$16 sps:$4 sm:$0xff]  }
 0x1db   :  { %v1095_v12 = vpop.f32.mrf.mxu0  ;;  %v1136_v14 = vpop.f32.mrf.mxu1  ;;  %v2940_v4 = vld [vmem:[#allocation8 + $0x4c] ss:$16 sps:$4 sm:$0xff]  }
 0x1dc   :  { %3049 = vrsqrt.f32 %v1133_v8  ;;  %v1135_v16 = vadd.f32 %v1134_v6, %v1094_v10  ;;  %v2938_v6 = vld [vmem:[#allocation8 + $0x48] ss:$16 sps:$4 sm:$0xff]   ;;  %v2946_v8 = vld [vmem:[#allocation8 + $0x2c] ss:$16 sps:$4 sm:$0xff]  }
 0x1dd   :  { %v1096_v18 = vpop.f32.mrf.mxu0  ;;  %v1137_v20 = vpop.f32.mrf.mxu1  ;;  %v2944_v10 = vld [vmem:[#allocation8 + $0x28] ss:$16 sps:$4 sm:$0xff]   ;;  %v2952_v12 = vld [vmem:[#allocation8 + $0xc] ss:$16 sps:$4 sm:$0xff]  }
 0x1de   :  { %3051 = vrsqrt.f32 %v1135_v16  ;;  %v2950_v14 = vld [vmem:[#allocation8 + $0x8] ss:$16 sps:$4 sm:$0xff]   ;;  %v2958_v16 = vld [vmem:[#allocation8 + $0x1ec] ss:$16 sps:$4 sm:$0xff]  }
 0x1df   :  { %v2956_v18 = vld [vmem:[#allocation8 + $0x1e8] ss:$16 sps:$4 sm:$0xff]   ;;  %v2964_v20 = vld [vmem:[#allocation8 + $0x1cc] ss:$16 sps:$4 sm:$0xff]  }
 0x1e9   :  { %v3050_v55 = vpop.eup %3049 }
 0x1ea   :  { %v1225_v27 = vmul.f32 %v3050_v55, %v3369_v41  ;;  %v2926_v41 = vld [vmem:[#allocation8 + $0x88] ss:$16 sps:$4 sm:$0xff]  }
 0x1eb   :  { %v3052_v56 = vpop.eup %3051  ;;  %v2962_v55 = vld [vmem:[#allocation8 + $0x1c8] ss:$16 sps:$4 sm:$0xff]  }
 0x1ec   :  { %v1226_v29 = vmul.f32 %v3052_v56, %v3373_v45  ;;  %v3494_v35 = vpack.c.bf16 %v1225_v27, %v1225_v27  ;;  %v2934_v45 = vld [vmem:[#allocation8 + $0x6c] ss:$16 sps:$4 sm:$0xff]   ;;  %v2968_v27 = vld [vmem:[#allocation8 + $0x1a8] ss:$16 sps:$4 sm:$0xff]  }
 0x1ed   :  { %v2970_v56 = vld [vmem:[#allocation8 + $0x1ac] ss:$16 sps:$4 sm:$0xff]  }
 0x1ee   :  { %v1230_v31 = vpack.c.bf16 %v1226_v29, %v1226_v29 }
 0x1f0   :  { %2055 = vmatprep.mubr.bf16.mxu0 %v1230_v31 }
 0x1f1   :  { %2056 = vmatmul.mubr.bf16.vlgmr.msra.gmra.mxu0 %v3494_v35 }
 0x1f2   :  { %2106 = vmatpush1.bf16.msra.mxu0 %v2908_v33  ;;  %2137 = vmatprep.mubr.bf16.mxu0 %v1230_v31  ;;  %v2976_v33 = vld [vmem:[#allocation8 + $0x18c] ss:$16 sps:$4 sm:$0xff]  }
 0x1f3   :  { %2107 = vmatprep.subr.bf16.mxu0 %v2916_v37 }
 0x1f6   :  { %2108 = vmatpush1.bf16.msra.mxu0 %v2914_v39 }
 0x1f7   :  { %2109 = vmatprep.subr.bf16.mxu0 %v2922_v43 }
 0x1fa   :  { %2110 = vmatpush1.bf16.msra.mxu0 %v2920_v0 }
 0x1fb   :  { %2111 = vmatprep.subr.bf16.mxu0 %v2928_v1 }
 0x1fe   :  { %2112 = vmatpush1.bf16.msra.mxu0 %v2926_v41  ;;  %v2974_v41 = vld [vmem:[#allocation8 + $0x188] ss:$16 sps:$4 sm:$0xff]  }
 0x1ff   :  { %2113 = vmatprep.subr.bf16.mxu0 %v2934_v45 }
 0x202   :  { %2114 = vmatpush1.bf16.msra.mxu0 %v2932_v2 }
 0x203   :  { %2115 = vmatprep.subr.bf16.mxu0 %v2940_v4  ;;  %v2982_v4 = vld [vmem:[#allocation8 + $0x16c] ss:$16 sps:$4 sm:$0xff]  }
 0x206   :  { %2116 = vmatpush1.bf16.msra.mxu0 %v2938_v6 }
 0x207   :  { %2117 = vmatprep.subr.bf16.mxu0 %v2946_v8 }
 0x20a   :  { %2118 = vmatpush1.bf16.msra.mxu0 %v2944_v10 }
 0x20b   :  { %2119 = vmatprep.subr.bf16.mxu0 %v2952_v12  ;;  %v2980_v12 = vld [vmem:[#allocation8 + $0x168] ss:$16 sps:$4 sm:$0xff]  }
 0x20e   :  { %2120 = vmatpush1.bf16.msra.mxu0 %v2950_v14  ;;  %v2988_v14 = vld [vmem:[#allocation8 + $0x14c] ss:$16 sps:$4 sm:$0xff]  }
 0x20f   :  { %2121 = vmatprep.subr.bf16.mxu0 %v2958_v16  ;;  %v2986_v16 = vld [vmem:[#allocation8 + $0x148] ss:$16 sps:$4 sm:$0xff]  }
 0x212   :  { %2122 = vmatpush2.bf16.msra.mxu0 %v2956_v18  ;;  %v2994_v18 = vld [vmem:[#allocation8 + $0x12c] ss:$16 sps:$4 sm:$0xff]  }
 0x213   :  { %2123 = vmatprep.subr.bf16.mxu0 %v2964_v20  ;;  %v2992_v20 = vld [vmem:[#allocation8 + $0x128] ss:$16 sps:$4 sm:$0xff]  }
 0x216   :  { %2124 = vmatpush2.bf16.msra.mxu0 %v2962_v55  ;;  %v3000_v55 = vld [vmem:[#allocation8 + $0x10c] ss:$16 sps:$4 sm:$0xff]  }
 0x217   :  { %v1173_v29 = vpop.f32.mrf.mxu0  ;;  %v1214_v31 = vpop.f32.mrf.mxu1  ;;  %2125 = vmatprep.subr.bf16.mxu0 %v2970_v56 }
 0x218   :  { %v1174_v37 = vadd.f32 1e-08, %v1173_v29 }
 0x219   :  { %v1175_v39 = vpop.f32.mrf.mxu0  ;;  %v1216_v43 = vpop.f32.mrf.mxu1 }
 0x21a   :  { %v1215_v0 = vadd.f32 %v1214_v31, %v1174_v37  ;;  %v1176_v1 = vadd.f32 1e-08, %v1175_v39  ;;  %2126 = vmatpush2.bf16.msra.mxu0 %v2968_v27  ;;  %v2998_v27 = vld [vmem:[#allocation8 + $0x108] ss:$16 sps:$4 sm:$0xff]  }
 0x21b   :  { %v1177_v45 = vpop.f32.mrf.mxu0  ;;  %v1218_v2 = vpop.f32.mrf.mxu1  ;;  %2127 = vmatprep.subr.bf16.mxu0 %v2976_v33  ;;  %v3001_v39 = vld [vmem:[#allocation8 + $0x2e8] ss:$16 sps:$4 sm:$0xff]  }
 0x21c   :  { %3053 = vrsqrt.f32 %v1215_v0  ;;  %v1217_v6 = vadd.f32 %v1216_v43, %v1176_v1  ;;  %v3006_v0 = vld [vmem:[#allocation8 + $0x2cc] ss:$16 sps:$4 sm:$0xff]   ;;  %v3065_v1 = vld [vmem:[#allocation10 + $0xe4] ss:$16 sps:$4 sm:$0xff]   ;;  %v3066_v45 = vld [vmem:[#allocation10 + $0xe0] ss:$16 sps:$4 sm:$0xff]  }
 0x21d   :  { %v1178_v8 = vpop.f32.mrf.mxu0  ;;  %v1219_v10 = vpop.f32.mrf.mxu1  ;;  %v3007_v2 = vld [vmem:[#allocation8 + $0x2a8] ss:$16 sps:$4 sm:$0xff]  }
 0x21e   :  { %3055 = vrsqrt.f32 %v1217_v6  ;;  %2128 = vmatpush2.bf16.msra.mxu0 %v2974_v41  ;;  %v3004_v41 = vld [vmem:[#allocation8 + $0x2c8] ss:$16 sps:$4 sm:$0xff]   ;;  %v3068_v6 = vld [vmem:[#allocation10 + $0xc0] ss:$16 sps:$4 sm:$0xff]   ;;  %v3069_v8 = vld [vmem:[#allocation10 + $0xa4] ss:$16 sps:$4 sm:$0xff]  }
 0x21f   :  { %2129 = vmatprep.subr.bf16.mxu0 %v2982_v4  ;;  %v3012_v4 = vld [vmem:[#allocation8 + $0x28c] ss:$16 sps:$4 sm:$0xff]   ;;  %v3010_v10 = vld [vmem:[#allocation8 + $0x288] ss:$16 sps:$4 sm:$0xff]  }
 0x222   :  { %2130 = vmatpush2.bf16.msra.mxu0 %v2980_v12  ;;  %v3070_v12 = vld [vmem:[#allocation10 + $0xa0] ss:$16 sps:$4 sm:$0xff]  }
 0x223   :  { %2131 = vmatprep.subr.bf16.mxu0 %v2988_v14  ;;  %v3071_v14 = vld [vmem:[#allocation10 + $0x84] ss:$16 sps:$4 sm:$0xff]  }
 0x226   :  { %2132 = vmatpush2.bf16.msra.mxu0 %v2986_v16  ;;  %v3013_v16 = vld [vmem:[#allocation8 + $0x268] ss:$16 sps:$4 sm:$0xff]  }
 0x227   :  { %2133 = vmatprep.subr.bf16.mxu0 %v2994_v18  ;;  %v3018_v18 = vld [vmem:[#allocation8 + $0x24c] ss:$16 sps:$4 sm:$0xff]  }
 0x229   :  { %v3054_v56 = vpop.eup %3053 }
 0x22a   :  { %2134 = vmatpush2.bf16.msra.mxu0 %v2992_v20  ;;  %v1227_v31 = vmul.f32 %v3054_v56, %v3371_v42  ;;  %v3009_v42 = vld [vmem:[#allocation8 + $0x2ac] ss:$16 sps:$4 sm:$0xff]   ;;  %v3072_v20 = vld [vmem:[#allocation10 + $0x80] ss:$16 sps:$4 sm:$0xff]   ;;  %v3016_v56 = vld [vmem:[#allocation8 + $0x248] ss:$16 sps:$4 sm:$0xff]  }
 0x22b   :  { %v3056_v29 = vpop.eup %3055  ;;  %2135 = vmatprep.subr.bf16.mxu0 %v3000_v55  ;;  %v3073_v55 = vld [vmem:[#allocation10 + $0x64] ss:$16 sps:$4 sm:$0xff]  }
 0x22c   :  { %v1228_v33 = vmul.f32 %v3056_v29, %v3375_v46  ;;  %v3499_v43 = vpack.c.bf16 %v1227_v31, %v1227_v31  ;;  %v3067_v46 = vld [vmem:[#allocation10 + $0xc4] ss:$16 sps:$4 sm:$0xff]   ;;  %v3074_v29 = vld [vmem:[#allocation10 + $0x60] ss:$16 sps:$4 sm:$0xff]  }
 0x22d   :  { %v3075_v31 = vld [vmem:[#allocation10 + $0x44] ss:$16 sps:$4 sm:$0xff]  }
 0x22e   :  { %2136 = vmatpush2.bf16.msra.mxu0 %v2998_v27  ;;  %v1232_v37 = vpack.c.bf16 %v1228_v33, %v1228_v33  ;;  %v3021_v27 = vld [vmem:[#allocation8 + $0x22c] ss:$16 sps:$4 sm:$0xff]   ;;  %v3019_v33 = vld [vmem:[#allocation8 + $0x228] ss:$16 sps:$4 sm:$0xff]  }
 0x22f   :  { %2203 = vmatprep.subr.bf16.mxu0 %v3065_v1  ;;  %v3022_v1 = vld [vmem:[#allocation8 + $0x208] ss:$16 sps:$4 sm:$0xff]  }
 0x230   :  { %2096 = vmatprep.mubr.bf16.mxu1 %v1232_v37 }
 0x231   :  { %2097 = vmatmul.mubr.bf16.vlgmr.msra.gmra.mxu1 %v3499_v43  ;;  %2138 = vmatmul.mubr.bf16.vlgmr.msra.gmra.mxu0 %v3494_v35  ;;  %v3015_v35 = vld [vmem:[#allocation8 + $0x26c] ss:$16 sps:$4 sm:$0xff]  }
 0x232   :  { %2147 = vmatpush1.bf16.msra.mxu1 %v3001_v39  ;;  %2178 = vmatprep.mubr.bf16.mxu1 %v1232_v37  ;;  %v3024_v37 = vld [vmem:[#allocation8 + $0x20c] ss:$16 sps:$4 sm:$0xff]   ;;  %v3076_v39 = vld [vmem:[#allocation10 + $0x40] ss:$16 sps:$4 sm:$0xff]  }
 0x233   :  { %2148 = vmatprep.subr.bf16.mxu1 %v3006_v0  ;;  %2204 = vmatpush1.bf16.msra.mxu0 %v3066_v45  ;;  %v3077_v0 = vld [vmem:[#allocation10 + $0x24] ss:$16 sps:$4 sm:$0xff]  }
 0x234   :  { %2205 = vmatprep.subr.bf16.mxu0 %v3067_v46  ;;  %v3079_v45 = vld [vmem:[#allocation10 + $0x4] ss:$16 sps:$4 sm:$0xff]   ;;  %v3025_v46 = vld [vmem:[#allocation8 + $0x3e8] ss:$16 sps:$4 sm:$0xff]  }
 0x236   :  { %2149 = vmatpush1.bf16.msra.mxu1 %v3004_v41  ;;  %v3027_v41 = vld [vmem:[#allocation8 + $0x3ec] ss:$16 sps:$4 sm:$0xff]  }
 0x237   :  { %2150 = vmatprep.subr.bf16.mxu1 %v3009_v42  ;;  %2206 = vmatpush1.bf16.msra.mxu0 %v3068_v6  ;;  %v3078_v42 = vld [vmem:[#allocation10 + $0x20] ss:$16 sps:$4 sm:$0xff]   ;;  %v3081_v6 = vld [vmem:[#allocation10 + $0x1e4] ss:$16 sps:$4 sm:$0xff]  }
 0x238   :  { %2207 = vmatprep.subr.bf16.mxu0 %v3069_v8  ;;  %v3028_v8 = vld [vmem:[#allocation8 + $0x3c8] ss:$16 sps:$4 sm:$0xff]  }
 0x23a   :  { %2151 = vmatpush1.bf16.msra.mxu1 %v3007_v2  ;;  %v3030_v2 = vld [vmem:[#allocation8 + $0x3cc] ss:$16 sps:$4 sm:$0xff]  }
 0x23b   :  { %2152 = vmatprep.subr.bf16.mxu1 %v3012_v4  ;;  %2208 = vmatpush1.bf16.msra.mxu0 %v3070_v12  ;;  %v3080_v4 = vld [vmem:[#allocation10] ss:$16 sps:$4 sm:$0xff]   ;;  %v3083_v12 = vld [vmem:[#allocation10 + $0x1c4] ss:$16 sps:$4 sm:$0xff]  }
 0x23c   :  { %2209 = vmatprep.subr.bf16.mxu0 %v3071_v14  ;;  %v3031_v14 = vld [vmem:[#allocation8 + $0x3a8] ss:$16 sps:$4 sm:$0xff]  }
 0x23e   :  { %2153 = vmatpush1.bf16.msra.mxu1 %v3010_v10  ;;  %v3033_v10 = vld [vmem:[#allocation8 + $0x3ac] ss:$16 sps:$4 sm:$0xff]  }
 0x23f   :  { %2154 = vmatprep.subr.bf16.mxu1 %v3015_v35  ;;  %2210 = vmatpush1.bf16.msra.mxu0 %v3072_v20  ;;  %v3082_v35 = vld [vmem:[#allocation10 + $0x1e0] ss:$16 sps:$4 sm:$0xff]   ;;  %v3085_v20 = vld [vmem:[#allocation10 + $0x1a4] ss:$16 sps:$4 sm:$0xff]  }
 0x240   :  { %2211 = vmatprep.subr.bf16.mxu0 %v3073_v55  ;;  %v3034_v55 = vld [vmem:[#allocation8 + $0x388] ss:$16 sps:$4 sm:$0xff]  }
 0x242   :  { %2155 = vmatpush1.bf16.msra.mxu1 %v3013_v16  ;;  %v3036_v16 = vld [vmem:[#allocation8 + $0x38c] ss:$16 sps:$4 sm:$0xff]  }
 0x243   :  { %2156 = vmatprep.subr.bf16.mxu1 %v3018_v18  ;;  %2212 = vmatpush1.bf16.msra.mxu0 %v3074_v29  ;;  %v3084_v18 = vld [vmem:[#allocation10 + $0x1c0] ss:$16 sps:$4 sm:$0xff]   ;;  %v3087_v29 = vld [vmem:[#allocation10 + $0x184] ss:$16 sps:$4 sm:$0xff]  }
 0x244   :  { %2213 = vmatprep.subr.bf16.mxu0 %v3075_v31  ;;  %v3037_v31 = vld [vmem:[#allocation8 + $0x368] ss:$16 sps:$4 sm:$0xff]  }
 0x246   :  { %2157 = vmatpush1.bf16.msra.mxu1 %v3016_v56  ;;  %v3039_v56 = vld [vmem:[#allocation8 + $0x36c] ss:$16 sps:$4 sm:$0xff]  }
 0x247   :  { %2158 = vmatprep.subr.bf16.mxu1 %v3021_v27  ;;  %2214 = vmatpush1.bf16.msra.mxu0 %v3076_v39  ;;  %v3086_v27 = vld [vmem:[#allocation10 + $0x1a0] ss:$16 sps:$4 sm:$0xff]   ;;  %v3089_v39 = vld [vmem:[#allocation10 + $0x164] ss:$16 sps:$4 sm:$0xff]  }
 0x248   :  { %2215 = vmatprep.subr.bf16.mxu0 %v3077_v0  ;;  %v3040_v0 = vld [vmem:[#allocation8 + $0x348] ss:$16 sps:$4 sm:$0xff]  }
 0x24a   :  { %2159 = vmatpush1.bf16.msra.mxu1 %v3019_v33  ;;  %v3042_v33 = vld [vmem:[#allocation8 + $0x34c] ss:$16 sps:$4 sm:$0xff]  }
 0x24b   :  { %2160 = vmatprep.subr.bf16.mxu1 %v3024_v37  ;;  %2216 = vmatpush1.bf16.msra.mxu0 %v3078_v42  ;;  %v3088_v37 = vld [vmem:[#allocation10 + $0x180] ss:$16 sps:$4 sm:$0xff]   ;;  %v3091_v42 = vld [vmem:[#allocation10 + $0x144] ss:$16 sps:$4 sm:$0xff]  }
 0x24c   :  { %2217 = vmatprep.subr.bf16.mxu0 %v3079_v45  ;;  %v3043_v45 = vld [vmem:[#allocation8 + $0x328] ss:$16 sps:$4 sm:$0xff]  }
 0x24e   :  { %2161 = vmatpush1.bf16.msra.mxu1 %v3022_v1  ;;  %v3045_v1 = vld [vmem:[#allocation8 + $0x32c] ss:$16 sps:$4 sm:$0xff]  }
 0x24f   :  { %2162 = vmatprep.subr.bf16.mxu1 %v3027_v41  ;;  %2218 = vmatpush1.bf16.msra.mxu0 %v3080_v4  ;;  %v3090_v41 = vld [vmem:[#allocation10 + $0x160] ss:$16 sps:$4 sm:$0xff]   ;;  %v3093_v4 = vld [vmem:[#allocation10 + $0x124] ss:$16 sps:$4 sm:$0xff]  }
 0x250   :  { %2219 = vmatprep.subr.bf16.mxu0 %v3081_v6  ;;  %v3046_v6 = vld [vmem:[#allocation8 + $0x308] ss:$16 sps:$4 sm:$0xff]  }
 0x252   :  { %2163 = vmatpush2.bf16.msra.mxu1 %v3025_v46  ;;  %v3048_v46 = vld [vmem:[#allocation8 + $0x30c] ss:$16 sps:$4 sm:$0xff]  }
 0x253   :  { %2164 = vmatprep.subr.bf16.mxu1 %v3030_v2  ;;  %2220 = vmatpush2.bf16.msra.mxu0 %v3082_v35  ;;  %v3092_v2 = vld [vmem:[#allocation10 + $0x140] ss:$16 sps:$4 sm:$0xff]  }
 0x254   :  { %2221 = vmatprep.subr.bf16.mxu0 %v3083_v12  ;;  %v3096_v35 = vld [vmem:[#allocation10 + $0x100] ss:$16 sps:$4 sm:$0xff]   ;;  %v3097_v12 = vld [vmem:[#allocation10 + $0x2e4] ss:$16 sps:$4 sm:$0xff]  }
 0x256   :  { %2165 = vmatpush2.bf16.msra.mxu1 %v3028_v8  ;;  %v3094_v8 = vld [vmem:[#allocation10 + $0x120] ss:$16 sps:$4 sm:$0xff]  }
 0x257   :  { %2166 = vmatprep.subr.bf16.mxu1 %v3033_v10  ;;  %2222 = vmatpush2.bf16.msra.mxu0 %v3084_v18  ;;  %v3095_v10 = vld [vmem:[#allocation10 + $0x104] ss:$16 sps:$4 sm:$0xff]  }
 0x258   :  { %2223 = vmatprep.subr.bf16.mxu0 %v3085_v20  ;;  %v3100_v18 = vld [vmem:[#allocation10 + $0x2c4] ss:$16 sps:$4 sm:$0xff]   ;;  %v3101_v20 = vld [vmem:[#allocation10 + $0x2c0] ss:$16 sps:$4 sm:$0xff]  }
 0x25a   :  { %2167 = vmatpush2.bf16.msra.mxu1 %v3031_v14  ;;  %v3098_v14 = vld [vmem:[#allocation10 + $0xec] ss:$16 sps:$4 sm:$0xff]  }
 0x25b   :  { %2168 = vmatprep.subr.bf16.mxu1 %v3036_v16  ;;  %2224 = vmatpush2.bf16.msra.mxu0 %v3086_v27  ;;  %v3099_v16 = vld [vmem:[#allocation10 + $0x2e0] ss:$16 sps:$4 sm:$0xff]   ;;  %v3104_v27 = vld [vmem:[#allocation10 + $0x284] ss:$16 sps:$4 sm:$0xff]  }
 0x25c   :  { %2225 = vmatprep.subr.bf16.mxu0 %v3087_v29  ;;  %v3105_v29 = vld [vmem:[#allocation10 + $0x280] ss:$16 sps:$4 sm:$0xff]  }
 0x25e   :  { %2169 = vmatpush2.bf16.msra.mxu1 %v3034_v55  ;;  %v3102_v55 = vld [vmem:[#allocation10 + $0x2a4] ss:$16 sps:$4 sm:$0xff]  }
 0x25f   :  { %2170 = vmatprep.subr.bf16.mxu1 %v3039_v56  ;;  %2226 = vmatpush2.bf16.msra.mxu0 %v3088_v37  ;;  %v3103_v56 = vld [vmem:[#allocation10 + $0x2a0] ss:$16 sps:$4 sm:$0xff]   ;;  %v3108_v37 = vld [vmem:[#allocation10 + $0x244] ss:$16 sps:$4 sm:$0xff]  }
 0x260   :  { %2227 = vmatprep.subr.bf16.mxu0 %v3089_v39  ;;  %v3110_v39 = vld [vmem:[#allocation10 + $0x224] ss:$16 sps:$4 sm:$0xff]  }
 0x262   :  { %2171 = vmatpush2.bf16.msra.mxu1 %v3037_v31  ;;  %v3106_v31 = vld [vmem:[#allocation10 + $0x264] ss:$16 sps:$4 sm:$0xff]  }
 0x263   :  { %2172 = vmatprep.subr.bf16.mxu1 %v3042_v33  ;;  %2228 = vmatpush2.bf16.msra.mxu0 %v3090_v41  ;;  %v3107_v33 = vld [vmem:[#allocation10 + $0x260] ss:$16 sps:$4 sm:$0xff]  }
 0x264   :  { %2229 = vmatprep.subr.bf16.mxu0 %v3091_v42  ;;  %v3113_v41 = vld [vmem:[#allocation10 + $0x200] ss:$16 sps:$4 sm:$0xff]   ;;  %v3114_v42 = vld [vmem:[#allocation10 + $0x3e4] ss:$16 sps:$4 sm:$0xff]  }
 0x266   :  { %2173 = vmatpush2.bf16.msra.mxu1 %v3040_v0  ;;  %v3111_v0 = vld [vmem:[#allocation10 + $0x220] ss:$16 sps:$4 sm:$0xff]  }
 0x267   :  { %2174 = vmatprep.subr.bf16.mxu1 %v3045_v1  ;;  %2230 = vmatpush2.bf16.msra.mxu0 %v3092_v2  ;;  %v3112_v1 = vld [vmem:[#allocation10 + $0x204] ss:$16 sps:$4 sm:$0xff]   ;;  %v3117_v2 = vld [vmem:[#allocation10 + $0x3c0] ss:$16 sps:$4 sm:$0xff]  }
 0x268   :  { %2231 = vmatprep.subr.bf16.mxu0 %v3093_v4  ;;  %v3118_v4 = vld [vmem:[#allocation10 + $0x3a4] ss:$16 sps:$4 sm:$0xff]  }
 0x26a   :  { %2175 = vmatpush2.bf16.msra.mxu1 %v3043_v45  ;;  %v3115_v45 = vld [vmem:[#allocation10 + $0x3e0] ss:$16 sps:$4 sm:$0xff]  }
 0x26b   :  { %2176 = vmatprep.subr.bf16.mxu1 %v3048_v46  ;;  %2232 = vmatpush2.bf16.msra.mxu0 %v3094_v8  ;;  %v3116_v46 = vld [vmem:[#allocation10 + $0x3c4] ss:$16 sps:$4 sm:$0xff]  }
 0x26c   :  { %2233 = vmatprep.subr.bf16.mxu0 %v3095_v10  ;;  %v3120_v8 = vld [vmem:[#allocation10 + $0x384] ss:$16 sps:$4 sm:$0xff]   ;;  %v3121_v10 = vld [vmem:[#allocation10 + $0x380] ss:$16 sps:$4 sm:$0xff]  }
 0x26e   :  { %2177 = vmatpush2.bf16.msra.mxu1 %v3046_v6  ;;  %v3119_v6 = vld [vmem:[#allocation10 + $0x3a0] ss:$16 sps:$4 sm:$0xff]  }
 0x26f   :  { %2234 = vmatpush2.bf16.msra.mxu0 %v3096_v35  ;;  %2244 = vmatprep.subr.bf16.mxu1 %v3097_v12  ;;  %v3122_v35 = vld [vmem:[#allocation10 + $0x364] ss:$16 sps:$4 sm:$0xff]   ;;  %v3123_v12 = vld [vmem:[#allocation10 + $0x360] ss:$16 sps:$4 sm:$0xff]  }
 0x270   :  { %2285 = vmatprep.subr.bf16.mxu0 %v3098_v14  ;;  %v3124_v14 = vld [vmem:[#allocation10 + $0x344] ss:$16 sps:$4 sm:$0xff]  }
 0x271   :  { %2179 = vmatmul.mubr.bf16.vlgmr.msra.gmra.mxu1 %v3499_v43  ;;  %v3109_v43 = vld [vmem:[#allocation10 + $0x240] ss:$16 sps:$4 sm:$0xff]  }
 0x272   :  { %2245 = vmatpush1.bf16.msra.mxu1 %v3099_v16  ;;  %v3125_v16 = vld [vmem:[#allocation10 + $0x340] ss:$16 sps:$4 sm:$0xff]  }
 0x273   :  { %2246 = vmatprep.subr.bf16.mxu1 %v3100_v18  ;;  %v3126_v18 = vld [vmem:[#allocation10 + $0x324] ss:$16 sps:$4 sm:$0xff]  }
 0x276   :  { %2247 = vmatpush1.bf16.msra.mxu1 %v3101_v20  ;;  %v3127_v20 = vld [vmem:[#allocation10 + $0x320] ss:$16 sps:$4 sm:$0xff]  }
 0x277   :  { %2248 = vmatprep.subr.bf16.mxu1 %v3102_v55  ;;  %v3128_v55 = vld [vmem:[#allocation10 + $0x304] ss:$16 sps:$4 sm:$0xff]  }
 0x27a   :  { %2249 = vmatpush1.bf16.msra.mxu1 %v3103_v56  ;;  %v3129_v56 = vld [vmem:[#allocation10 + $0x300] ss:$16 sps:$4 sm:$0xff]  }
 0x27b   :  { %2250 = vmatprep.subr.bf16.mxu1 %v3104_v27  ;;  %v3130_v27 = vld [vmem:[#allocation10 + $0x2ec] ss:$16 sps:$4 sm:$0xff]  }
 0x27e   :  { %2251 = vmatpush1.bf16.msra.mxu1 %v3105_v29 }
 0x27f   :  { %2252 = vmatprep.subr.bf16.mxu1 %v3106_v31 }
 0x282   :  { %2253 = vmatpush1.bf16.msra.mxu1 %v3107_v33 }
 0x283   :  { %2254 = vmatprep.subr.bf16.mxu1 %v3108_v37 }
 0x286   :  { %2255 = vmatpush1.bf16.msra.mxu1 %v3109_v43  ;;  %v1361_v43 = vld [vmem:[%s3575_s4] sm:$0xf]  ;;  %s3298_s4 = smov [#allocation11]  }
 0x287   :  { %2256 = vmatprep.subr.bf16.mxu1 %v3110_v39  ;;  %v1366_v39 = vrot.slane %v1361_v43, %v109_v22  ;;  %s2385_s23 = sshll.u32 %s3298_s4, 4  ;;  %s2386_s23 = int_to_ptr.vmem [resolvable:$true] %s2385_s23 }
 0x288   :  { %s3260_s24 = scalar_lea.vmem %s2386_s23, 512  ;;  %p3265_p12 = scmp.lt.s32.totalorder %s2386_s23, %s2386_s23 }
 0x289   :  { %p3261_p11 = scmp.ne.s32.totalorder %s2386_s23, %s3260_s24  ;;  %p3266_p13 = scmp.lt.s32.totalorder %s3260_s24, %s3260_s24 }
 0x28a   :  { %2257 = vmatpush1.bf16.msra.mxu1 %v3111_v0  ;;  %v1370_v0 = vrot.slane %v1361_v43, %v113_v25 }
 0x28b   :  { %2258 = vmatprep.subr.bf16.mxu1 %v3112_v1  ;;  %p3267_p0 = por %p3266_p13, %p3265_p12 }
 0x28d   :  { %p3268_p1 = pnand %p3267_p0, %p3261_p11 }
 0x28e   :  { %2259 = vmatpush1.bf16.msra.mxu1 %v3113_v41 }
 0x28f   :  { %2260 = vmatprep.subr.bf16.mxu1 %v3114_v42 }
 0x292   :  { %2261 = vmatpush2.bf16.msra.mxu1 %v3115_v45 }
 0x293   :  { %2262 = vmatprep.subr.bf16.mxu1 %v3116_v46 }
 0x296   :  { %2263 = vmatpush2.bf16.msra.mxu1 %v3117_v2 }
 0x297   :  { %2264 = vmatprep.subr.bf16.mxu1 %v3118_v4 }
 0x29a   :  { %2265 = vmatpush2.bf16.msra.mxu1 %v3119_v6 }
 0x29b   :  { %2266 = vmatprep.subr.bf16.mxu1 %v3120_v8 }
 0x29e   :  { %2267 = vmatpush2.bf16.msra.mxu1 %v3121_v10 }
 0x29f   :  { %2268 = vmatprep.subr.bf16.mxu1 %v3122_v35 }
 0x2a2   :  { %2269 = vmatpush2.bf16.msra.mxu1 %v3123_v12 }
 0x2a3   :  { %2270 = vmatprep.subr.bf16.mxu1 %v3124_v14 }
 0x2a6   :  { %2271 = vmatpush2.bf16.msra.mxu1 %v3125_v16 }
 0x2a7   :  { %2272 = vmatprep.subr.bf16.mxu1 %v3126_v18 }
 0x2aa   :  { %2273 = vmatpush2.bf16.msra.mxu1 %v3127_v20 }
 0x2ab   :  { %2274 = vmatprep.subr.bf16.mxu1 %v3128_v55 }
 0x2ae   :  { %2275 = vmatpush2.bf16.msra.mxu1 %v3129_v56 }
 0x2af   :  { %2326 = vmatprep.subr.bf16.mxu1 %v3130_v27  ;;  %v3131_v27 = vld [vmem:[#allocation10 + $0xe8] ss:$16 sps:$4 sm:$0xff]  }
 0x2b1   :  { %v2057_v29 = vpop.f32.mrf.mxu0 }
 0x2b2   :  { %v2058_v1 = vadd.f32 %v2057_v29, %v1366_v39  ;;  %v3132_v29 = vld [vmem:[#allocation10 + $0xcc] ss:$16 sps:$4 sm:$0xff]  }
 0x2b3   :  { %v2059_v31 = vpop.f32.mrf.mxu0  ;;  %v3136_v39 = vld [vmem:[#allocation10 + $0x8c] ss:$16 sps:$4 sm:$0xff]  }
 0x2b4   :  { %v2060_v45 = vadd.f32 %v2059_v31, %v1370_v0  ;;  %v3133_v31 = vld [vmem:[#allocation10 + $0xc8] ss:$16 sps:$4 sm:$0xff]   ;;  %v3148_v0 = vld [vmem:[#allocation10 + $0x22c] ss:$16 sps:$4 sm:$0xff]  }
 0x2b5   :  { %v2061_v33 = vpop.f32.mrf.mxu0 }
 0x2b6   :  { %v3134_v33 = vld [vmem:[#allocation10 + $0xac] ss:$16 sps:$4 sm:$0xff]  }
 0x2b7   :  { %v2062_v37 = vpop.f32.mrf.mxu0 }
 0x2b8   :  { %v3135_v37 = vld [vmem:[#allocation10 + $0xa8] ss:$16 sps:$4 sm:$0xff]  }
 0x2f1   :  { %v2098_v41 = vpop.f32.mrf.mxu1  ;;  %v2139_v42 = vpop.f32.mrf.mxu0 }
 0x2f2   :  { %v2099_v46 = vadd.f32 %v2098_v41, %v2058_v1  ;;  %v3149_v1 = vld [vmem:[#allocation10 + $0x228] ss:$16 sps:$4 sm:$0xff]   ;;  %v3150_v41 = vld [vmem:[#allocation10 + $0x20c] ss:$16 sps:$4 sm:$0xff]  }
 0x2f3   :  { %v2100_v2 = vpop.f32.mrf.mxu1  ;;  %v2141_v4 = vpop.f32.mrf.mxu0 }
 0x2f4   :  { %v2187_v6 = vmul.f32 0.2, %v2099_v46  ;;  %v2101_v8 = vadd.f32 %v2100_v2, %v2060_v45  ;;  %v3152_v45 = vld [vmem:[#allocation10 + $0x3ec] ss:$16 sps:$4 sm:$0xff]  }
 0x2f5   :  { %v2102_v10 = vpop.f32.mrf.mxu1  ;;  %v2143_v35 = vpop.f32.mrf.mxu0  ;;  %v3154_v2 = vld [vmem:[#allocation10 + $0x3cc] ss:$16 sps:$4 sm:$0xff]  }
 0x2f6   :  { %v3511_v12 = vmax.f32 %v2099_v46, %v2187_v6  ;;  %v2188_v14 = vmul.f32 0.2, %v2101_v8  ;;  %v3153_v46 = vld [vmem:[#allocation10 + $0x3e8] ss:$16 sps:$4 sm:$0xff]   ;;  %v3156_v6 = vld [vmem:[#allocation10 + $0x3ac] ss:$16 sps:$4 sm:$0xff]  }
 0x2f7   :  { %v2103_v16 = vpop.f32.mrf.mxu1  ;;  %v2144_v18 = vpop.f32.mrf.mxu0  ;;  %v3158_v10 = vld [vmem:[#allocation10 + $0x38c] ss:$16 sps:$4 sm:$0xff]   ;;  %v3159_v35 = vld [vmem:[#allocation10 + $0x388] ss:$16 sps:$4 sm:$0xff]  }
 0x2f8   :  { %v3513_v22 = vmax.f32 %v2101_v8, %v2188_v14  ;;  %v2195_v25 = vmul.f32 %v3511_v12, %v3511_v12  ;;  %v3157_v8 = vld [vmem:[#allocation10 + $0x3a8] ss:$16 sps:$4 sm:$0xff]  }
 0x2fa   :  { %v2196_v20 = vmul.f32 %v3513_v22, %v3513_v22  ;;  %v2199_v56 = vpack.c.bf16 %v2195_v25, %v2195_v25 }
 0x2fc   :  { %v2200_v55 = vpack.c.bf16 %v2196_v20, %v2196_v20 }
 0x2fe   :  { %2235 = vmatprep.mubr.bf16.mxu0 %v2200_v55 }
 0x2ff   :  { %2236 = vmatmul.mubr.bf16.vlgmr.msra.gmra.mxu0 %v2199_v56 }
 0x300   :  { %2286 = vmatpush1.bf16.msra.mxu0 %v3131_v27  ;;  %2317 = vmatprep.mubr.bf16.mxu0 %v2200_v55 }
 0x301   :  { %2287 = vmatprep.subr.bf16.mxu0 %v3132_v29 }
 0x304   :  { %2288 = vmatpush1.bf16.msra.mxu0 %v3133_v31 }
 0x305   :  { %2289 = vmatprep.subr.bf16.mxu0 %v3134_v33 }
 0x308   :  { %2290 = vmatpush1.bf16.msra.mxu0 %v3135_v37 }
 0x309   :  { %2291 = vmatprep.subr.bf16.mxu0 %v3136_v39 }
 0x30c   :  { %2292 = vmatpush1.bf16.msra.mxu0 %v3391_v3  ;;  %v1374_v3 = vrot.slane %v1361_v43, %v117_v23 }
 0x30d   :  { %2293 = vmatprep.subr.bf16.mxu0 %v3393_v5  ;;  %v1378_v5 = vrot.slane %v1361_v43, %v121_v26  ;;  %v3147_v43 = vld [vmem:[#allocation10 + $0x248] ss:$16 sps:$4 sm:$0xff]  }
 0x310   :  { %2294 = vmatpush1.bf16.msra.mxu0 %v3396_v7  ;;  %v2140_v7 = vadd.f32 %v2139_v42, %v1374_v3  ;;  %v3151_v42 = vld [vmem:[#allocation10 + $0x208] ss:$16 sps:$4 sm:$0xff]  }
 0x311   :  { %2295 = vmatprep.subr.bf16.mxu0 %v3399_v9 }
 0x314   :  { %2296 = vmatpush1.bf16.msra.mxu0 %v3402_v11  ;;  %v2142_v11 = vadd.f32 %v2141_v4, %v1378_v5  ;;  %v3155_v4 = vld [vmem:[#allocation10 + $0x3c8] ss:$16 sps:$4 sm:$0xff]  }
 0x315   :  { %2297 = vmatprep.subr.bf16.mxu0 %v3405_v13 }
 0x318   :  { %2298 = vmatpush1.bf16.msra.mxu0 %v3408_v15 }
 0x319   :  { %2299 = vmatprep.subr.bf16.mxu0 %v3411_v17 }
 0x31c   :  { %2300 = vmatpush1.bf16.msra.mxu0 %v3414_v19 }
 0x31d   :  { %2301 = vmatprep.subr.bf16.mxu0 %v3417_v24 }
 0x320   :  { %2302 = vmatpush2.bf16.msra.mxu0 %v3420_v28 }
 0x321   :  { %2303 = vmatprep.subr.bf16.mxu0 %v3423_v30 }
 0x324   :  { %2304 = vmatpush2.bf16.msra.mxu0 %v3426_v32 }
 0x325   :  { %2305 = vmatprep.subr.bf16.mxu0 %v3429_v34 }
 0x328   :  { %2306 = vmatpush2.bf16.msra.mxu0 %v3432_v36 }
 0x329   :  { %2307 = vmatprep.subr.bf16.mxu0 %v3435_v38  ;;  %v3137_v38 = vld [vmem:[#allocation10 + $0x2e8] ss:$16 sps:$4 sm:$0xff]  }
 0x32c   :  { %2308 = vmatpush2.bf16.msra.mxu0 %v3438_v40  ;;  %v3138_v40 = vld [vmem:[#allocation10 + $0x2cc] ss:$16 sps:$4 sm:$0xff]  }
 0x32d   :  { %2309 = vmatprep.subr.bf16.mxu0 %v3441_v44  ;;  %v3139_v44 = vld [vmem:[#allocation10 + $0x2c8] ss:$16 sps:$4 sm:$0xff]  }
 0x330   :  { %2310 = vmatpush2.bf16.msra.mxu0 %v3446_v48  ;;  %v3140_v48 = vld [vmem:[#allocation10 + $0x2ac] ss:$16 sps:$4 sm:$0xff]  }
 0x331   :  { %v2180_v9 = vpop.f32.mrf.mxu1  ;;  %2311 = vmatprep.subr.bf16.mxu0 %v3452_v50  ;;  %v3141_v50 = vld [vmem:[#allocation10 + $0x2a8] ss:$16 sps:$4 sm:$0xff]  }
 0x332   :  { %v2181_v13 = vadd.f32 %v2180_v9, %v2140_v7 }
 0x333   :  { %v2182_v15 = vpop.f32.mrf.mxu1 }
 0x334   :  { %v2189_v17 = vmul.f32 0.2, %v2181_v13  ;;  %v2183_v19 = vadd.f32 %v2182_v15, %v2142_v11  ;;  %2312 = vmatpush2.bf16.msra.mxu0 %v3458_v52  ;;  %v3142_v52 = vld [vmem:[#allocation10 + $0x28c] ss:$16 sps:$4 sm:$0xff]  }
 0x335   :  { %v2184_v23 = vpop.f32.mrf.mxu1  ;;  %2313 = vmatprep.subr.bf16.mxu0 %v3464_v54  ;;  %v3143_v54 = vld [vmem:[#allocation10 + $0x288] ss:$16 sps:$4 sm:$0xff]  }
 0x336   :  { %v3545_v24 = vmax.f32 %v2181_v13, %v2189_v17  ;;  %v2190_v21 = vmul.f32 0.2, %v2183_v19 }
 0x337   :  { %v2185_v26 = vpop.f32.mrf.mxu1 }
 0x338   :  { %v3547_v28 = vmax.f32 %v2183_v19, %v2190_v21  ;;  %2314 = vmatpush2.bf16.msra.mxu0 %v3470_v58  ;;  %v2197_v30 = vmul.f32 %v3545_v24, %v3545_v24  ;;  %v3144_v58 = vld [vmem:[#allocation10 + $0x26c] ss:$16 sps:$4 sm:$0xff]  }
 0x339   :  { %2315 = vmatprep.subr.bf16.mxu0 %v3476_v60  ;;  %v3145_v60 = vld [vmem:[#allocation10 + $0x268] ss:$16 sps:$4 sm:$0xff]  }
 0x33a   :  { %v2198_v32 = vmul.f32 %v3547_v28, %v3547_v28  ;;  %v2201_v36 = vpack.c.bf16 %v2197_v30, %v2197_v30 }
 0x33c   :  { %2316 = vmatpush2.bf16.msra.mxu0 %v3482_v62  ;;  %v2202_v34 = vpack.c.bf16 %v2198_v32, %v2198_v32  ;;  %v3146_v62 = vld [vmem:[#allocation10 + $0x24c] ss:$16 sps:$4 sm:$0xff]  }
 0x33e   :  { %2276 = vmatprep.mubr.bf16.mxu1 %v2202_v34 }
 0x33f   :  { %2277 = vmatmul.mubr.bf16.vlgmr.msra.gmra.mxu1 %v2201_v36  ;;  %2318 = vmatmul.mubr.bf16.vlgmr.msra.gmra.mxu0 %v2199_v56 }
 0x340   :  { %2327 = vmatpush1.bf16.msra.mxu1 %v3137_v38  ;;  %2358 = vmatprep.mubr.bf16.mxu1 %v2202_v34 }
 0x341   :  { %2328 = vmatprep.subr.bf16.mxu1 %v3138_v40 }
 0x344   :  { %2329 = vmatpush1.bf16.msra.mxu1 %v3139_v44 }
 0x345   :  { %2330 = vmatprep.subr.bf16.mxu1 %v3140_v48 }
 0x348   :  { %2331 = vmatpush1.bf16.msra.mxu1 %v3141_v50 }
 0x349   :  { %2332 = vmatprep.subr.bf16.mxu1 %v3142_v52 }
 0x34c   :  { %2333 = vmatpush1.bf16.msra.mxu1 %v3143_v54 }
 0x34d   :  { %2334 = vmatprep.subr.bf16.mxu1 %v3144_v58 }
 0x350   :  { %2335 = vmatpush1.bf16.msra.mxu1 %v3145_v60 }
 0x351   :  { %2336 = vmatprep.subr.bf16.mxu1 %v3146_v62 }
 0x354   :  { %2337 = vmatpush1.bf16.msra.mxu1 %v3147_v43 }
 0x355   :  { %2338 = vmatprep.subr.bf16.mxu1 %v3148_v0 }
 0x358   :  { %2339 = vmatpush1.bf16.msra.mxu1 %v3149_v1 }
 0x359   :  { %2340 = vmatprep.subr.bf16.mxu1 %v3150_v41 }
 0x35c   :  { %2341 = vmatpush1.bf16.msra.mxu1 %v3151_v42 }
 0x35d   :  { %2342 = vmatprep.subr.bf16.mxu1 %v3152_v45 }
 0x360   :  { %2343 = vmatpush2.bf16.msra.mxu1 %v3153_v46 }
 0x361   :  { %2344 = vmatprep.subr.bf16.mxu1 %v3154_v2 }
 0x364   :  { %2345 = vmatpush2.bf16.msra.mxu1 %v3155_v4 }
 0x365   :  { %2346 = vmatprep.subr.bf16.mxu1 %v3156_v6 }
 0x368   :  { %2347 = vmatpush2.bf16.msra.mxu1 %v3157_v8 }
 0x369   :  { %2348 = vmatprep.subr.bf16.mxu1 %v3158_v10 }
 0x36c   :  { %2349 = vmatpush2.bf16.msra.mxu1 %v3159_v35 }
 0x36d   :  { %2350 = vmatprep.subr.bf16.mxu1 %v3443_v47 }
 0x370   :  { %2351 = vmatpush2.bf16.msra.mxu1 %v3448_v49 }
 0x371   :  { %2352 = vmatprep.subr.bf16.mxu1 %v3454_v51 }
 0x374   :  { %2353 = vmatpush2.bf16.msra.mxu1 %v3460_v53 }
 0x375   :  { %2354 = vmatprep.subr.bf16.mxu1 %v3466_v57 }
 0x378   :  { %2355 = vmatpush2.bf16.msra.mxu1 %v3472_v59 }
 0x379   :  { %2356 = vmatprep.subr.bf16.mxu1 %v3478_v61 }
 0x37c   :  { %2357 = vmatpush2.bf16.msra.mxu1 %v3484_v63 }
 0x37f   :  { %2359 = vmatmul.mubr.bf16.vlgmr.msra.gmra.mxu1 %v2201_v36 }
 0x3bf   :  { %v2237_v14 = vpop.f32.mrf.mxu0 }
 0x3c0   :  { %v2238_v47 = vadd.f32 1e-08, %v2237_v14 }
 0x3c1   :  { %v2239_v16 = vpop.f32.mrf.mxu0 }
 0x3c2   :  { %v2240_v55 = vadd.f32 1e-08, %v2239_v16 }
 0x3c3   :  { %v2241_v18 = vpop.f32.mrf.mxu0 }
 0x3c5   :  { %v2242_v25 = vpop.f32.mrf.mxu0 }
 0x3ff   :  { %v2278_v20 = vpop.f32.mrf.mxu1  ;;  %v2319_v49 = vpop.f32.mrf.mxu0 }
 0x400   :  { %v2279_v51 = vadd.f32 %v2278_v20, %v2238_v47  ;;  %v2320_v39 = vadd.f32 1e-08, %v2319_v49 }
 0x401   :  { %v2280_v56 = vpop.f32.mrf.mxu1  ;;  %v2321_v53 = vpop.f32.mrf.mxu0 }
 0x402   :  { %3057 = vrsqrt.f32 %v2279_v51  ;;  %v2281_v57 = vadd.f32 %v2280_v56, %v2240_v55  ;;  %v2322_v5 = vadd.f32 1e-08, %v2321_v53 }
 0x403   :  { %v2282_v27 = vpop.f32.mrf.mxu1  ;;  %v2323_v59 = vpop.f32.mrf.mxu0 }
 0x404   :  { %3059 = vrsqrt.f32 %v2281_v57 }
 0x405   :  { %v2283_v61 = vpop.f32.mrf.mxu1  ;;  %v2324_v29 = vpop.f32.mrf.mxu0 }
 0x40f   :  { %v3058_v63 = vpop.eup %3057 }
 0x410   :  { %v2371_v31 = vmul.f32 %v3058_v63, %v3511_v12 }
 0x411   :  { %v3060_v33 = vpop.eup %3059 }
 0x412   :  { %v2372_v37 = vmul.f32 %v3060_v33, %v3513_v22  ;;  %2375 = vst [vmem:[#allocation11] sm:$0xff] %v2371_v31 }
 0x414   :  { %2376 = vst [vmem:[#allocation11 + $0x8] sm:$0xff] %v2372_v37 }
 0x43f   :  { %v2360_v3 = vpop.f32.mrf.mxu1 }
 0x440   :  { %v2361_v7 = vadd.f32 %v2360_v3, %v2320_v39 }
 0x441   :  { %v2362_v9 = vpop.f32.mrf.mxu1 }
 0x442   :  { %3061 = vrsqrt.f32 %v2361_v7  ;;  %v2363_v11 = vadd.f32 %v2362_v9, %v2322_v5 }
 0x443   :  { %v2364_v13 = vpop.f32.mrf.mxu1 }
 0x444   :  { %3063 = vrsqrt.f32 %v2363_v11 }
 0x445   :  { %v2365_v15 = vpop.f32.mrf.mxu1 }
 0x44f   :  { %v3062_v17 = vpop.eup %3061 }
 0x450   :  { %v2373_v12 = vmul.f32 %v3062_v17, %v3545_v24 }
 0x451   :  { %v3064_v19 = vpop.eup %3063 }
 0x452   :  { %v2374_v22 = vmul.f32 %v3064_v19, %v3547_v28  ;;  %2377 = vst [vmem:[#allocation11 + $0x10] sm:$0xff] %v2373_v12 }
 0x454   :  { %2378 = vst [vmem:[#allocation11 + $0x18] sm:$0xff] %v2374_v22 }
 0x455   :  { %3271 = shalt.err (!%p3268_p1)
}
 0x456   :  { %2388 = dma.vmem_to_hbm [thread:$0]  %s2386_s23, 512, %s3577_s6, [#allocation4]  }
 0x457   :  { %3286 = dma.done.wait [#allocation4], 512  }
 0x458   :  { %3287 = vsyncadd [#allocation4], 4294966784 }
 0x459   :  { %2392 = vsyncpa [#allocation3], 1 }
 0x45a   :  { %2393 = vsyncpa [#allocation6], 1 }
 0x45b   :  { %2394 = vsyncpa [#allocation9], 1 }
 0x45c   :  { %2395 = vsyncpa [#allocation4], 1 }

</bundles_post_ra>
